<compile_context>
chip_gen: v7x
topology: tpu7x:2x2x1
jax: 0.10.0
libtpu: 0.0.40
codegen_flags: <defaults>
</compile_context>

<pallas_src>
import functools
import math

import jax
import jax.numpy as jnp
import numpy as np
from jax.experimental import pallas as pl
from jax.experimental.pallas import tpu as pltpu
from jax.scipy.linalg import block_diag

NEG_SLOPE = 0.01  # torch.nn.LeakyReLU default negative_slope


def _leaky_relu(x):
    return jnp.where(x > 0, x, NEG_SLOPE * x)


def _round_up(v, m):
    return ((v + m - 1) // m) * m


def _choose_tiling(batch, block_b):
    """Pick (tile_rows, padded_batch, num_tiles): big tiles, even count >= 2."""
    pb8 = _round_up(max(batch, 8), 8)
    tb = _round_up(min(block_b, pb8), 8)
    num_tiles = -(-pb8 // tb)
    # v7x has 2 TensorCores; a "parallel" batch grid only uses both when it has
    # >= 2 tiles (prefer an even count).  The extra grid step costs ~0.35us on
    # the single-TC v5e/v6e, i.e. essentially free.
    if num_tiles == 1 and pb8 >= 16:
        num_tiles = 2
    if num_tiles > 1 and num_tiles % 2:
        num_tiles += 1
    tb = _round_up(-(-pb8 // num_tiles), 8)
    padded_b = tb * num_tiles
    return tb, padded_b, num_tiles


def _attention_reward_kernel(x_ref, encw_ref, encb_ref, selw_ref, keyw_ref,
                             valw_ref, valb_ref, red1_ref, expE_ref, red2_ref,
                             denD_ref, cw1e_ref, cw1a_ref, cb1_ref, cw2_ref,
                             cb2_ref, out_ref, *, n_agents, n_heads,
                             attend_dim):
    N = n_agents
    A = attend_dim
    NN = N * N
    NNA = NN * A
    cdt = jnp.bfloat16

    # ---- all agents' encoders in one block-diagonal matmul -----------------
    enc = _leaky_relu(
        jnp.dot(x_ref[...], encw_ref[...], preferred_element_type=jnp.float32)
        + encb_ref[...])                                   # (TB, N*H) f32
    enc_bf = enc.astype(cdt)

    # ---- key / selector / value projections, agent-pair lane-stacked -------
    # column layout: (head hd, selecting agent i, other agent j, attend lane a)
    sel_all = jnp.dot(enc_bf, selw_ref[...], preferred_element_type=jnp.float32)
    key_all = jnp.dot(enc_bf, keyw_ref[...], preferred_element_type=jnp.float32)
    val_all = _leaky_relu(
        jnp.dot(enc_bf, valw_ref[...], preferred_element_type=jnp.float32)
        + valb_ref[...])                                   # (TB, heads*NNA) f32

    # additive mask for the self columns (j == i) of the N*N logit lanes
    cols = jax.lax.broadcasted_iota(jnp.int32, (1, NN), 1)
    self_mask = jnp.where(cols % (N + 1) == 0, -1e30, 0.0).astype(jnp.float32)

    red1 = red1_ref[...]          # (NNA, NN)   bf16 0/1
    expE = expE_ref[...]          # (NN, NNA)   bf16 0/1
    red2 = red2_ref[...]          # (NNA, N*A)  bf16 0/1
    denD = denD_ref[...]          # (NN, N*A)   bf16 0/1

    # critic first layer, encoder part (block-diagonal across agents)
    acc = jnp.dot(enc_bf, cw1e_ref[...], preferred_element_type=jnp.float32)

    for hd in range(n_heads):
        sl = slice(hd * NNA, (hd + 1) * NNA)
        s = sel_all[:, sl]                                 # (TB, NNA)
        k = key_all[:, sl]
        v = val_all[:, sl]
        # logits[:, i*N+j] = <sel_i, key_j> / sqrt(A) (scale folded into selw)
        prod = (s * k).astype(cdt)
        logits = (jnp.dot(prod, red1, preferred_element_type=jnp.float32)
                  + self_mask)                             # (TB, NN)
        # shift-invariant softmax: one full-row max is valid for every segment
        m = jnp.max(logits, axis=-1, keepdims=True)
        ex = jnp.exp(logits - m)                           # self cols -> exact 0
        ex_bf = ex.astype(cdt)
        # expand weights to (i, j, a) lanes, weighted-sum values over j
        ex_exp = jnp.dot(ex_bf, expE, preferred_element_type=jnp.float32)
        nv = jnp.dot((ex_exp * v).astype(cdt), red2,
                     preferred_element_type=jnp.float32)   # (TB, N*A) numerator
        den = jnp.dot(ex_bf, denD, preferred_element_type=jnp.float32)
        den = jnp.maximum(den, 1e-37)                      # NaN guard (underflow)
        wv = nv * pl.reciprocal(den, approx=True)          # (TB, N*A)
        # critic first layer, attention part for this head (block-diag)
        acc = acc + jnp.dot(wv.astype(cdt), cw1a_ref[hd],
                            preferred_element_type=jnp.float32)

    h1 = _leaky_relu(acc + cb1_ref[...])                   # (TB, N*H)
    out_ref[...] = (jnp.dot(h1.astype(cdt), cw2_ref[...],
                            preferred_element_type=jnp.float32)
                    + cb2_ref[...])                        # (TB, N*out_dim)


def attention_reward_forward(x, params, *, block_b=1024):
    """x: (N_agents, B, sdim+adim) float32 -> (N_agents, B, out_dim)."""
    n_agents, batch, idim = x.shape
    assert n_agents >= 2, "attention over 'other agents' needs >= 2 agents"
    n_heads, H, A = params["key_w"].shape
    out_dim = params["crit_w2"].shape[-1]
    N = n_agents
    NN, NA, NNA = N * N, N * A, N * N * A
    scale = 1.0 / math.sqrt(A)
    f32, bf16 = jnp.float32, jnp.bfloat16

    # ---- batch tiling --------------------------------------------------------
    tb, padded_b, num_tiles = _choose_tiling(batch, block_b)

    # lane-pack the agents: (N, B, idim) -> (B, N*idim), pad batch, bf16
    xp = jnp.transpose(x, (1, 0, 2)).reshape(batch, N * idim)
    if padded_b != batch:
        xp = jnp.pad(xp, ((0, padded_b - batch), (0, 0)))
    xp = xp.astype(bf16)

    # ---- block-diagonal / agent-pair-tiled weights ---------------------------
    encw_bd = block_diag(*[params["enc_w"][n] for n in range(N)]).astype(bf16)
    encb = params["enc_b"].reshape(1, N * H).astype(f32)

    # pair patterns: column block c = i*N + j ; P_sel picks agent i, P_oth agent j
    P_sel = jnp.repeat(jnp.eye(N), N, axis=1)              # (N, N*N)
    P_oth = jnp.tile(jnp.eye(N), (1, N))                   # (N, N*N)
    selw = jnp.concatenate(
        [jnp.kron(P_sel, params["sel_w"][q] * scale) for q in range(n_heads)],
        axis=1).astype(bf16)                               # (N*H, heads*NNA)
    keyw = jnp.concatenate(
        [jnp.kron(P_oth, params["key_w"][q]) for q in range(n_heads)],
        axis=1).astype(bf16)
    valw = jnp.concatenate(
        [jnp.kron(P_oth, params["val_w"][q]) for q in range(n_heads)],
        axis=1).astype(bf16)
    valb = jnp.concatenate(
        [jnp.tile(params["val_b"][q].reshape(1, A), (1, NN))
         for q in range(n_heads)], axis=1).astype(f32)     # (1, heads*NNA)

    # constant 0/1 reduce / expand matrices (exact in bf16)
    r = jnp.arange(NNA)
    cNN = jnp.arange(NN)
    cNA = jnp.arange(NA)
    red1 = (r[:, None] // A == cNN[None, :]).astype(bf16)              # (NNA, NN)
    expE = (cNN[:, None] == r[None, :] // A).astype(bf16)              # (NN, NNA)
    red2 = ((r[:, None] // NA == cNA[None, :] // A)
            & (r[:, None] % A == cNA[None, :] % A)).astype(bf16)       # (NNA, NA)
    denD = (cNN[:, None] // N == cNA[None, :] // A).astype(bf16)       # (NN, NA)

    cw1e = block_diag(*[params["crit_w1"][n, :H, :]
                        for n in range(N)]).astype(bf16)               # (N*H, N*H)
    cw1a = jnp.stack([
        block_diag(*[params["crit_w1"][n, H + hd * A:H + (hd + 1) * A, :]
                     for n in range(N)]) for hd in range(n_heads)
    ]).astype(bf16)                                                    # (heads, N*A, N*H)
    cb1 = params["crit_b1"].reshape(1, N * H).astype(f32)
    cw2 = block_diag(*[params["crit_w2"][n] for n in range(N)]).astype(bf16)
    cb2 = params["crit_b2"].reshape(1, N * out_dim).astype(f32)

    weights = (encw_bd, encb, selw, keyw, valw, valb, red1, expE, red2, denD,
               cw1e, cw1a, cb1, cw2, cb2)

    kernel = functools.partial(_attention_reward_kernel, n_agents=N,
                               n_heads=n_heads, attend_dim=A)

    def _fixed_spec(shape):
        nd = len(shape)
        return pl.BlockSpec(shape, lambda b, _nd=nd: (0,) * _nd)

    in_specs = [pl.BlockSpec((tb, N * idim), lambda b: (b, 0))]
    in_specs += [_fixed_spec(w.shape) for w in weights]

    # scoped-VMEM guard for very large tiles (first binds on v5e's 16 MiB default)
    weight_bytes = sum(int(np.prod(w.shape)) * w.dtype.itemsize for w in weights)
    f32_lanes = 2 * N * H + 3 * n_heads * NNA + NNA + 2 * NA + 3 * NN + N * out_dim
    est = (tb * f32_lanes * 4 + 2 * tb * N * idim * 2
           + 2 * tb * N * out_dim * 4 + 2 * weight_bytes)
    cp_kwargs = dict(dimension_semantics=("parallel",))
    if est > (12 << 20):
        cp_kwargs["vmem_limit_bytes"] = int(min(2 * est, 64 << 20))

    out = pl.pallas_call(
        kernel,
        out_shape=jax.ShapeDtypeStruct((padded_b, N * out_dim), jnp.float32),
        grid=(num_tiles,),
        in_specs=in_specs,
        out_specs=pl.BlockSpec((tb, N * out_dim), lambda b: (b, 0)),
        compiler_params=pltpu.CompilerParams(**cp_kwargs),
    )(xp, *weights)

    out = out[:batch].reshape(batch, N, out_dim)
    return jnp.transpose(out, (1, 0, 2))


def init_params(key, sa_sizes, hidden_dim=32, attend_heads=1, out_dim=1):
    """Deterministic synthetic parameters (shapes from AttentionReward.__init__)."""
    sdim, adim = sa_sizes[0]
    assert all(s == (sdim, adim) for s in sa_sizes), "uniform sizes for stacking"
    assert hidden_dim % attend_heads == 0
    n = len(sa_sizes)
    idim = sdim + adim
    attend_dim = hidden_dim // attend_heads
    ks = jax.random.split(key, 10)

    def w(k, shape):
        return (0.1 * jax.random.normal(k, shape)).astype(jnp.float32)

    return dict(
        enc_w=w(ks[0], (n, idim, hidden_dim)),
        enc_b=w(ks[1], (n, 1, hidden_dim)),
        key_w=w(ks[2], (attend_heads, hidden_dim, attend_dim)),
        sel_w=w(ks[3], (attend_heads, hidden_dim, attend_dim)),
        val_w=w(ks[4], (attend_heads, hidden_dim, attend_dim)),
        val_b=w(ks[5], (attend_heads, 1, attend_dim)),
        crit_w1=w(ks[6], (n, hidden_dim + attend_heads * attend_dim, hidden_dim)),
        crit_b1=w(ks[7], (n, 1, hidden_dim)),
        crit_w2=w(ks[8], (n, hidden_dim, out_dim)),
        crit_b2=w(ks[9], (n, 1, out_dim)),
    )


def reference_forward(x, params):
    """Pure-JAX f32 reference mirroring the PyTorch forward semantics."""
    n_agents = x.shape[0]
    n_heads, _, attend_dim = params["key_w"].shape
    scale = 1.0 / math.sqrt(attend_dim)

    encs = [_leaky_relu(x[n] @ params["enc_w"][n] + params["enc_b"][n])
            for n in range(n_agents)]

    head_other_vals = [[] for _ in range(n_agents)]
    for hd in range(n_heads):
        keys = [e @ params["key_w"][hd] for e in encs]
        vals = [_leaky_relu(e @ params["val_w"][hd] + params["val_b"][hd])
                for e in encs]
        sels = [e @ params["sel_w"][hd] for e in encs]
        for i in range(n_agents):
            others = [j for j in range(n_agents) if j != i]
            logits = jnp.stack(
                [jnp.sum(sels[i] * keys[j], axis=-1) for j in others], axis=-1)
            wts = jax.nn.softmax(logits * scale, axis=-1)
            ov = sum(vals[j] * wts[:, k:k + 1] for k, j in enumerate(others))
            head_other_vals[i].append(ov)

    outs = []
    for i in range(n_agents):
        crit_in = jnp.concatenate([encs[i]] + head_other_vals[i], axis=-1)
        h = _leaky_relu(crit_in @ params["crit_w1"][i] + params["crit_b1"][i])
        outs.append(h @ params["crit_w2"][i] + params["crit_b2"][i])
    return jnp.stack(outs, axis=0)


if __name__ == "__main__":
    key = jax.random.PRNGKey(0)
    n_agents, sdim, adim = 3, 6, 2
    hidden_dim, attend_heads, out_dim = 32, 1, 1
    batch = 384                      # -> 2 "parallel" tiles of TB=192
    sa_sizes = [(sdim, adim)] * n_agents

    k_par, k_s, k_a = jax.random.split(key, 3)
    params = init_params(k_par, sa_sizes, hidden_dim, attend_heads, out_dim)
    states = jax.random.normal(k_s, (n_agents, batch, sdim), jnp.float32)
    actions = jax.random.normal(k_a, (n_agents, batch, adim), jnp.float32)
    # torch.cat((s, a), dim=1) per agent  ->  concat along feature axis
    x = jnp.concatenate([states, actions], axis=-1)

    out = jax.block_until_ready(attention_reward_forward(x, params))
    ref = jax.block_until_ready(reference_forward(x, params))
    assert out.shape == (n_agents, batch, out_dim)
    # bf16 matmul operands -> relaxed tolerance vs. the f32 reference
    assert np.allclose(np.asarray(out), np.asarray(ref), atol=2e-2, rtol=2e-2), (
        float(np.max(np.abs(np.asarray(out) - np.asarray(ref)))))
    print("KERNEL_OK")
</pallas_src>

<mosaic_0001>
module attributes {stable_mosaic.version = 11 : i64} {
  func.func @_attention_reward_kernel(%arg0: i32, %arg1: memref<192x24xbf16, #tpu.memory_space<vmem>>, %arg2: memref<24x96xbf16, #tpu.memory_space<vmem>>, %arg3: memref<1x96xf32, #tpu.memory_space<vmem>>, %arg4: memref<96x288xbf16, #tpu.memory_space<vmem>>, %arg5: memref<96x288xbf16, #tpu.memory_space<vmem>>, %arg6: memref<96x288xbf16, #tpu.memory_space<vmem>>, %arg7: memref<1x288xf32, #tpu.memory_space<vmem>>, %arg8: memref<288x9xbf16, #tpu.memory_space<vmem>>, %arg9: memref<9x288xbf16, #tpu.memory_space<vmem>>, %arg10: memref<288x96xbf16, #tpu.memory_space<vmem>>, %arg11: memref<9x96xbf16, #tpu.memory_space<vmem>>, %arg12: memref<96x96xbf16, #tpu.memory_space<vmem>>, %arg13: memref<1x96x96xbf16, #tpu.memory_space<vmem>>, %arg14: memref<1x96xf32, #tpu.memory_space<vmem>>, %arg15: memref<96x3xbf16, #tpu.memory_space<vmem>>, %arg16: memref<1x3xf32, #tpu.memory_space<vmem>>, %arg17: memref<192x3xf32, #tpu.memory_space<vmem>>) attributes {dimension_semantics = [#tpu.dimension_semantics<parallel>], iteration_bounds = array<i64: 2>, scalar_prefetch = 0 : i64, scratch_operands = 0 : i64, tpu.core_type = #tpu.core_type<tc>, window_params = [{transform_indices = @transform_0, window_bounds = array<i64: 192, 24>}, {pipeline_mode = #tpu.pipeline_mode<synchronous>, transform_indices = @transform_1, window_bounds = array<i64: 24, 96>}, {pipeline_mode = #tpu.pipeline_mode<synchronous>, transform_indices = @transform_2, window_bounds = array<i64: 1, 96>}, {pipeline_mode = #tpu.pipeline_mode<synchronous>, transform_indices = @transform_3, window_bounds = array<i64: 96, 288>}, {pipeline_mode = #tpu.pipeline_mode<synchronous>, transform_indices = @transform_4, window_bounds = array<i64: 96, 288>}, {pipeline_mode = #tpu.pipeline_mode<synchronous>, transform_indices = @transform_5, window_bounds = array<i64: 96, 288>}, {pipeline_mode = #tpu.pipeline_mode<synchronous>, transform_indices = @transform_6, window_bounds = array<i64: 1, 288>}, {pipeline_mode = #tpu.pipeline_mode<synchronous>, transform_indices = @transform_7, window_bounds = array<i64: 288, 9>}, {pipeline_mode = #tpu.pipeline_mode<synchronous>, transform_indices = @transform_8, window_bounds = array<i64: 9, 288>}, {pipeline_mode = #tpu.pipeline_mode<synchronous>, transform_indices = @transform_9, window_bounds = array<i64: 288, 96>}, {pipeline_mode = #tpu.pipeline_mode<synchronous>, transform_indices = @transform_10, window_bounds = array<i64: 9, 96>}, {pipeline_mode = #tpu.pipeline_mode<synchronous>, transform_indices = @transform_11, window_bounds = array<i64: 96, 96>}, {pipeline_mode = #tpu.pipeline_mode<synchronous>, transform_indices = @transform_12, window_bounds = array<i64: 1, 96, 96>}, {pipeline_mode = #tpu.pipeline_mode<synchronous>, transform_indices = @transform_13, window_bounds = array<i64: 1, 96>}, {pipeline_mode = #tpu.pipeline_mode<synchronous>, transform_indices = @transform_14, window_bounds = array<i64: 96, 3>}, {pipeline_mode = #tpu.pipeline_mode<synchronous>, transform_indices = @transform_15, window_bounds = array<i64: 1, 3>}, {transform_indices = @transform_16, window_bounds = array<i64: 192, 3>}]} {
    %c0 = arith.constant 0 : index
    %c0_0 = arith.constant 0 : index
    %0 = vector.load %arg1[%c0, %c0_0] : memref<192x24xbf16, #tpu.memory_space<vmem>>, vector<192x24xbf16>
    %c0_1 = arith.constant 0 : index
    %c0_2 = arith.constant 0 : index
    %1 = vector.load %arg2[%c0_1, %c0_2] : memref<24x96xbf16, #tpu.memory_space<vmem>>, vector<24x96xbf16>
    %cst = arith.constant dense<0.000000e+00> : vector<192x96xf32>
    %2 = tpu.matmul %0, %1, %cst {dimension_numbers = #tpu.dot_dimension_numbers<[1], [0], [0], [1], [0, 0, 1, 1], [], []>} : vector<192x24xbf16>, vector<24x96xbf16>, vector<192x96xf32> -> vector<192x96xf32>
    %c0_3 = arith.constant 0 : index
    %c0_4 = arith.constant 0 : index
    %3 = vector.load %arg3[%c0_3, %c0_4] : memref<1x96xf32, #tpu.memory_space<vmem>>, vector<1x96xf32>
    %4 = vector.broadcast %3 : vector<1x96xf32> to vector<192x96xf32>
    %5 = arith.addf %2, %4 : vector<192x96xf32>
    %cst_5 = arith.constant 0.000000e+00 : f32
    %6 = vector.broadcast %cst_5 : f32 to vector<192x96xf32>
    %7 = arith.cmpf ogt, %5, %6 : vector<192x96xf32>
    %cst_6 = arith.constant 0.00999999977 : f32
    %8 = vector.broadcast %cst_6 : f32 to vector<192x96xf32>
    %9 = arith.mulf %8, %5 : vector<192x96xf32>
    %10 = arith.select %7, %5, %9 : vector<192x96xi1>, vector<192x96xf32>
    %11 = arith.truncf %10 : vector<192x96xf32> to vector<192x96xbf16>
    %c0_7 = arith.constant 0 : index
    %c0_8 = arith.constant 0 : index
    %12 = vector.load %arg4[%c0_7, %c0_8] : memref<96x288xbf16, #tpu.memory_space<vmem>>, vector<96x288xbf16>
    %cst_9 = arith.constant dense<0.000000e+00> : vector<192x288xf32>
    %13 = tpu.matmul %11, %12, %cst_9 {dimension_numbers = #tpu.dot_dimension_numbers<[1], [0], [0], [1], [0, 0, 1, 1], [], []>} : vector<192x96xbf16>, vector<96x288xbf16>, vector<192x288xf32> -> vector<192x288xf32>
    %c0_10 = arith.constant 0 : index
    %c0_11 = arith.constant 0 : index
    %14 = vector.load %arg5[%c0_10, %c0_11] : memref<96x288xbf16, #tpu.memory_space<vmem>>, vector<96x288xbf16>
    %cst_12 = arith.constant dense<0.000000e+00> : vector<192x288xf32>
    %15 = tpu.matmul %11, %14, %cst_12 {dimension_numbers = #tpu.dot_dimension_numbers<[1], [0], [0], [1], [0, 0, 1, 1], [], []>} : vector<192x96xbf16>, vector<96x288xbf16>, vector<192x288xf32> -> vector<192x288xf32>
    %c0_13 = arith.constant 0 : index
    %c0_14 = arith.constant 0 : index
    %16 = vector.load %arg6[%c0_13, %c0_14] : memref<96x288xbf16, #tpu.memory_space<vmem>>, vector<96x288xbf16>
    %cst_15 = arith.constant dense<0.000000e+00> : vector<192x288xf32>
    %17 = tpu.matmul %11, %16, %cst_15 {dimension_numbers = #tpu.dot_dimension_numbers<[1], [0], [0], [1], [0, 0, 1, 1], [], []>} : vector<192x96xbf16>, vector<96x288xbf16>, vector<192x288xf32> -> vector<192x288xf32>
    %c0_16 = arith.constant 0 : index
    %c0_17 = arith.constant 0 : index
    %18 = vector.load %arg7[%c0_16, %c0_17] : memref<1x288xf32, #tpu.memory_space<vmem>>, vector<1x288xf32>
    %19 = vector.broadcast %18 : vector<1x288xf32> to vector<192x288xf32>
    %20 = arith.addf %17, %19 : vector<192x288xf32>
    %cst_18 = arith.constant 0.000000e+00 : f32
    %21 = vector.broadcast %cst_18 : f32 to vector<192x288xf32>
    %22 = arith.cmpf ogt, %20, %21 : vector<192x288xf32>
    %cst_19 = arith.constant 0.00999999977 : f32
    %23 = vector.broadcast %cst_19 : f32 to vector<192x288xf32>
    %24 = arith.mulf %23, %20 : vector<192x288xf32>
    %25 = arith.select %22, %20, %24 : vector<192x288xi1>, vector<192x288xf32>
    %26 = tpu.iota {dimensions = array<i32: 1>} : vector<1x9xi32>
    %c4_i32 = arith.constant 4 : i32
    %c0_i32 = arith.constant 0 : i32
    %27 = arith.cmpi eq, %c4_i32, %c0_i32 : i32
    %c1_i32 = arith.constant 1 : i32
    %28 = arith.select %27, %c1_i32, %c4_i32 : i32
    %29 = vector.broadcast %28 : i32 to vector<1x9xi32>
    %30 = arith.remsi %26, %29 : vector<1x9xi32>
    %c0_i32_20 = arith.constant 0 : i32
    %31 = vector.broadcast %c0_i32_20 : i32 to vector<1x9xi32>
    %32 = arith.cmpi ne, %30, %31 : vector<1x9xi32>
    %c0_i32_21 = arith.constant 0 : i32
    %33 = vector.broadcast %c0_i32_21 : i32 to vector<1x9xi32>
    %34 = arith.cmpi slt, %30, %33 : vector<1x9xi32>
    %c0_i32_22 = arith.constant 0 : i32
    %35 = arith.cmpi slt, %28, %c0_i32_22 : i32
    %36 = vector.broadcast %35 : i1 to vector<1x9xi1>
    %37 = vector.broadcast %36 : vector<1x9xi1> to vector<1x9xi1>
    %38 = arith.xori %34, %37 : vector<1x9xi1>
    %39 = arith.andi %38, %32 : vector<1x9xi1>
    %40 = vector.broadcast %28 : i32 to vector<1x9xi32>
    %41 = arith.addi %30, %40 : vector<1x9xi32>
    %42 = arith.select %39, %41, %30 : vector<1x9xi1>, vector<1x9xi32>
    %c0_i32_23 = arith.constant 0 : i32
    %43 = vector.broadcast %c0_i32_23 : i32 to vector<1x9xi32>
    %44 = arith.cmpi eq, %42, %43 : vector<1x9xi32>
    %cst_24 = arith.constant -1.000000e+30 : f32
    %cst_25 = arith.constant 0.000000e+00 : f32
    %45 = vector.broadcast %cst_24 : f32 to vector<1x9xf32>
    %46 = vector.broadcast %cst_25 : f32 to vector<1x9xf32>
    %47 = arith.select %44, %45, %46 : vector<1x9xi1>, vector<1x9xf32>
    %c0_26 = arith.constant 0 : index
    %c0_27 = arith.constant 0 : index
    %48 = vector.load %arg8[%c0_26, %c0_27] : memref<288x9xbf16, #tpu.memory_space<vmem>>, vector<288x9xbf16>
    %c0_28 = arith.constant 0 : index
    %c0_29 = arith.constant 0 : index
    %49 = vector.load %arg9[%c0_28, %c0_29] : memref<9x288xbf16, #tpu.memory_space<vmem>>, vector<9x288xbf16>
    %c0_30 = arith.constant 0 : index
    %c0_31 = arith.constant 0 : index
    %50 = vector.load %arg10[%c0_30, %c0_31] : memref<288x96xbf16, #tpu.memory_space<vmem>>, vector<288x96xbf16>
    %c0_32 = arith.constant 0 : index
    %c0_33 = arith.constant 0 : index
    %51 = vector.load %arg11[%c0_32, %c0_33] : memref<9x96xbf16, #tpu.memory_space<vmem>>, vector<9x96xbf16>
    %c0_34 = arith.constant 0 : index
    %c0_35 = arith.constant 0 : index
    %52 = vector.load %arg12[%c0_34, %c0_35] : memref<96x96xbf16, #tpu.memory_space<vmem>>, vector<96x96xbf16>
    %cst_36 = arith.constant dense<0.000000e+00> : vector<192x96xf32>
    %53 = tpu.matmul %11, %52, %cst_36 {dimension_numbers = #tpu.dot_dimension_numbers<[1], [0], [0], [1], [0, 0, 1, 1], [], []>} : vector<192x96xbf16>, vector<96x96xbf16>, vector<192x96xf32> -> vector<192x96xf32>
    %54 = arith.mulf %13, %15 : vector<192x288xf32>
    %55 = arith.truncf %54 : vector<192x288xf32> to vector<192x288xbf16>
    %cst_37 = arith.constant dense<0.000000e+00> : vector<192x9xf32>
    %56 = tpu.matmul %55, %48, %cst_37 {dimension_numbers = #tpu.dot_dimension_numbers<[1], [0], [0], [1], [0, 0, 1, 1], [], []>} : vector<192x288xbf16>, vector<288x9xbf16>, vector<192x9xf32> -> vector<192x9xf32>
    %57 = vector.broadcast %47 : vector<1x9xf32> to vector<192x9xf32>
    %58 = arith.addf %56, %57 : vector<192x9xf32>
    %cst_38 = arith.constant dense<0xFF800000> : vector<192xf32>
    %59 = vector.multi_reduction <maximumf>, %58, %cst_38 [1] : vector<192x9xf32> to vector<192xf32>
    %60 = vector.shape_cast %59 : vector<192xf32> to vector<192x1xf32>
    %61 = vector.broadcast %60 : vector<192x1xf32> to vector<192x9xf32>
    %62 = arith.subf %58, %61 : vector<192x9xf32>
    %63 = math.exp %62 : vector<192x9xf32>
    %64 = arith.truncf %63 : vector<192x9xf32> to vector<192x9xbf16>
    %cst_39 = arith.constant dense<0.000000e+00> : vector<192x288xf32>
    %65 = tpu.matmul %64, %49, %cst_39 {dimension_numbers = #tpu.dot_dimension_numbers<[1], [0], [0], [1], [0, 0, 1, 1], [], []>} : vector<192x9xbf16>, vector<9x288xbf16>, vector<192x288xf32> -> vector<192x288xf32>
    %66 = arith.mulf %65, %25 : vector<192x288xf32>
    %67 = arith.truncf %66 : vector<192x288xf32> to vector<192x288xbf16>
    %cst_40 = arith.constant dense<0.000000e+00> : vector<192x96xf32>
    %68 = tpu.matmul %67, %50, %cst_40 {dimension_numbers = #tpu.dot_dimension_numbers<[1], [0], [0], [1], [0, 0, 1, 1], [], []>} : vector<192x288xbf16>, vector<288x96xbf16>, vector<192x96xf32> -> vector<192x96xf32>
    %cst_41 = arith.constant dense<0.000000e+00> : vector<192x96xf32>
    %69 = tpu.matmul %64, %51, %cst_41 {dimension_numbers = #tpu.dot_dimension_numbers<[1], [0], [0], [1], [0, 0, 1, 1], [], []>} : vector<192x9xbf16>, vector<9x96xbf16>, vector<192x96xf32> -> vector<192x96xf32>
    %cst_42 = arith.constant 9.99999991E-38 : f32
    %70 = vector.broadcast %cst_42 : f32 to vector<192x96xf32>
    %71 = arith.maximumf %69, %70 : vector<192x96xf32>
    %72 = tpu.reciprocal %71 {approx = true} : vector<192x96xf32> -> vector<192x96xf32>
    %73 = arith.mulf %68, %72 : vector<192x96xf32>
    %74 = arith.truncf %73 : vector<192x96xf32> to vector<192x96xbf16>
    %c0_43 = arith.constant 0 : index
    %c0_44 = arith.constant 0 : index
    %c0_45 = arith.constant 0 : index
    %75 = vector.load %arg13[%c0_43, %c0_44, %c0_45] : memref<1x96x96xbf16, #tpu.memory_space<vmem>>, vector<1x96x96xbf16>
    %76 = vector.shape_cast %75 : vector<1x96x96xbf16> to vector<96x96xbf16>
    %cst_46 = arith.constant dense<0.000000e+00> : vector<192x96xf32>
    %77 = tpu.matmul %74, %76, %cst_46 {dimension_numbers = #tpu.dot_dimension_numbers<[1], [0], [0], [1], [0, 0, 1, 1], [], []>} : vector<192x96xbf16>, vector<96x96xbf16>, vector<192x96xf32> -> vector<192x96xf32>
    %78 = arith.addf %53, %77 : vector<192x96xf32>
    %c0_47 = arith.constant 0 : index
    %c0_48 = arith.constant 0 : index
    %79 = vector.load %arg14[%c0_47, %c0_48] : memref<1x96xf32, #tpu.memory_space<vmem>>, vector<1x96xf32>
    %80 = vector.broadcast %79 : vector<1x96xf32> to vector<192x96xf32>
    %81 = arith.addf %78, %80 : vector<192x96xf32>
    %cst_49 = arith.constant 0.000000e+00 : f32
    %82 = vector.broadcast %cst_49 : f32 to vector<192x96xf32>
    %83 = arith.cmpf ogt, %81, %82 : vector<192x96xf32>
    %cst_50 = arith.constant 0.00999999977 : f32
    %84 = vector.broadcast %cst_50 : f32 to vector<192x96xf32>
    %85 = arith.mulf %84, %81 : vector<192x96xf32>
    %86 = arith.select %83, %81, %85 : vector<192x96xi1>, vector<192x96xf32>
    %87 = arith.truncf %86 : vector<192x96xf32> to vector<192x96xbf16>
    %c0_51 = arith.constant 0 : index
    %c0_52 = arith.constant 0 : index
    %88 = vector.load %arg15[%c0_51, %c0_52] : memref<96x3xbf16, #tpu.memory_space<vmem>>, vector<96x3xbf16>
    %cst_53 = arith.constant dense<0.000000e+00> : vector<192x3xf32>
    %89 = tpu.matmul %87, %88, %cst_53 {dimension_numbers = #tpu.dot_dimension_numbers<[1], [0], [0], [1], [0, 0, 1, 1], [], []>} : vector<192x96xbf16>, vector<96x3xbf16>, vector<192x3xf32> -> vector<192x3xf32>
    %c0_54 = arith.constant 0 : index
    %c0_55 = arith.constant 0 : index
    %90 = vector.load %arg16[%c0_54, %c0_55] : memref<1x3xf32, #tpu.memory_space<vmem>>, vector<1x3xf32>
    %91 = vector.broadcast %90 : vector<1x3xf32> to vector<192x3xf32>
    %92 = arith.addf %89, %91 : vector<192x3xf32>
    %c0_56 = arith.constant 0 : index
    %c0_57 = arith.constant 0 : index
    %93 = vector.load %arg17[%c0_56, %c0_57] : memref<192x3xf32, #tpu.memory_space<vmem>>, vector<192x3xf32>
    tpu.vector_store %arg17[%c0_56, %c0_57], %92 {strides = array<i32>} : memref<192x3xf32, #tpu.memory_space<vmem>>, vector<192x3xf32>,
    return
  }
  func.func @transform_0(%arg0: i32) -> (i32, i32) {
    %c0_i32 = arith.constant 0 : i32
    %c0_i32_0 = arith.constant 0 : i32
    return %arg0, %c0_i32 : i32, i32
  }
  func.func @transform_1(%arg0: i32) -> (i32, i32) {
    %c0_i32 = arith.constant 0 : i32
    %c0_i32_0 = arith.constant 0 : i32
    %c0_i32_1 = arith.constant 0 : i32
    return %c0_i32, %c0_i32_0 : i32, i32
  }
  func.func @transform_2(%arg0: i32) -> (i32, i32) {
    %c0_i32 = arith.constant 0 : i32
    %c0_i32_0 = arith.constant 0 : i32
    %c0_i32_1 = arith.constant 0 : i32
    return %c0_i32, %c0_i32_0 : i32, i32
  }
  func.func @transform_3(%arg0: i32) -> (i32, i32) {
    %c0_i32 = arith.constant 0 : i32
    %c0_i32_0 = arith.constant 0 : i32
    %c0_i32_1 = arith.constant 0 : i32
    return %c0_i32, %c0_i32_0 : i32, i32
  }
  func.func @transform_4(%arg0: i32) -> (i32, i32) {
    %c0_i32 = arith.constant 0 : i32
    %c0_i32_0 = arith.constant 0 : i32
    %c0_i32_1 = arith.constant 0 : i32
    return %c0_i32, %c0_i32_0 : i32, i32
  }
  func.func @transform_5(%arg0: i32) -> (i32, i32) {
    %c0_i32 = arith.constant 0 : i32
    %c0_i32_0 = arith.constant 0 : i32
    %c0_i32_1 = arith.constant 0 : i32
    return %c0_i32, %c0_i32_0 : i32, i32
  }
  func.func @transform_6(%arg0: i32) -> (i32, i32) {
    %c0_i32 = arith.constant 0 : i32
    %c0_i32_0 = arith.constant 0 : i32
    %c0_i32_1 = arith.constant 0 : i32
    return %c0_i32, %c0_i32_0 : i32, i32
  }
  func.func @transform_7(%arg0: i32) -> (i32, i32) {
    %c0_i32 = arith.constant 0 : i32
    %c0_i32_0 = arith.constant 0 : i32
    %c0_i32_1 = arith.constant 0 : i32
    return %c0_i32, %c0_i32_0 : i32, i32
  }
  func.func @transform_8(%arg0: i32) -> (i32, i32) {
    %c0_i32 = arith.constant 0 : i32
    %c0_i32_0 = arith.constant 0 : i32
    %c0_i32_1 = arith.constant 0 : i32
    return %c0_i32, %c0_i32_0 : i32, i32
  }
  func.func @transform_9(%arg0: i32) -> (i32, i32) {
    %c0_i32 = arith.constant 0 : i32
    %c0_i32_0 = arith.constant 0 : i32
    %c0_i32_1 = arith.constant 0 : i32
    return %c0_i32, %c0_i32_0 : i32, i32
  }
  func.func @transform_10(%arg0: i32) -> (i32, i32) {
    %c0_i32 = arith.constant 0 : i32
    %c0_i32_0 = arith.constant 0 : i32
    %c0_i32_1 = arith.constant 0 : i32
    return %c0_i32, %c0_i32_0 : i32, i32
  }
  func.func @transform_11(%arg0: i32) -> (i32, i32) {
    %c0_i32 = arith.constant 0 : i32
    %c0_i32_0 = arith.constant 0 : i32
    %c0_i32_1 = arith.constant 0 : i32
    return %c0_i32, %c0_i32_0 : i32, i32
  }
  func.func @transform_12(%arg0: i32) -> (i32, i32, i32) {
    %c0_i32 = arith.constant 0 : i32
    %c0_i32_0 = arith.constant 0 : i32
    %c0_i32_1 = arith.constant 0 : i32
    %c0_i32_2 = arith.constant 0 : i32
    return %c0_i32, %c0_i32_0, %c0_i32_1 : i32, i32, i32
  }
  func.func @transform_13(%arg0: i32) -> (i32, i32) {
    %c0_i32 = arith.constant 0 : i32
    %c0_i32_0 = arith.constant 0 : i32
    %c0_i32_1 = arith.constant 0 : i32
    return %c0_i32, %c0_i32_0 : i32, i32
  }
  func.func @transform_14(%arg0: i32) -> (i32, i32) {
    %c0_i32 = arith.constant 0 : i32
    %c0_i32_0 = arith.constant 0 : i32
    %c0_i32_1 = arith.constant 0 : i32
    return %c0_i32, %c0_i32_0 : i32, i32
  }
  func.func @transform_15(%arg0: i32) -> (i32, i32) {
    %c0_i32 = arith.constant 0 : i32
    %c0_i32_0 = arith.constant 0 : i32
    %c0_i32_1 = arith.constant 0 : i32
    return %c0_i32, %c0_i32_0 : i32, i32
  }
  func.func @transform_16(%arg0: i32) -> (i32, i32) {
    %c0_i32 = arith.constant 0 : i32
    %c0_i32_0 = arith.constant 0 : i32
    return %arg0, %c0_i32 : i32, i32
  }
}

</mosaic_0001>

<bundles_post_ra>
// kernel: tpu_custom_call.1
= control target key start
LH: loop header
LB: loop body
LE: loop exit
PB: predicated region body
PF: predicated region fallthrough
CT: control target
= control target key end

     0   :  { %s8793_s0 = inlined_call_operand.vmem [shape: bf16[384,24], index: 0, kind: input, shape index: {}]   ;;  %s8794_s1 = inlined_call_operand.hbm [shape: bf16[24,96], index: 1, kind: input, shape index: {}]   ;;  %s8795_s2 = inlined_call_operand.hbm [shape: f32[1,96], index: 2, kind: input, shape index: {}]   ;;  %s8796_s3 = inlined_call_operand.vmem [shape: bf16[96,288], index: 3, kind: input, shape index: {}]   ;;  %s8797_s4 = inlined_call_operand.vmem [shape: bf16[96,288], index: 4, kind: input, shape index: {}]   ;;  %s8798_s5 = inlined_call_operand.vmem [shape: bf16[96,288], index: 5, kind: input, shape index: {}]   ;;  %s8799_s6 = inlined_call_operand.vmem [shape: f32[1,288], index: 6, kind: input, shape index: {}]   ;;  %s8800_s7 = inlined_call_operand.vmem [shape: bf16[288,9], index: 7, kind: input, shape index: {}]   ;;  %s8801_s8 = inlined_call_operand.hbm [shape: bf16[9,288], index: 8, kind: input, shape index: {}]   ;;  %s8802_s9 = inlined_call_operand.hbm [shape: bf16[288,96], index: 9, kind: input, shape index: {}]   ;;  %s8803_s10 = inlined_call_operand.hbm [shape: bf16[9,96], index: 10, kind: input, shape index: {}]   ;;  %s8804_s11 = inlined_call_operand.vmem [shape: bf16[96,96], index: 11, kind: input, shape index: {}]   ;;  %s8805_s12 = inlined_call_operand.hbm [shape: bf16[1,96,96], index: 12, kind: input, shape index: {}]   ;;  %s8806_s13 = inlined_call_operand.vmem [shape: f32[1,96], index: 13, kind: input, shape index: {}]   ;;  %s8807_s14 = inlined_call_operand.vmem [shape: bf16[96,3], index: 14, kind: input, shape index: {}]   ;;  %s8808_s15 = inlined_call_operand.vmem [shape: f32[1,3], index: 15, kind: input, shape index: {}]   ;;  %s8809_s16 = inlined_call_operand.vmem [shape: f32[384,3], index: 16, kind: output, shape index: {}]  }
   0x1   :  { %8833 = sst [smem:[#allocation77_spill]] %s8793_s0 }
   0x2   :  { %8834 = sst [smem:[#allocation78_spill]] %s8794_s1 }
   0x3   :  { %8835 = sst [smem:[#allocation79_spill]] %s8795_s2 }
   0x4   :  { %8836 = sst [smem:[#allocation80_spill]] %s8802_s9 }
   0x5   :  { %8837 = sst [smem:[#allocation81_spill]] %s8806_s13 }
   0x6   :  { %8838 = sst [smem:[#allocation82_spill]] %s8808_s15 }
   0x7   :  { %8839 = sst [smem:[#allocation83_spill]] %s8809_s16 }
   0x8   :  { %21 = vsyncpa [#allocation3], 0 }
   0x9   :  { %22 = vsyncpa [#allocation5], 0 }
   0xa   :  { %23 = vsyncpa [#allocation8], 0 }
   0xb   :  { %24 = vsyncpa [#allocation11], 0  ;;  %s6818_s21 = smov 0  }
   0xc LB: > { %s6720_s22 = smov [#allocation4]   ;;  %s8810_s24 = sadd.s32 4294967295, %s6718_s21   ;;  %s6718_s21 = sphi %s6818_s21, %s30_s21  }
   0xd   : > { %s428_s23 = sshll.u32 %s6720_s22, 4  ;;  %p5149_p0 = scmp.ge.s32.totalorder %s6718_s21, 1  ;;  %s6832_s23 = int_to_ptr.vmem [resolvable:$true] %s428_s23 }
   0xe   : > { %p402_p1 = scmp.lt.s32.totalorder %s6718_s21, 3  ;;  %p6828_p2 = scmp.eq.s32.totalorder %s8810_s24, 0 }
   0xf   : > { %s6721_s27 = smov [#allocation7]   ;;  %s6722_s30 = smov [#allocation2]  }
  0x10   : > { %s8840_s25 = scalar_select %p6828_p2, 1, 0 }
  0x11   : > { %p6834_p3 = pnand %p5149_p0, %p402_p1  ;;  %s466_s28 = sshll.u32 %s6721_s27, 4  ;;  %s6840_s28 = int_to_ptr.vmem [resolvable:$true] %s466_s28 }
  0x12   : > { %s414_s0 = sshll.u32 %s6722_s30, 4  ;;  %s6723_s17 = smov [#allocation6]   ;;  %s6848_s0 = int_to_ptr.vmem [resolvable:$true] %s414_s0 }
  0x13   : > { %s8841_s26 = scalar_select %p6834_p3, 1, 0 }
  0x14   : > { %p6235_p4 = pneg %p6834_p3  ;;  %s6850_s18 = sshll.u32 %s6723_s17, 4  ;;  %s454_s18 = int_to_ptr.vmem [resolvable:$true] %s6850_s18 }
  0x15   : > { %s8843_s2 = sld [smem:[#allocation79_spill]] }
  0x16   : > { %p6844_p5 = pnand %p6828_p2, %p6235_p4 }
  0x18   : > { %p6860_p7 = pneg %p6844_p5 }
  0x1b   : > { %s6528_s22 = scalar_lea.hbm %s8843_s2, 16 }
  0x1c   : > { %p6529_p6 = scmp.ne.s32.totalorder %s8843_s2, %s6528_s22  ;;  %p6535_p10 = scmp.lt.u32.totalorder %s6528_s22, %s8843_s2 }
  0x1e   : > { %p6531_p8 = pnand %p6860_p7, %p6529_p6 }
  0x20   : > { %p6532_p9 = pneg %p6531_p8 }
  0x22   : > { %p6537_p11 = pnand %p6535_p10, %p6532_p9 }
  0x24   : > { %6540 = shalt.err (!%p6537_p11)
}
  0x25   : > { %s6541_s24 = scalar_lea.vmem %s6832_s23, 16  ;;  %s6548_s19 = scalar_lea.vmem %s6832_s23, 32 }
  0x26   : > { %p6542_p12 = scmp.ne.s32.totalorder %s6832_s23, %s6541_s24  ;;  %p6549_p1 = scmp.lt.s32.totalorder %s6832_s23, %s6832_s23 }
  0x27   : > { %p6550_p4 = scmp.lt.s32.totalorder %s6548_s19, %s6541_s24 }
  0x28   : > { %p6544_p13 = pnand %p6542_p12, %p6860_p7 }
  0x29   : > { %p6551_p6 = por %p6550_p4, %p6549_p1 }
  0x2a   : > { %p6545_p0 = pneg %p6544_p13 }
  0x2c   : > { %p6552_p8 = pnand %p6551_p6, %p6545_p0 }
  0x2e   : > { %6555 = shalt.err (!%p6552_p8)
}
  0x2f   : > { %6241 = dma.hbm_to_vmem [thread:$0]  (!%p6844_p5), %s8843_s2, 16, %s6832_s23, [#allocation5]  }
  0x30   : > { %s8845_s9 = sld [smem:[#allocation80_spill]] }
  0x36   : > { %s6556_s17 = scalar_lea.hbm %s8845_s9, 2304 }
  0x37   : > { %p6557_p9 = scmp.ne.s32.totalorder %s8845_s9, %s6556_s17  ;;  %p6563_p12 = scmp.lt.u32.totalorder %s6556_s17, %s8845_s9 }
  0x39   : > { %p6559_p10 = pnand %p6557_p9, %p6860_p7 }
  0x3b   : > { %p6560_p11 = pneg %p6559_p10 }
  0x3d   : > { %p6565_p13 = pnand %p6563_p12, %p6560_p11 }
  0x3f   : > { %6568 = shalt.err (!%p6565_p13)
}
  0x40   : > { %s6569_s23 = scalar_lea.vmem %s6840_s28, 2304  ;;  %p6577_p6 = scmp.lt.s32.totalorder %s6840_s28, %s6840_s28 }
  0x41   : > { %p6570_p0 = scmp.ne.s32.totalorder %s6840_s28, %s6569_s23  ;;  %p6578_p8 = scmp.lt.s32.totalorder %s6569_s23, %s6569_s23 }
  0x43   : > { %p6572_p1 = pnand %p6570_p0, %p6860_p7  ;;  %p6579_p9 = por %p6578_p8, %p6577_p6 }
  0x45   : > { %p6573_p4 = pneg %p6572_p1 }
  0x47   : > { %p6580_p10 = pnand %p6579_p9, %p6573_p4 }
  0x49   : > { %6583 = shalt.err (!%p6580_p10)
}
  0x4a   : > { %s8814_s13 = smov 64   ;;  %s8816_s15 = smov 4  }
  0x4b   : > { %6247 = dma.hbm_to_vmem [thread:$0]  (!%p6844_p5), %s8845_s9, 2304, %s6840_s28, [#allocation8], %s8814_s13, %s8814_s13, %s8816_s15  }
  0x4c   : > { %s8846_s1 = sld [smem:[#allocation78_spill]] }
  0x52   : > { %s6584_s17 = scalar_lea.hbm %s8846_s1, 192 }
  0x53   : > { %p6585_p11 = scmp.ne.s32.totalorder %s8846_s1, %s6584_s17  ;;  %p6591_p0 = scmp.lt.u32.totalorder %s6584_s17, %s8846_s1 }
  0x55   : > { %p6587_p12 = pnand %p6585_p11, %p6860_p7 }
  0x57   : > { %p6588_p13 = pneg %p6587_p12 }
  0x59   : > { %p6593_p1 = pnand %p6591_p0, %p6588_p13 }
  0x5b   : > { %6596 = shalt.err (!%p6593_p1)
}
  0x5c   : > { %s6597_s28 = scalar_lea.vmem %s6848_s0, 192  ;;  %p6605_p9 = scmp.lt.s32.totalorder %s6848_s0, %s6848_s0 }
  0x5d   : > { %p6598_p4 = scmp.ne.s32.totalorder %s6848_s0, %s6597_s28  ;;  %p6606_p10 = scmp.lt.s32.totalorder %s6597_s28, %s6597_s28 }
  0x5f   : > { %p6600_p6 = pnand %p6598_p4, %p6860_p7  ;;  %p6607_p11 = por %p6606_p10, %p6605_p9 }
  0x61   : > { %p6601_p8 = pneg %p6600_p6 }
  0x63   : > { %p6608_p12 = pnand %p6607_p11, %p6601_p8 }
  0x65   : > { %6611 = shalt.err (!%p6608_p12)
}
  0x66   : > { %6238 = dma.hbm_to_vmem [thread:$0]  (!%p6844_p5), %s8846_s1, 192, %s6848_s0, [#allocation3], %s8814_s13, %s8814_s13, %s8816_s15  }
  0x67   : > { %s6612_s30 = scalar_lea.hbm %s8801_s8, 384 }
  0x68   : > { %p6613_p13 = scmp.ne.s32.totalorder %s8801_s8, %s6612_s30  ;;  %p6619_p4 = scmp.lt.u32.totalorder %s6612_s30, %s8801_s8 }
  0x6a   : > { %p6615_p0 = pnand %p6613_p13, %p6860_p7 }
  0x6c   : > { %p6616_p1 = pneg %p6615_p0 }
  0x6e   : > { %p6621_p6 = pnand %p6619_p4, %p6616_p1 }
  0x70   : > { %6624 = shalt.err (!%p6621_p6)
}
  0x71   : > { %s6625_s28 = scalar_lea.vmem %s454_s18, 384  ;;  %p6633_p11 = scmp.lt.s32.totalorder %s454_s18, %s454_s18 }
  0x72   : > { %p6626_p8 = scmp.ne.s32.totalorder %s454_s18, %s6625_s28  ;;  %p6634_p12 = scmp.lt.s32.totalorder %s6625_s28, %s6625_s28 }
  0x74   : > { %p6628_p9 = pnand %p6626_p8, %p6860_p7  ;;  %p6635_p2 = por %p6634_p12, %p6633_p11 }
  0x76   : > { %p6629_p10 = pneg %p6628_p9 }
  0x78   : > { %p6636_p3 = pnand %p6635_p2, %p6629_p10 }
  0x7a   : > { %6639 = shalt.err (!%p6636_p3)
}
  0x7b   : > { %s6726_s0 = smov 192   ;;  %s6727_s2 = smov 12  }
  0x7c   : > { %6244 = dma.hbm_to_vmem [thread:$0]  (!%p6844_p5), %s8801_s8, 384, %s454_s18, [#allocation5], %s6726_s0, %s6726_s0, %s6727_s2  }
  0x7d   : > { %s6728_s27 = smov [#allocation9]   ;;  %s6729_s17 = smov [#allocation10]  }
  0x7e   : > { %s479_s30 = sshll.u32 %s6728_s27, 4  ;;  %s495_s24 = sshll.u32 %s6729_s17, 4  ;;  %s480_s30 = int_to_ptr.vmem [resolvable:$true] %s479_s30  ;;  %s496_s24 = int_to_ptr.vmem [resolvable:$true] %s495_s24 }
  0x7f   : > { %s6640_s28 = scalar_lea.hbm %s8803_s10, 128 }
  0x80   : > { %p6641_p2 = scmp.ne.s32.totalorder %s8803_s10, %s6640_s28  ;;  %p6647_p0 = scmp.lt.u32.totalorder %s6640_s28, %s8803_s10 }
  0x82   : > { %p6643_p3 = pnand %p6641_p2, %p6860_p7 }
  0x84   : > { %p6644_p13 = pneg %p6643_p3 }
  0x86   : > { %p6649_p1 = pnand %p6647_p0, %p6644_p13 }
  0x88   : > { %6652 = shalt.err (!%p6649_p1)
}
  0x89   : > { %s6653_s18 = scalar_lea.vmem %s480_s30, 128  ;;  %p6661_p9 = scmp.lt.s32.totalorder %s480_s30, %s480_s30 }
  0x8a   : > { %p6654_p4 = scmp.ne.s32.totalorder %s480_s30, %s6653_s18  ;;  %p6662_p10 = scmp.lt.s32.totalorder %s6653_s18, %s6653_s18 }
  0x8c   : > { %p6656_p6 = pnand %p6654_p4, %p6860_p7  ;;  %p6663_p11 = por %p6662_p10, %p6661_p9 }
  0x8e   : > { %p6657_p8 = pneg %p6656_p6 }
  0x90   : > { %p6664_p12 = pnand %p6663_p11, %p6657_p8 }
  0x92   : > { %6667 = shalt.err (!%p6664_p12)
}
  0x93   : > { %s8847_s13 = smov 4   ;;  %s8848_s15 = smov 64  }
  0x94   : > { %6250 = dma.hbm_to_vmem [thread:$0]  (!%p6844_p5), %s8803_s10, 128, %s480_s30, [#allocation8], %s8848_s15, %s8848_s15, %s8847_s13  }
  0x95   : > { %s6668_s20 = scalar_lea.hbm %s8805_s12, 768 }
  0x96   : > { %p6669_p2 = scmp.ne.s32.totalorder %s8805_s12, %s6668_s20  ;;  %p6675_p0 = scmp.lt.u32.totalorder %s6668_s20, %s8805_s12 }
  0x98   : > { %p6671_p3 = pnand %p6669_p2, %p6860_p7 }
  0x9a   : > { %p6672_p13 = pneg %p6671_p3 }
  0x9c   : > { %p6677_p1 = pnand %p6675_p0, %p6672_p13 }
  0x9e   : > { %6680 = shalt.err (!%p6677_p1)
}
  0x9f   : > { %s6681_s23 = scalar_lea.vmem %s496_s24, 768  ;;  %p6689_p9 = scmp.lt.s32.totalorder %s496_s24, %s496_s24 }
  0xa0   : > { %p6682_p4 = scmp.ne.s32.totalorder %s496_s24, %s6681_s23  ;;  %p6690_p10 = scmp.lt.s32.totalorder %s6681_s23, %s6681_s23 }
  0xa2   : > { %p6684_p6 = pnand %p6682_p4, %p6860_p7  ;;  %p6691_p11 = por %p6690_p10, %p6689_p9 }
  0xa4   : > { %p6685_p8 = pneg %p6684_p6 }
  0xa6   : > { %p6692_p12 = pnand %p6691_p11, %p6685_p8 }
  0xa8   : > { %6695 = shalt.err (!%p6692_p12)
}
  0xa9   : > { %6253 = dma.hbm_to_vmem [thread:$0]  (!%p6844_p5), %s8805_s12, 768, %s496_s24, [#allocation11], %s8848_s15, %s8848_s15, %s8847_s13  }
  0xaa   : > { %p8849_p2 = scmp.ne.s32.totalorder %s8841_s26, 0 }
  0xac   : > { %529 = sbr.rel (%p8849_p2) target bundleno = 2149 (0x865), region = 84 }
  0xb3   : > { %p8850_p7 = scmp.ne.s32.totalorder %s8840_s25, 0 }
  0xb5   : > { %6701 = dma.done.wait (%p8850_p7), [#allocation3], 192  }
  0xb6   : > { %6703 = vsyncadd (%p8850_p7), [#allocation3], 4294967104 }
  0xb7   : > { %6705 = dma.done.wait (%p8850_p7), [#allocation5], 400  }
  0xb8   : > { %6707 = vsyncadd (%p8850_p7), [#allocation5], 4294966896 }
  0xb9   : > { %6709 = dma.done.wait (%p8850_p7), [#allocation8], 2432  }
  0xba   : > { %6711 = vsyncadd (%p8850_p7), [#allocation8], 4294964864 }
  0xbb   : > { %6713 = dma.done.wait (%p8850_p7), [#allocation11], 768  }
  0xbc   : > { %6715 = vsyncadd (%p8850_p7), [#allocation11], 4294966528  ;;  %s8851_s16 = sadd.s32 4294967295, %s6718_s21   ;;  %vm752_vm0 = vcmask 1043456   ;;  %v6287_v0 = vld [vmem:[#allocation2] sm:$0xff]   ;;  %s8852_s13 = sld [smem:[#allocation77_spill]] }
  0xbd   : > { %s599_s26 = smul.u32 24, %s8851_s16  ;;  %vm715_vm1 = vcmask 195584   ;;  %v6288_v1 = vld [vmem:[#allocation2 + $0x8] ss:$0 sps:$4 sm:$0xff]   ;;  %5829 = vmatprep.subr.bf16.mxu0 %v6287_v0  ;;  %6181 = vmatprep.subr.bf16.mxu1 %v6287_v0  ;;  %v6301_v13 = vld [vmem:[%s8796_s3] ss:$12 sps:$4 sm:$0xff]  }
  0xbe   : > { %5830 = vmatpush3.bf16.msra.mxu0 %v6287_v0  ;;  %6183 = vmatpush3.bf16.msra.mxu1 %v6287_v0  ;;  %v754_v3 = vsel %vm752_vm0, %v6288_v1, 0  ;;  %v6303_v14 = vld [vmem:[%s8796_s3 + $0x4] ss:$12 sps:$4 sm:$0xff]   ;;  %v6304_v15 = vld [vmem:[%s8796_s3 + $0x8] ss:$12 sps:$4 sm:$0xff]   ;;  %v8818_v33 = vmov 0  }
  0xbf   : > { %p600_p5 = scmp.lt.s32.totalorder %s599_s26, 47  ;;  %6209 = vmatprep.subr.msk.bf16.mxu0 %vm752_vm0, %v6288_v1  ;;  %6210 = vmatprep.subr.msk.bf16.mxu1 %vm752_vm0, %v6288_v1  ;;  %v6305_v16 = vld [vmem:[%s8796_s3 + $0x18] ss:$12 sps:$4 sm:$0xff]   ;;  %v6307_v17 = vld [vmem:[%s8796_s3 + $0x1c] ss:$12 sps:$4 sm:$0xff]   ;;  %vm1089_vm4 = vcmask 785408  }
  0xc0   : > { %v6308_v18 = vld [vmem:[%s8796_s3 + $0x20] ss:$12 sps:$4 sm:$0xff]   ;;  %v6309_v22 = vld [vmem:[%s8796_s3 + $0x30] ss:$12 sps:$4 sm:$0xff]   ;;  %v6312_v23 = vld [vmem:[%s8796_s3 + $0x38] ss:$12 sps:$4 sm:$0xff]  }
  0xc1   : > { %s8985_s26 = smov (!%p600_p5, %s599_s26), 47  ;;  %v6311_v19 = vld [vmem:[%s8796_s3 + $0x34] ss:$12 sps:$4 sm:$0xff]   ;;  %v6315_v24 = vld [vmem:[%s8796_s3 + $0x4c] ss:$12 sps:$4 sm:$0xff]   ;;  %s8981_s9 = sld [smem:[#allocation81_spill]] }
  0xc2   : > { %s5164_s29 = sshll.u32 %s8985_s26, 2  ;;  %5832 = vmatpush3.bf16.msra.mxu0 %v754_v3  ;;  %6184 = vmatpush3.bf16.msra.mxu1 %v754_v3  ;;  %v6316_v25 = vld [vmem:[%s8796_s3 + $0x50] ss:$12 sps:$4 sm:$0xff]   ;;  %v6313_v26 = vld [vmem:[%s8796_s3 + $0x48] ss:$12 sps:$4 sm:$0xff]   ;;  %s5165_s0 = sshll.u32 %s8985_s26, 3 }
  0xc3   : > { %s7021_s15 = scalar_lea.vmem %s8852_s13, %s5164_s29  ;;  %1126 = vmatprep.subr.bf16.mxu1 %v6303_v14  ;;  %5857 = vmatprep.subr.bf16.mxu0 %v6304_v15  ;;  %v6319_v27 = vld [vmem:[%s8796_s3 + $0x64] ss:$12 sps:$4 sm:$0xff]   ;;  %v6317_v28 = vld [vmem:[%s8796_s3 + $0x60] ss:$12 sps:$4 sm:$0xff]   ;;  %v6320_v29 = vld [vmem:[%s8796_s3 + $0x68] ss:$12 sps:$4 sm:$0xff]  }
  0xc4   : > { %v6289_v2 = vld [vmem:[%s7021_s15] sm:$0xff]   ;;  %v6290_v4 = vld [vmem:[%s7021_s15 + $0x8] sm:$0xff]   ;;  %v6291_v5 = vld [vmem:[%s7021_s15 + $0x10] sm:$0xff]   ;;  %s8982_s20 = sld [smem:[#allocation82_spill]]  ;;  %s8983_s17 = sld [smem:[#allocation83_spill]] }
  0xc5   : > { %5833 = vmatprep.mubr.msk.bf16.mxu0 %vm715_vm1, %v6289_v2  ;;  %v6295_v6 = vld [vmem:[%s7021_s15 + $0x30] sm:$0xff]   ;;  %v6296_v7 = vld [vmem:[%s7021_s15 + $0x38] sm:$0xff]   ;;  %v6297_v8 = vld [vmem:[%s7021_s15 + $0x40] sm:$0xff]  }
  0xc6   : > { %5834 = vmatmul.mubr.msk.bf16.vlgmr.msra.gmra.mrb[0].mxu0 %vm715_vm1, %v6290_v4  ;;  %5845 = vmatprep.mubr.msk.bf16.mxu1 %vm715_vm1, %v6295_v6  ;;  %v6292_v9 = vld [vmem:[%s7021_s15 + $0x18] sm:$0xff]   ;;  %v6293_v10 = vld [vmem:[%s7021_s15 + $0x20] sm:$0xff]   ;;  %v6298_v11 = vld [vmem:[%s7021_s15 + $0x48] sm:$0xff]  }
  0xc7   : > { %5837 = vmatprep.mubr.msk.bf16.mxu0 %vm715_vm1, %v6291_v5  ;;  %5846 = vmatmul.mubr.msk.bf16.vlgmr.msra.gmra.mrb[0].mxu1 %vm715_vm1, %v6296_v7  ;;  %v6299_v12 = vld [vmem:[%s7021_s15 + $0x50] sm:$0xff]   ;;  %v6294_v20 = vld [vmem:[%s7021_s15 + $0x28] sm:$0xff]   ;;  %v6300_v21 = vld [vmem:[%s7021_s15 + $0x58] sm:$0xff]  }
  0xc8   : > { %5849 = vmatprep.mubr.msk.bf16.mxu1 %vm715_vm1, %v6297_v8  ;;  %1127 = vmatpush1.bf16.msra.mxu1 %v6301_v13  ;;  %v6323_v30 = vld [vmem:[%s8796_s3 + $0x7c] ss:$12 sps:$4 sm:$0xff]   ;;  %v6321_v31 = vld [vmem:[%s8796_s3 + $0x78] ss:$12 sps:$4 sm:$0xff]   ;;  %v6324_v32 = vld [vmem:[%s8796_s3 + $0x80] ss:$12 sps:$4 sm:$0xff]  }
  0xc9   : > { %5858 = vmatpush3.bf16.msra.mxu0 %v6304_v15  ;;  %1128 = vmatprep.subr.bf16.mxu1 %v6307_v17  ;;  %v6327_v34 = vld [vmem:[%s8797_s4 + $0x4] ss:$12 sps:$4 sm:$0xff]   ;;  %v7111_v35 = vld [vmem:[%s8797_s4 + $0x8] ss:$12 sps:$4 sm:$0xff]   ;;  %v7114_v36 = vld [vmem:[#allocation4] ss:$0 sm:$0xff] }
  0xca   : > { %5859 = vmatprep.subr.bf16.mxu0 %v6308_v18  ;;  %v6325_v0 = vld [vmem:[%s8797_s4] ss:$12 sps:$4 sm:$0xff]   ;;  %v6331_v2 = vld [vmem:[%s8797_s4 + $0x1c] ss:$12 sps:$4 sm:$0xff]   ;;  %s8716_s19 = scalar_lea.vmem %s8983_s17, %s5165_s0 }
  0xcc   : > { %1129 = vmatpush1.bf16.msra.mxu1 %v6305_v16 }
  0xcd   : > { %1130 = vmatprep.subr.bf16.mxu1 %v6311_v19  ;;  %5860 = vmatpush3.bf16.msra.mxu0 %v6308_v18 }
  0xce   : > { %5838 = vmatmul.mubr.msk.bf16.gmra.mrb[4].mxu0 %vm715_vm1, %v6292_v9  ;;  %5861 = vmatprep.subr.bf16.mxu0 %v6312_v23  ;;  %v6335_v9 = vld [vmem:[%s8797_s4 + $0x20] ss:$12 sps:$4 sm:$0xff]  }
  0xcf   : > { %5841 = vmatprep.mubr.msk.bf16.mxu0 %vm715_vm1, %v6293_v10  ;;  %5850 = vmatmul.mubr.msk.bf16.gmra.mrb[4].mxu1 %vm715_vm1, %v6298_v11 }
  0xd0   : > { %5853 = vmatprep.mubr.msk.bf16.mxu1 %vm715_vm1, %v6299_v12  ;;  %1131 = vmatpush1.bf16.msra.mxu1 %v6309_v22 }
  0xd1   : > { %1132 = vmatprep.subr.bf16.mxu1 %v6315_v24  ;;  %5862 = vmatpush3.bf16.msra.mxu0 %v6312_v23 }
  0xd2   : > { %5863 = vmatprep.subr.bf16.mxu0 %v6316_v25 }
  0xd4   : > { %1133 = vmatpush1.bf16.msra.mxu1 %v6313_v26 }
  0xd5   : > { %5864 = vmatpush3.bf16.msra.mxu0 %v6316_v25  ;;  %1134 = vmatprep.subr.bf16.mxu1 %v6319_v27  ;;  %v6334_v27 = vld [vmem:[%s8797_s4 + $0x34] ss:$12 sps:$4 sm:$0xff]  }
  0xd6   : > { %5842 = vmatmul.mubr.msk.bf16.gmra.mrb[8].mxu0 %vm715_vm1, %v6294_v20  ;;  %5865 = vmatprep.subr.bf16.mxu0 %v6320_v29 }
  0xd7   : > { %5854 = vmatmul.mubr.msk.bf16.gmra.mrb[8].mxu1 %vm715_vm1, %v6300_v21  ;;  %v6329_v21 = vld [vmem:[%s8797_s4 + $0x18] ss:$12 sps:$4 sm:$0xff]  }
  0xd8   : > { %1135 = vmatpush1.bf16.msra.mxu1 %v6317_v28  ;;  %1158 = vmatprep.mubr.bf16.mxu1 %v8818_v33 }
  0xd9   : > { %5866 = vmatpush3.bf16.msra.mxu0 %v6320_v29  ;;  %1136 = vmatprep.subr.bf16.mxu1 %v6323_v30 }
  0xda   : > { %5867 = vmatprep.subr.bf16.mxu0 %v6324_v32 }
  0xdc   : > { %1137 = vmatpush1.bf16.msra.mxu1 %v6321_v31 }
  0xdd   : > { %5868 = vmatpush3.bf16.msra.mxu0 %v6324_v32  ;;  %5893 = vmatprep.subr.bf16.mxu1 %v7111_v35  ;;  %v6342_v32 = vld [vmem:[%s8797_s4 + $0x38] ss:$12 sps:$4 sm:$0xff]  }
  0xde   : > { %1528 = vmatprep.subr.bf16.mxu0 %v6327_v34 }
 0x199   : > { %v5835_v37 = vpop.f32.mrb[0].mxu0 }
 0x19a   : > { %v799_v38 = vadd.f32 %v5835_v37, %v7114_v36  ;;  %v790_v39 = vpop.f32.mrb[1].mxu0  ;;  %v5847_v40 = vpop.f32.mrb[0].mxu1 }
 0x19b   : > { %v791_v41 = vadd.f32 %v7114_v36, %v790_v39  ;;  %v5836_v42 = vpop.f32.mrb[2].mxu0  ;;  %v847_v43 = vadd.f32 %v5847_v40, %v7114_v36  ;;  %v838_v44 = vpop.f32.mrb[1].mxu1 }
 0x19c   : > { %vm887_vm2 = vcmp.gt.f32.partialorder %v799_v38, 0.0  ;;  %v911_v45 = vmul.f32 0.01, %v799_v38  ;;  %v802_v46 = vadd.f32 %v5836_v42, %v7114_v36  ;;  %v793_v47 = vpop.f32.mrb[3].mxu0  ;;  %v839_v48 = vadd.f32 %v7114_v36, %v838_v44  ;;  %v5848_v49 = vpop.f32.mrb[2].mxu1 }
 0x19d   : > { %vm885_vm3 = vcmp.gt.f32.partialorder %v791_v41, 0.0  ;;  %v909_v50 = vmul.f32 0.01, %v791_v41  ;;  %v794_v51 = vadd.f32 %v7114_v36, %v793_v47  ;;  %v841_v52 = vpop.f32.mrb[3].mxu1  ;;  %vm899_vm6 = vcmp.gt.f32.partialorder %v847_v43, 0.0 }
 0x19e   : > { %vm888_vm5 = vcmp.gt.f32.partialorder %v802_v46, 0.0  ;;  %v912_v53 = vmul.f32 0.01, %v802_v46  ;;  %v923_v54 = vmul.f32 0.01, %v847_v43  ;;  %v935_v55 = vsel %vm887_vm2, %v799_v38, %v911_v45 }
 0x19f   : > { %vm886_vm7 = vcmp.gt.f32.partialorder %v794_v51, 0.0  ;;  %v910_v56 = vmul.f32 0.01, %v794_v51  ;;  %vm897_vm8 = vcmp.gt.f32.partialorder %v839_v48, 0.0  ;;  %v933_v57 = vsel %vm885_vm3, %v791_v41, %v909_v50  ;;  %v6332_v41 = vld [vmem:[%s8797_s4 + $0x30] ss:$12 sps:$4 sm:$0xff]  }
 0x1a0   : > { %v936_v58 = vsel %vm888_vm5, %v802_v46, %v912_v53  ;;  %v921_v59 = vmul.f32 0.01, %v839_v48  ;;  %v850_v60 = vadd.f32 %v5848_v49, %v7114_v36  ;;  %v947_v1 = vsel %vm899_vm6, %v847_v43, %v923_v54  ;;  %v6338_v50 = vld [vmem:[%s8797_s4 + $0x4c] ss:$12 sps:$4 sm:$0xff]  }
 0x1a1   : > { %v7123_v61 = vpack.c.bf16 %v936_v58, %v935_v55  ;;  %v934_v62 = vsel %vm886_vm7, %v794_v51, %v910_v56  ;;  %v5839_v63 = vpop.f32.mrb[4].mxu0  ;;  %v842_v3 = vadd.f32 %v7114_v36, %v841_v52  ;;  %v6346_v51 = vld [vmem:[%s8797_s4 + $0x50] ss:$12 sps:$4 sm:$0xff]  }
 0x1a2   : > { %v7132_v4 = vpack.c.bf16 %v934_v62, %v933_v57  ;;  %v815_v5 = vadd.f32 %v5839_v63, %v7114_v36  ;;  %v806_v6 = vpop.f32.mrb[5].mxu0  ;;  %v945_v7 = vsel %vm897_vm8, %v839_v48, %v921_v59  ;;  %vm900_vm9 = vcmp.gt.f32.partialorder %v850_v60, 0.0  ;;  %v5851_v8 = vpop.f32.mrb[4].mxu1 }
 0x1a3   : > { %8853 = vst [vmem:[#allocation16_spill] sm:$0xff] %v7123_v61  ;;  %v807_v10 = vadd.f32 %v7114_v36, %v806_v6  ;;  %v5840_v11 = vpop.f32.mrb[6].mxu0  ;;  %v924_v12 = vmul.f32 0.01, %v850_v60  ;;  %vm898_vm10 = vcmp.gt.f32.partialorder %v842_v3, 0.0  ;;  %v863_v17 = vadd.f32 %v5851_v8, %v7114_v36  ;;  %v854_v18 = vpop.f32.mrb[5].mxu1 }
 0x1a4   : > { %8854 = vst [vmem:[#allocation17_spill] sm:$0xff] %v7132_v4  ;;  %v922_v13 = vmul.f32 0.01, %v842_v3  ;;  %vm891_vm11 = vcmp.gt.f32.partialorder %v815_v5, 0.0  ;;  %v915_v14 = vmul.f32 0.01, %v815_v5  ;;  %v818_v15 = vadd.f32 %v5840_v11, %v7114_v36  ;;  %5211 = vmatmul.mubr.msk.bf16.vlgmr.msra.gmra.mrb[12].mxu1 %vm1089_vm4, %v7132_v4  ;;  %5869 = vmatprep.mubr.msk.bf16.mxu0 %vm1089_vm4, %v7132_v4 }
 0x1a5   : > { %v809_v16 = vpop.f32.mrb[7].mxu0  ;;  %vm889_vm12 = vcmp.gt.f32.partialorder %v807_v10, 0.0  ;;  %v913_v19 = vmul.f32 0.01, %v807_v10  ;;  %5870 = vmatmul.mubr.msk.bf16.vlgmr.msra.gmra.mrb[12].mxu0 %vm1089_vm4, %v7123_v61  ;;  %5894 = vmatpush3.bf16.msra.mxu1 %v7111_v35  ;;  %v948_v22 = vsel %vm900_vm9, %v850_v60, %v924_v12  ;;  %v5852_v23 = vpop.f32.mrb[6].mxu1  ;;  %vm903_vm15 = vcmp.gt.f32.partialorder %v863_v17, 0.0 }
 0x1a6   : > { %v810_v20 = vadd.f32 %v7114_v36, %v809_v16  ;;  %v939_v24 = vsel %vm891_vm11, %v815_v5, %v915_v14  ;;  %vm892_vm13 = vcmp.gt.f32.partialorder %v818_v15, 0.0  ;;  %v916_v25 = vmul.f32 0.01, %v818_v15  ;;  %1529 = vmatpush1.bf16.msra.mxu0 %v6325_v0  ;;  %1168 = vmatprep.mubr.bf16.mxu1 %v8818_v33  ;;  %v857_v28 = vpop.f32.mrb[7].mxu1  ;;  %v6336_v0 = vld [vmem:[%s8797_s4 + $0x48] ss:$12 sps:$4 sm:$0xff]  }
 0x1a7   : > { %v7155_v26 = vpack.c.bf16 %v948_v22, %v947_v1  ;;  %v937_v29 = vsel %vm889_vm12, %v807_v10, %v913_v19  ;;  %1530 = vmatprep.subr.bf16.mxu0 %v6331_v2  ;;  %v946_v31 = vsel %vm898_vm10, %v842_v3, %v922_v13  ;;  %5895 = vmatprep.subr.bf16.mxu1 %v6335_v9  ;;  %v927_v37 = vmul.f32 0.01, %v863_v17  ;;  %v6347_v11 = vld [vmem:[%s8797_s4 + $0x68] ss:$12 sps:$4 sm:$0xff]   ;;  %v6339_v22 = vld [vmem:[%s8797_s4 + $0x60] ss:$12 sps:$4 sm:$0xff]  }
 0x1a8   : > { %vm890_vm14 = vcmp.gt.f32.partialorder %v810_v20, 0.0  ;;  %v914_v30 = vmul.f32 0.01, %v810_v20  ;;  %v940_v34 = vsel %vm892_vm13, %v818_v15, %v916_v25  ;;  %v7165_v35 = vpack.c.bf16 %v946_v31, %v945_v7  ;;  %v6341_v7 = vld [vmem:[%s8797_s4 + $0x64] ss:$12 sps:$4 sm:$0xff]  }
 0x1a9   : > { %8855 = vst [vmem:[#allocation18_spill] sm:$0xff] %v7155_v26  ;;  %v7167_v38 = vpack.c.bf16 %v940_v34, %v939_v24  ;;  %v5843_v40 = vpop.f32.mrb[8].mxu0  ;;  %v855_v42 = vadd.f32 %v7114_v36, %v854_v18  ;;  %5896 = vmatpush3.bf16.msra.mxu1 %v6335_v9  ;;  %v866_v43 = vadd.f32 %v5852_v23, %v7114_v36  ;;  %v6345_v25 = vld [vmem:[%s8797_s4 + $0x7c] ss:$12 sps:$4 sm:$0xff]   ;;  %vm2767_vm13 = vcmask 261120  }
 0x1aa   : > { %8856 = vst [vmem:[#allocation19_spill] sm:$0xff] %v7165_v35  ;;  %v938_v39 = vsel %vm890_vm14, %v810_v20, %v914_v30  ;;  %v831_v45 = vadd.f32 %v5843_v40, %v7114_v36  ;;  %v822_v46 = vpop.f32.mrb[9].mxu0  ;;  %1531 = vmatpush1.bf16.msra.mxu0 %v6329_v21  ;;  %v951_v47 = vsel %vm903_vm15, %v863_v17, %v927_v37  ;;  %v5855_v49 = vpop.f32.mrb[8].mxu1  ;;  %v6348_v30 = vld [vmem:[%s8797_s4 + $0x80] ss:$12 sps:$4 sm:$0xff]   ;;  %vm3268_vm14 = vcmask 1044480  }
 0x1ab   : > { %8857 = vst [vmem:[#allocation20_spill] sm:$0xff] %v7167_v38  ;;  %v7174_v44 = vpack.c.bf16 %v938_v39, %v937_v29  ;;  %v858_v48 = vadd.f32 %v7114_v36, %v857_v28  ;;  %v823_v52 = vadd.f32 %v7114_v36, %v822_v46  ;;  %v5844_v53 = vpop.f32.mrb[10].mxu0  ;;  %1532 = vmatprep.subr.bf16.mxu0 %v6334_v27  ;;  %vm901_vm1 = vcmp.gt.f32.partialorder %v855_v42, 0.0  ;;  %v870_v55 = vpop.f32.mrb[9].mxu1  ;;  %v6352_v39 = vld [vmem:[%s8798_s5 + $0x8] ss:$12 sps:$4 sm:$0xff]  }
 0x1ac   : > { %v925_v54 = vmul.f32 0.01, %v855_v42  ;;  %vm904_vm2 = vcmp.gt.f32.partialorder %v866_v43, 0.0  ;;  %5897 = vmatprep.subr.bf16.mxu1 %v6342_v32  ;;  %vm895_vm3 = vcmp.gt.f32.partialorder %v831_v45, 0.0  ;;  %v919_v56 = vmul.f32 0.01, %v831_v45  ;;  %5212 = vmatmul.mubr.msk.bf16.gmra.mrb[16].mxu1 %vm1089_vm4, %v7123_v61 }
 0x1ad   : > { %8858 = vst [vmem:[#allocation21_spill] sm:$0xff] %v7174_v44  ;;  %v834_v57 = vadd.f32 %v5844_v53, %v7114_v36  ;;  %v825_v58 = vpop.f32.mrb[11].mxu0  ;;  %5873 = vmatprep.mubr.msk.bf16.mxu0 %vm1089_vm4, %v7174_v44  ;;  %v928_v59 = vmul.f32 0.01, %v866_v43  ;;  %vm893_vm5 = vcmp.gt.f32.partialorder %v823_v52, 0.0  ;;  %1178 = vmatprep.mubr.bf16.mxu1 %v8818_v33  ;;  %v5856_v1 = vpop.f32.mrb[10].mxu1  ;;  %v879_v14 = vadd.f32 %v5855_v49, %v7114_v36 }
 0x1ae   : > { %v917_v60 = vmul.f32 0.01, %v823_v52  ;;  %v826_v62 = vadd.f32 %v7114_v36, %v825_v58  ;;  %5874 = vmatmul.mubr.msk.bf16.gmra.mrb[16].mxu0 %vm1089_vm4, %v7167_v38  ;;  %v949_v63 = vsel %vm901_vm1, %v855_v42, %v925_v54  ;;  %v943_v2 = vsel %vm895_vm3, %v831_v45, %v919_v56  ;;  %v873_v6 = vpop.f32.mrb[11].mxu1  ;;  %5898 = vmatpush3.bf16.msra.mxu1 %v6342_v32  ;;  %v6360_v45 = vld [vmem:[%s8798_s5 + $0x38] ss:$12 sps:$4 sm:$0xff]  }
 0x1af   : > { %vm896_vm6 = vcmp.gt.f32.partialorder %v834_v57, 0.0  ;;  %v920_v3 = vmul.f32 0.01, %v834_v57  ;;  %1533 = vmatpush1.bf16.msra.mxu0 %v6332_v41  ;;  %v952_v5 = vsel %vm904_vm2, %v866_v43, %v928_v59  ;;  %5899 = vmatprep.subr.bf16.mxu1 %v6346_v51  ;;  %vm902_vm8 = vcmp.gt.f32.partialorder %v858_v48, 0.0  ;;  %v6351_v41 = vld [vmem:[%s8798_s5 + $0x4] ss:$12 sps:$4 sm:$0xff]  }
 0x1b0   : > { %v941_v8 = vsel %vm893_vm5, %v823_v52, %v917_v60  ;;  %vm894_vm7 = vcmp.gt.f32.partialorder %v826_v62, 0.0  ;;  %v918_v9 = vmul.f32 0.01, %v826_v62  ;;  %v7203_v10 = vpack.c.bf16 %v952_v5, %v951_v47  ;;  %1534 = vmatprep.subr.bf16.mxu0 %v6338_v50  ;;  %v6356_v43 = vld [vmem:[%s8798_s5 + $0x20] ss:$12 sps:$4 sm:$0xff]   ;;  %v6379_v5 = vld [vmem:[%s8800_s7 + $0x10] sm:$0xff]  }
 0x1b1   : > { %v944_v12 = vsel %vm896_vm6, %v834_v57, %v920_v3  ;;  %v926_v13 = vmul.f32 0.01, %v858_v48  ;;  %v871_v17 = vadd.f32 %v7114_v36, %v870_v55  ;;  %v882_v18 = vadd.f32 %v5856_v1, %v7114_v36  ;;  %v6364_v46 = vld [vmem:[%s8798_s5 + $0x50] ss:$12 sps:$4 sm:$0xff]   ;;  %v6368_v47 = vld [vmem:[%s8798_s5 + $0x68] ss:$12 sps:$4 sm:$0xff]  }
 0x1b2   : > { %8859 = vst [vmem:[#allocation22_spill] sm:$0xff] %v7203_v10  ;;  %v7209_v15 = vpack.c.bf16 %v944_v12, %v943_v2  ;;  %v942_v16 = vsel %vm894_vm7, %v826_v62, %v918_v9  ;;  %vm907_vm9 = vcmp.gt.f32.partialorder %v879_v14, 0.0  ;;  %v931_v21 = vmul.f32 0.01, %v879_v14  ;;  %5900 = vmatpush3.bf16.msra.mxu1 %v6346_v51  ;;  %v6373_v49 = vld [vmem:[%s8800_s7 + $0x40] sm:$0xff]   ;;  %v6390_v1 = vld [vmem:[%s8800_s7 + $0x88] sm:$0xff]  }
 0x1b3   : > { %v7213_v19 = vpack.c.bf16 %v942_v16, %v941_v8  ;;  %v950_v20 = vsel %vm902_vm8, %v858_v48, %v926_v13  ;;  %1535 = vmatpush1.bf16.msra.mxu0 %v6336_v0  ;;  %vm905_vm10 = vcmp.gt.f32.partialorder %v871_v17, 0.0  ;;  %v929_v24 = vmul.f32 0.01, %v871_v17  ;;  %5901 = vmatprep.subr.bf16.mxu1 %v6347_v11  ;;  %v6372_v48 = vld [vmem:[%s8798_s5 + $0x80] ss:$12 sps:$4 sm:$0xff]   ;;  %v6378_v3 = vld [vmem:[%s8800_s7 + $0x50] sm:$0xff]  }
 0x1b4   : > { %8860 = vst [vmem:[#allocation23_spill] sm:$0xff] %v7209_v15  ;;  %v7218_v23 = vpack.c.bf16 %v950_v20, %v949_v63  ;;  %vm908_vm11 = vcmp.gt.f32.partialorder %v882_v18, 0.0  ;;  %1536 = vmatprep.subr.bf16.mxu0 %v6341_v7  ;;  %5213 = vmatmul.mubr.msk.bf16.gmra.mrb[20].mxu1 %vm1089_vm4, %v7174_v44  ;;  %v955_v27 = vsel %vm907_vm9, %v879_v14, %v931_v21  ;;  %v932_v28 = vmul.f32 0.01, %v882_v18  ;;  %v6349_v50 = vld [vmem:[%s8798_s5] ss:$12 sps:$4 sm:$0xff]  }
 0x1b5   : > { %8861 = vst [vmem:[#allocation24_spill] sm:$0xff] %v7213_v19  ;;  %5877 = vmatprep.mubr.msk.bf16.mxu0 %vm1089_vm4, %v7213_v19  ;;  %v874_v29 = vadd.f32 %v7114_v36, %v873_v6  ;;  %1188 = vmatprep.mubr.bf16.mxu1 %v8818_v33  ;;  %v953_v31 = vsel %vm905_vm10, %v871_v17, %v929_v24  ;;  %v6343_v36 = vld [vmem:[%s8797_s4 + $0x78] ss:$12 sps:$4 sm:$0xff]   ;;  %v6355_v51 = vld [vmem:[%s8798_s5 + $0x1c] ss:$12 sps:$4 sm:$0xff]   ;;  %v6386_v13 = vld [vmem:[%s8800_s7 + $0x70] sm:$0xff]  }
 0x1b6   : > { %8862 = vst [vmem:[#allocation25_spill] sm:$0xff] %v7218_v23  ;;  %5878 = vmatmul.mubr.msk.bf16.gmra.mrb[20].mxu0 %vm1089_vm4, %v7209_v15  ;;  %v956_v32 = vsel %vm908_vm11, %v882_v18, %v932_v28  ;;  %5902 = vmatpush3.bf16.msra.mxu1 %v6347_v11  ;;  %v6353_v52 = vld [vmem:[%s8798_s5 + $0x18] ss:$12 sps:$4 sm:$0xff]   ;;  %v6359_v53 = vld [vmem:[%s8798_s5 + $0x34] ss:$12 sps:$4 sm:$0xff]   ;;  %v6376_v0 = vld [vmem:[%s8800_s7 + $0x48] sm:$0xff]  }
 0x1b7   : > { %5881 = vmatprep.mubr.msk.bf16.mxu0 %vm1089_vm4, %v7165_v35  ;;  %vm906_vm12 = vcmp.gt.f32.partialorder %v874_v29, 0.0  ;;  %v930_v34 = vmul.f32 0.01, %v874_v29  ;;  %1537 = vmatpush1.bf16.msra.mxu0 %v6339_v22  ;;  %v7239_v37 = vpack.c.bf16 %v956_v32, %v955_v27  ;;  %v6357_v54 = vld [vmem:[%s8798_s5 + $0x30] ss:$12 sps:$4 sm:$0xff]   ;;  %v6374_v62 = vld [vmem:[%s8800_s7 + $0x80] sm:$0xff]  }
 0x1b8   : > { %1538 = vmatprep.subr.bf16.mxu0 %v6345_v25  ;;  %5903 = vmatprep.subr.bf16.mxu1 %v6348_v30  ;;  %v6363_v55 = vld [vmem:[%s8798_s5 + $0x4c] ss:$12 sps:$4 sm:$0xff]   ;;  %v6361_v56 = vld [vmem:[%s8798_s5 + $0x48] ss:$12 sps:$4 sm:$0xff]   ;;  %v6367_v57 = vld [vmem:[%s8798_s5 + $0x64] ss:$12 sps:$4 sm:$0xff]  }
 0x1b9   : > { %8863 = vst [vmem:[#allocation26_spill] sm:$0xff] %v7239_v37  ;;  %v954_v40 = vsel %vm906_vm12, %v874_v29, %v930_v34  ;;  %v6365_v58 = vld [vmem:[%s8798_s5 + $0x60] ss:$12 sps:$4 sm:$0xff]   ;;  %v6371_v59 = vld [vmem:[%s8798_s5 + $0x7c] ss:$12 sps:$4 sm:$0xff]   ;;  %v6387_v14 = vld [vmem:[%s8800_s7 + $0x30] sm:$0xff]  }
 0x1ba   : > { %v7247_v42 = vpack.c.bf16 %v954_v40, %v953_v31  ;;  %5904 = vmatpush3.bf16.msra.mxu1 %v6348_v30  ;;  %v6369_v60 = vld [vmem:[%s8798_s5 + $0x78] ss:$12 sps:$4 sm:$0xff]   ;;  %v6377_v2 = vld [vmem:[%s8800_s7 + $0x8] sm:$0xff]   ;;  %vm3062_vm15 = vcmask 72704  }
 0x1bb   : > { %1539 = vmatpush1.bf16.msra.mxu0 %v6343_v36  ;;  %1947 = vmatprep.subr.bf16.mxu1 %v6351_v41  ;;  %v6375_v63 = vld [vmem:[%s8800_s7] sm:$0xff]   ;;  %v6380_v6 = vld [vmem:[%s8800_s7 + $0x58] sm:$0xff]   ;;  %v6384_v11 = vld [vmem:[%s8800_s7 + $0x68] sm:$0xff]  }
 0x1bc   : > { %8864 = vst [vmem:[#allocation27_spill] sm:$0xff] %v7247_v42  ;;  %5929 = vmatprep.subr.bf16.mxu0 %v6352_v39  ;;  %5214 = vmatmul.mubr.msk.bf16.gmra.mrb[24].mxu1 %vm1089_vm4, %v7167_v38  ;;  %v6381_v7 = vld [vmem:[%s8800_s7 + $0x18] sm:$0xff]   ;;  %v6382_v8 = vld [vmem:[%s8800_s7 + $0x60] sm:$0xff]   ;;  %v6385_v12 = vld [vmem:[%s8800_s7 + $0x28] sm:$0xff]  }
 0x1bd   : > { %1198 = vmatprep.mubr.bf16.mxu1 %v8818_v33  ;;  %v6383_v9 = vld [vmem:[%s8800_s7 + $0x20] sm:$0xff]   ;;  %v6388_v16 = vld [vmem:[%s8800_s7 + $0x78] sm:$0xff]  }
 0x1be   : > { %5882 = vmatmul.mubr.msk.bf16.gmra.mrb[24].mxu0 %vm1089_vm4, %v7155_v26  ;;  %v6389_v17 = vld [vmem:[%s8800_s7 + $0x38] sm:$0xff]  }
 0x1bf   : > { %5885 = vmatprep.mubr.msk.bf16.mxu0 %vm1089_vm4, %v7218_v23 }
 0x1c4   : > { %5215 = vmatmul.mubr.msk.bf16.gmra.mrb[28].mxu1 %vm1089_vm4, %v7213_v19 }
 0x1c5   : > { %1208 = vmatprep.mubr.bf16.mxu1 %v8818_v33 }
 0x1c6   : > { %5886 = vmatmul.mubr.msk.bf16.gmra.mrb[28].mxu0 %vm1089_vm4, %v7203_v10 }
 0x1c7   : > { %5889 = vmatprep.mubr.msk.bf16.mxu0 %vm1089_vm4, %v7247_v42 }
 0x1cc   : > { %5216 = vmatmul.mubr.msk.bf16.gmra.mrb[32].mxu1 %vm1089_vm4, %v7209_v15 }
 0x1cd   : > { %1218 = vmatprep.mubr.bf16.mxu1 %v8818_v33 }
 0x1ce   : > { %5890 = vmatmul.mubr.msk.bf16.gmra.mrb[32].mxu0 %vm1089_vm4, %v7239_v37 }
 0x1cf   : > { %1560 = vmatprep.mubr.bf16.mxu0 %v8818_v33 }
 0x1d4   : > { %5217 = vmatmul.mubr.msk.bf16.gmra.mrb[36].mxu1 %vm1089_vm4, %v7165_v35 }
 0x1d5   : > { %1228 = vmatprep.mubr.bf16.mxu1 %v8818_v33 }
 0x1d6   : > { %5253 = vmatmul.mubr.msk.bf16.vlgmr.msra.gmra.mrb[36].mxu0 %vm1089_vm4, %v7132_v4 }
 0x1d7   : > { %1570 = vmatprep.mubr.bf16.mxu0 %v8818_v33  ;;  %5930 = vmatpush3.bf16.msra.mxu0 %v6352_v39 }
 0x1d8   : > { %5931 = vmatprep.subr.bf16.mxu0 %v6356_v43 }
 0x1db   : > { %5932 = vmatpush3.bf16.msra.mxu0 %v6356_v43 }
 0x1dc   : > { %5933 = vmatprep.subr.bf16.mxu0 %v6360_v45  ;;  %5218 = vmatmul.mubr.msk.bf16.gmra.mrb[40].mxu1 %vm1089_vm4, %v7155_v26 }
 0x1dd   : > { %1238 = vmatprep.mubr.bf16.mxu1 %v8818_v33 }
 0x1de   : > { %5254 = vmatmul.mubr.msk.bf16.gmra.mrb[40].mxu0 %vm1089_vm4, %v7123_v61 }
 0x1df   : > { %1580 = vmatprep.mubr.bf16.mxu0 %v8818_v33  ;;  %5934 = vmatpush3.bf16.msra.mxu0 %v6360_v45 }
 0x1e0   : > { %5935 = vmatprep.subr.bf16.mxu0 %v6364_v46 }
 0x1e3   : > { %5936 = vmatpush3.bf16.msra.mxu0 %v6364_v46 }
 0x1e4   : > { %5937 = vmatprep.subr.bf16.mxu0 %v6368_v47  ;;  %5219 = vmatmul.mubr.msk.bf16.gmra.mrb[44].mxu1 %vm1089_vm4, %v7218_v23 }
 0x1e5   : > { %1248 = vmatprep.mubr.bf16.mxu1 %v8818_v33 }
 0x1e6   : > { %5255 = vmatmul.mubr.msk.bf16.gmra.mrb[44].mxu0 %vm1089_vm4, %v7174_v44 }
 0x1e7   : > { %1590 = vmatprep.mubr.bf16.mxu0 %v8818_v33  ;;  %5938 = vmatpush3.bf16.msra.mxu0 %v6368_v47 }
 0x1e8   : > { %5939 = vmatprep.subr.bf16.mxu0 %v6372_v48 }
 0x1eb   : > { %5940 = vmatpush3.bf16.msra.mxu0 %v6372_v48 }
 0x1ec   : > { %5220 = vmatmul.mubr.msk.bf16.gmra.mrb[48].mxu1 %vm1089_vm4, %v7203_v10  ;;  %5545 = vmatprep.subr.bf16.mxu0 %v6373_v49 }
 0x1ed   : > { %1258 = vmatprep.mubr.bf16.mxu1 %v8818_v33 }
 0x1ee   : > { %5256 = vmatmul.mubr.msk.bf16.gmra.mrb[48].mxu0 %vm1089_vm4, %v7167_v38 }
 0x1ef   : > { %1600 = vmatprep.mubr.bf16.mxu0 %v8818_v33 }
 0x1f4   : > { %5221 = vmatmul.mubr.msk.bf16.gmra.mrb[52].mxu1 %vm1089_vm4, %v7247_v42 }
 0x1f5   : > { %1268 = vmatprep.mubr.bf16.mxu1 %v8818_v33 }
 0x1f6   : > { %5257 = vmatmul.mubr.msk.bf16.gmra.mrb[52].mxu0 %vm1089_vm4, %v7213_v19 }
 0x1f7   : > { %1610 = vmatprep.mubr.bf16.mxu0 %v8818_v33 }
 0x1fc   : > { %5222 = vmatmul.mubr.msk.bf16.gmra.mrb[56].mxu1 %vm1089_vm4, %v7239_v37 }
 0x1fd   : > { %5905 = vmatprep.mubr.msk.bf16.mxu1 %vm1089_vm4, %v7132_v4 }
 0x1fe   : > { %5258 = vmatmul.mubr.msk.bf16.gmra.mrb[56].mxu0 %vm1089_vm4, %v7209_v15 }
 0x1ff   : > { %1620 = vmatprep.mubr.bf16.mxu0 %v8818_v33 }
 0x204   : > { %5906 = vmatmul.mubr.msk.bf16.vlgmr.msra.gmra.mrb[60].mxu1 %vm1089_vm4, %v7123_v61 }
 0x205   : > { %5909 = vmatprep.mubr.msk.bf16.mxu1 %vm1089_vm4, %v7174_v44  ;;  %1948 = vmatpush1.bf16.msra.mxu1 %v6349_v50 }
 0x206   : > { %5259 = vmatmul.mubr.msk.bf16.gmra.mrb[60].mxu0 %vm1089_vm4, %v7165_v35  ;;  %1949 = vmatprep.subr.bf16.mxu1 %v6355_v51 }
 0x207   : > { %1630 = vmatprep.mubr.bf16.mxu0 %v8818_v33 }
 0x209   : > { %1950 = vmatpush1.bf16.msra.mxu1 %v6353_v52 }
 0x20a   : > { %1951 = vmatprep.subr.bf16.mxu1 %v6359_v53 }
 0x20c   : > { %5910 = vmatmul.mubr.msk.bf16.gmra.mrb[64].mxu1 %vm1089_vm4, %v7167_v38 }
 0x20d   : > { %5913 = vmatprep.mubr.msk.bf16.mxu1 %vm1089_vm4, %v7213_v19  ;;  %1952 = vmatpush1.bf16.msra.mxu1 %v6357_v54 }
 0x20e   : > { %5260 = vmatmul.mubr.msk.bf16.gmra.mrb[64].mxu0 %vm1089_vm4, %v7155_v26  ;;  %1953 = vmatprep.subr.bf16.mxu1 %v6363_v55 }
 0x20f   : > { %1640 = vmatprep.mubr.bf16.mxu0 %v8818_v33 }
 0x211   : > { %1954 = vmatpush1.bf16.msra.mxu1 %v6361_v56 }
 0x212   : > { %1955 = vmatprep.subr.bf16.mxu1 %v6367_v57 }
 0x214   : > { %5914 = vmatmul.mubr.msk.bf16.gmra.mrb[68].mxu1 %vm1089_vm4, %v7209_v15 }
 0x215   : > { %5917 = vmatprep.mubr.msk.bf16.mxu1 %vm1089_vm4, %v7165_v35  ;;  %1956 = vmatpush1.bf16.msra.mxu1 %v6365_v58 }
 0x216   : > { %5261 = vmatmul.mubr.msk.bf16.gmra.mrb[68].mxu0 %vm1089_vm4, %v7218_v23  ;;  %1957 = vmatprep.subr.bf16.mxu1 %v6371_v59 }
 0x217   : > { %1650 = vmatprep.mubr.bf16.mxu0 %v8818_v33 }
 0x219   : > { %1958 = vmatpush1.bf16.msra.mxu1 %v6369_v60 }
 0x21a   : > { %5965 = vmatprep.subr.bf16.mxu1 %v6374_v62 }
 0x21c   : > { %5918 = vmatmul.mubr.msk.bf16.gmra.mrb[72].mxu1 %vm1089_vm4, %v7155_v26 }
 0x21d   : > { %5921 = vmatprep.mubr.msk.bf16.mxu1 %vm1089_vm4, %v7218_v23 }
 0x21e   : > { %5262 = vmatmul.mubr.msk.bf16.gmra.mrb[72].mxu0 %vm1089_vm4, %v7203_v10 }
 0x21f   : > { %1660 = vmatprep.mubr.bf16.mxu0 %v8818_v33 }
 0x224   : > { %5922 = vmatmul.mubr.msk.bf16.gmra.mrb[76].mxu1 %vm1089_vm4, %v7203_v10 }
 0x225   : > { %5925 = vmatprep.mubr.msk.bf16.mxu1 %vm1089_vm4, %v7247_v42 }
 0x226   : > { %5263 = vmatmul.mubr.msk.bf16.gmra.mrb[76].mxu0 %vm1089_vm4, %v7247_v42 }
 0x227   : > { %1670 = vmatprep.mubr.bf16.mxu0 %v8818_v33 }
 0x22c   : > { %5926 = vmatmul.mubr.msk.bf16.gmra.mrb[80].mxu1 %vm1089_vm4, %v7239_v37 }
 0x22d   : > { %1979 = vmatprep.mubr.bf16.mxu1 %v8818_v33 }
 0x22e   : > { %5264 = vmatmul.mubr.msk.bf16.gmra.mrb[80].mxu0 %vm1089_vm4, %v7239_v37 }
 0x22f   : > { %5941 = vmatprep.mubr.msk.bf16.mxu0 %vm1089_vm4, %v7132_v4 }
 0x234   : > { %5295 = vmatmul.mubr.msk.bf16.vlgmr.msra.gmra.mrb[84].mxu1 %vm1089_vm4, %v7132_v4 }
 0x235   : > { %1989 = vmatprep.mubr.bf16.mxu1 %v8818_v33  ;;  %5966 = vmatpush3.bf16.msra.mxu1 %v6374_v62 }
 0x236   : > { %5942 = vmatmul.mubr.msk.bf16.vlgmr.msra.gmra.mrb[84].mxu0 %vm1089_vm4, %v7123_v61  ;;  %5967 = vmatprep.subr.bf16.mxu1 %v6390_v1 }
 0x237   : > { %5945 = vmatprep.mubr.msk.bf16.mxu0 %vm1089_vm4, %v7174_v44  ;;  %5546 = vmatpush3.bf16.msra.mxu0 %v6375_v63 }
 0x238   : > { %5547 = vmatprep.subr.bf16.mxu0 %v6376_v0 }
 0x239   : > { %5968 = vmatpush3.bf16.msra.mxu1 %v6390_v1 }
 0x23b   : > { %5548 = vmatpush3.bf16.msra.mxu0 %v6377_v2 }
 0x23c   : > { %5549 = vmatprep.subr.bf16.mxu0 %v6378_v3  ;;  %5296 = vmatmul.mubr.msk.bf16.gmra.mrb[88].mxu1 %vm1089_vm4, %v7123_v61 }
 0x23d   : > { %1999 = vmatprep.mubr.bf16.mxu1 %v8818_v33 }
 0x23e   : > { %5946 = vmatmul.mubr.msk.bf16.gmra.mrb[88].mxu0 %vm1089_vm4, %v7167_v38 }
 0x23f   : > { %5949 = vmatprep.mubr.msk.bf16.mxu0 %vm1089_vm4, %v7213_v19  ;;  %5550 = vmatpush3.bf16.msra.mxu0 %v6379_v5 }
 0x240   : > { %5551 = vmatprep.subr.bf16.mxu0 %v6380_v6 }
 0x243   : > { %5552 = vmatpush3.bf16.msra.mxu0 %v6381_v7 }
 0x244   : > { %5553 = vmatprep.subr.bf16.mxu0 %v6382_v8  ;;  %5297 = vmatmul.mubr.msk.bf16.gmra.mrb[92].mxu1 %vm1089_vm4, %v7174_v44 }
 0x245   : > { %2009 = vmatprep.mubr.bf16.mxu1 %v8818_v33 }
 0x246   : > { %5950 = vmatmul.mubr.msk.bf16.gmra.mrb[92].mxu0 %vm1089_vm4, %v7209_v15 }
 0x247   : > { %5953 = vmatprep.mubr.msk.bf16.mxu0 %vm1089_vm4, %v7165_v35  ;;  %5554 = vmatpush3.bf16.msra.mxu0 %v6383_v9 }
 0x248   : > { %5555 = vmatprep.subr.bf16.mxu0 %v6384_v11 }
 0x24b   : > { %5556 = vmatpush3.bf16.msra.mxu0 %v6385_v12 }
 0x24c   : > { %5557 = vmatprep.subr.bf16.mxu0 %v6386_v13  ;;  %5298 = vmatmul.mubr.msk.bf16.gmra.mrb[96].mxu1 %vm1089_vm4, %v7167_v38 }
 0x24d   : > { %2019 = vmatprep.mubr.bf16.mxu1 %v8818_v33 }
 0x24e   : > { %5954 = vmatmul.mubr.msk.bf16.gmra.mrb[96].mxu0 %vm1089_vm4, %v7155_v26 }
 0x24f   : > { %5957 = vmatprep.mubr.msk.bf16.mxu0 %vm1089_vm4, %v7218_v23  ;;  %5558 = vmatpush3.bf16.msra.mxu0 %v6387_v14 }
 0x250   : > { %5559 = vmatprep.subr.bf16.mxu0 %v6388_v16 }
 0x253   : > { %5560 = vmatpush3.bf16.msra.mxu0 %v6389_v17 }
 0x254   : > { %5299 = vmatmul.mubr.msk.bf16.gmra.mrb[100].mxu1 %vm1089_vm4, %v7213_v19 }
 0x255   : > { %2029 = vmatprep.mubr.bf16.mxu1 %v8818_v33 }
 0x256   : > { %5958 = vmatmul.mubr.msk.bf16.gmra.mrb[100].mxu0 %vm1089_vm4, %v7203_v10 }
 0x257   : > { %5961 = vmatprep.mubr.msk.bf16.mxu0 %vm1089_vm4, %v7247_v42 }
 0x25c   : > { %5300 = vmatmul.mubr.msk.bf16.gmra.mrb[104].mxu1 %vm1089_vm4, %v7209_v15 }
 0x25d   : > { %2039 = vmatprep.mubr.bf16.mxu1 %v8818_v33 }
 0x25e   : > { %5962 = vmatmul.mubr.msk.bf16.gmra.mrb[104].mxu0 %vm1089_vm4, %v7239_v37 }
 0x264   : > { %5301 = vmatmul.mubr.msk.bf16.gmra.mrb[108].mxu1 %vm1089_vm4, %v7165_v35 }
 0x265   : > { %2049 = vmatprep.mubr.bf16.mxu1 %v8818_v33 }
 0x26c   : > { %5302 = vmatmul.mubr.msk.bf16.gmra.mrb[112].mxu1 %vm1089_vm4, %v7155_v26 }
 0x26d   : > { %2059 = vmatprep.mubr.bf16.mxu1 %v8818_v33 }
 0x274   : > { %5303 = vmatmul.mubr.msk.bf16.gmra.mrb[116].mxu1 %vm1089_vm4, %v7218_v23 }
 0x275   : > { %2069 = vmatprep.mubr.bf16.mxu1 %v8818_v33 }
 0x277   : > { %v1160_v18 = vpop.f32.mrb[12].mxu1 }
 0x278   : > { %v1162_v20 = vpop.f32.mrb[13].mxu1  ;;  %v7499_v21 = vpop.f32.mrb[12].mxu0 }
 0x279   : > { %v1164_v22 = vpop.f32.mrb[14].mxu1  ;;  %v7501_v24 = vpop.f32.mrb[13].mxu0 }
 0x27a   : > { %v1166_v25 = vpop.f32.mrb[15].mxu1  ;;  %v7503_v27 = vpop.f32.mrb[14].mxu0 }
 0x27b   : > { %v7505_v28 = vpop.f32.mrb[15].mxu0 }
 0x27c   : > { %5304 = vmatmul.mubr.msk.bf16.gmra.mrb[120].mxu1 %vm1089_vm4, %v7203_v10 }
 0x27d   : > { %2079 = vmatprep.mubr.bf16.mxu1 %v8818_v33 }
 0x27f   : > { %v1170_v29 = vpop.f32.mrb[16].mxu1 }
 0x280   : > { %v7510_v30 = vpop.f32.mrb[17].mxu1 }
 0x281   : > { %v7512_v31 = vpop.f32.mrb[16].mxu0  ;;  %v7514_v32 = vpop.f32.mrb[18].mxu1 }
 0x282   : > { %v7516_v34 = vpop.f32.mrb[17].mxu0  ;;  %v7518_v36 = vpop.f32.mrb[19].mxu1 }
 0x283   : > { %v7520_v39 = vpop.f32.mrb[18].mxu0 }
 0x284   : > { %v7522_v40 = vpop.f32.mrb[19].mxu0  ;;  %5305 = vmatmul.mubr.msk.bf16.gmra.mrb[124].mxu1 %vm1089_vm4, %v7247_v42 }
 0x285   : > { %2089 = vmatprep.mubr.bf16.mxu1 %v8818_v33 }
 0x287   : > { %v7527_v41 = vpop.f32.mrb[20].mxu1 }
 0x288   : > { %v7529_v43 = vpop.f32.mrb[21].mxu1 }
 0x289   : > { %v7531_v45 = vpop.f32.mrb[20].mxu0  ;;  %v7533_v46 = vpop.f32.mrb[22].mxu1 }
 0x28a   : > { %v7535_v47 = vpop.f32.mrb[21].mxu0  ;;  %v7537_v48 = vpop.f32.mrb[23].mxu1 }
 0x28b   : > { %v7539_v49 = vpop.f32.mrb[22].mxu0 }
 0x28c   : > { %v7541_v50 = vpop.f32.mrb[23].mxu0  ;;  %5306 = vmatmul.mubr.msk.bf16.gmra.mrb[128].mxu1 %vm1089_vm4, %v7239_v37 }
 0x28f   : > { %v7545_v51 = vpop.f32.mrb[24].mxu1 }
 0x290   : > { %v7547_v52 = vpop.f32.mrb[25].mxu1 }
 0x291   : > { %v7549_v53 = vpop.f32.mrb[24].mxu0  ;;  %v7551_v54 = vpop.f32.mrb[26].mxu1 }
 0x292   : > { %v7553_v55 = vpop.f32.mrb[25].mxu0  ;;  %v7555_v56 = vpop.f32.mrb[27].mxu1 }
 0x293   : > { %v7557_v57 = vpop.f32.mrb[26].mxu0 }
 0x294   : > { %v7559_v58 = vpop.f32.mrb[27].mxu0 }
 0x297   : > { %v7561_v59 = vpop.f32.mrb[28].mxu1 }
 0x298   : > { %v7563_v60 = vpop.f32.mrb[29].mxu1 }
 0x299   : > { %v7565_v62 = vpop.f32.mrb[28].mxu0  ;;  %v7567_v63 = vpop.f32.mrb[30].mxu1 }
 0x29a   : > { %v7569_v0 = vpop.f32.mrb[29].mxu0  ;;  %v7571_v1 = vpop.f32.mrb[31].mxu1 }
 0x29b   : > { %v7573_v2 = vpop.f32.mrb[30].mxu0 }
 0x29c   : > { %v7575_v3 = vpop.f32.mrb[31].mxu0 }
 0x29f   : > { %v7577_v5 = vpop.f32.mrb[32].mxu1 }
 0x2a0   : > { %v7579_v6 = vpop.f32.mrb[33].mxu1 }
 0x2a1   : > { %v7581_v7 = vpop.f32.mrb[32].mxu0  ;;  %v7583_v8 = vpop.f32.mrb[34].mxu1 }
 0x2a2   : > { %v7585_v9 = vpop.f32.mrb[33].mxu0  ;;  %v7587_v11 = vpop.f32.mrb[35].mxu1 }
 0x2a3   : > { %v7589_v12 = vpop.f32.mrb[34].mxu0 }
 0x2a4   : > { %8865 = vst [vmem:[#allocation28_spill] sm:$0xff] %v7589_v12  ;;  %v7591_v13 = vpop.f32.mrb[35].mxu0 }
 0x2a5   : > { %8866 = vst [vmem:[#allocation29_spill] sm:$0xff] %v7591_v13 }
 0x2a7   : > { %v7593_v14 = vpop.f32.mrb[36].mxu1 }
 0x2a8   : > { %v7595_v16 = vpop.f32.mrb[37].mxu1 }
 0x2a9   : > { %v1562_v17 = vpop.f32.mrb[36].mxu0  ;;  %v7597_v37 = vpop.f32.mrb[38].mxu1 }
 0x2aa   : > { %v2551_v33 = vmul.f32 %v1562_v17, %v1160_v18  ;;  %v1564_v42 = vpop.f32.mrb[37].mxu0  ;;  %v7599_v23 = vpop.f32.mrb[39].mxu1 }
 0x2ab   : > { %v2552_v10 = vmul.f32 %v1564_v42, %v1162_v20  ;;  %v1566_v26 = vpop.f32.mrb[38].mxu0 }
 0x2ac   : > { %v2554_v35 = vmul.f32 %v1566_v26, %v1164_v22  ;;  %v1568_v15 = vpop.f32.mrb[39].mxu0 }
 0x2ad   : > { %v2555_v19 = vmul.f32 %v1568_v15, %v1166_v25 }
 0x2ae   : > { %v2623_v38 = vpack.c.bf16 %v2554_v35, %v2551_v33 }
 0x2af   : > { %v2624_v44 = vpack.c.bf16 %v2555_v19, %v2552_v10  ;;  %v7601_v61 = vpop.f32.mrb[40].mxu1 }
 0x2b0   : > { %v7603_v4 = vpop.f32.mrb[41].mxu1 }
 0x2b1   : > { %v1572_v13 = vpop.f32.mrb[40].mxu0  ;;  %2836 = vmatprep.mubr.bf16.mxu0 %v2624_v44  ;;  %v7605_v18 = vpop.f32.mrb[42].mxu1 }
 0x2b2   : > { %v2557_v12 = vmul.f32 %v1572_v13, %v1170_v29  ;;  %v1574_v17 = vpop.f32.mrb[41].mxu0  ;;  %2837 = vmatmul.mubr.bf16.vlgmr.msra.gmra.mrb[108].mxu0 %v2623_v38  ;;  %v7608_v20 = vpop.f32.mrb[43].mxu1 }
 0x2b3   : > { %v2558_v42 = vmul.f32 %v1574_v17, %v7510_v30  ;;  %v1576_v26 = vpop.f32.mrb[42].mxu0 }
 0x2b4   : > { %v2560_v15 = vmul.f32 %v1576_v26, %v7514_v32  ;;  %v1578_v33 = vpop.f32.mrb[43].mxu0 }
 0x2b5   : > { %v2561_v35 = vmul.f32 %v1578_v33, %v7518_v36 }
 0x2b6   : > { %v2626_v10 = vpack.c.bf16 %v2560_v15, %v2557_v12 }
 0x2b7   : > { %v2627_v19 = vpack.c.bf16 %v2561_v35, %v2558_v42  ;;  %v7612_v22 = vpop.f32.mrb[44].mxu1 }
 0x2b8   : > { %v7614_v44 = vpop.f32.mrb[45].mxu1 }
 0x2b9   : > { %v1582_v25 = vpop.f32.mrb[44].mxu0  ;;  %2844 = vmatprep.mubr.bf16.mxu0 %v2627_v19  ;;  %v7617_v29 = vpop.f32.mrb[46].mxu1 }
 0x2ba   : > { %v2563_v38 = vmul.f32 %v1582_v25, %v7527_v41  ;;  %v1584_v30 = vpop.f32.mrb[45].mxu0  ;;  %2845 = vmatmul.mubr.bf16.gmra.mrb[112].mxu0 %v2626_v10  ;;  %v7620_v32 = vpop.f32.mrb[47].mxu1 }
 0x2bb   : > { %v2564_v13 = vmul.f32 %v1584_v30, %v7529_v43  ;;  %v1586_v17 = vpop.f32.mrb[46].mxu0 }
 0x2bc   : > { %v2566_v36 = vmul.f32 %v1586_v17, %v7533_v46  ;;  %v1588_v12 = vpop.f32.mrb[47].mxu0 }
 0x2bd   : > { %v2567_v42 = vmul.f32 %v1588_v12, %v7537_v48 }
 0x2be   : > { %v2629_v26 = vpack.c.bf16 %v2566_v36, %v2563_v38 }
 0x2bf   : > { %v2630_v15 = vpack.c.bf16 %v2567_v42, %v2564_v13  ;;  %v7624_v33 = vpop.f32.mrb[48].mxu1 }
 0x2c0   : > { %v7626_v35 = vpop.f32.mrb[49].mxu1 }
 0x2c1   : > { %v1592_v41 = vpop.f32.mrb[48].mxu0  ;;  %2852 = vmatprep.mubr.bf16.mxu0 %v2630_v15  ;;  %v7629_v19 = vpop.f32.mrb[50].mxu1 }
 0x2c2   : > { %v2569_v10 = vmul.f32 %v1592_v41, %v7545_v51  ;;  %v1594_v43 = vpop.f32.mrb[49].mxu0  ;;  %2853 = vmatmul.mubr.bf16.gmra.mrb[116].mxu0 %v2629_v26  ;;  %v7632_v46 = vpop.f32.mrb[51].mxu1 }
 0x2c3   : > { %v2570_v25 = vmul.f32 %v1594_v43, %v7547_v52  ;;  %v1596_v30 = vpop.f32.mrb[50].mxu0 }
 0x2c4   : > { %v2572_v48 = vmul.f32 %v1596_v30, %v7551_v54  ;;  %v1598_v38 = vpop.f32.mrb[51].mxu0 }
 0x2c5   : > { %v2573_v13 = vmul.f32 %v1598_v38, %v7555_v56 }
 0x2c6   : > { %v2632_v17 = vpack.c.bf16 %v2572_v48, %v2569_v10 }
 0x2c7   : > { %v2633_v36 = vpack.c.bf16 %v2573_v13, %v2570_v25  ;;  %v7636_v12 = vpop.f32.mrb[52].mxu1 }
 0x2c8   : > { %v7638_v42 = vpop.f32.mrb[53].mxu1 }
 0x2c9   : > { %v1602_v51 = vpop.f32.mrb[52].mxu0  ;;  %2860 = vmatprep.mubr.bf16.mxu0 %v2633_v36  ;;  %v7641_v15 = vpop.f32.mrb[54].mxu1 }
 0x2ca   : > { %v2575_v26 = vmul.f32 %v1602_v51, %v7561_v59  ;;  %v1604_v52 = vpop.f32.mrb[53].mxu0  ;;  %2861 = vmatmul.mubr.bf16.gmra.mrb[120].mxu0 %v2632_v17  ;;  %v7644_v54 = vpop.f32.mrb[55].mxu1 }
 0x2cb   : > { %v2576_v41 = vmul.f32 %v1604_v52, %v7563_v60  ;;  %v1606_v43 = vpop.f32.mrb[54].mxu0 }
 0x2cc   : > { %v2578_v56 = vmul.f32 %v1606_v43, %v7567_v63  ;;  %v1608_v10 = vpop.f32.mrb[55].mxu0 }
 0x2cd   : > { %v2579_v25 = vmul.f32 %v1608_v10, %v7571_v1 }
 0x2ce   : > { %v2635_v30 = vpack.c.bf16 %v2578_v56, %v2575_v26 }
 0x2cf   : > { %v2636_v48 = vpack.c.bf16 %v2579_v25, %v2576_v41  ;;  %v7648_v38 = vpop.f32.mrb[56].mxu1 }
 0x2d0   : > { %v7650_v13 = vpop.f32.mrb[57].mxu1 }
 0x2d1   : > { %v1612_v59 = vpop.f32.mrb[56].mxu0  ;;  %2868 = vmatprep.mubr.bf16.mxu0 %v2636_v48  ;;  %v7653_v36 = vpop.f32.mrb[58].mxu1 }
 0x2d2   : > { %v2581_v17 = vmul.f32 %v1612_v59, %v7577_v5  ;;  %v1614_v60 = vpop.f32.mrb[57].mxu0  ;;  %2869 = vmatmul.mubr.bf16.gmra.mrb[124].mxu0 %v2635_v30  ;;  %v7656_v63 = vpop.f32.mrb[59].mxu1 }
 0x2d3   : > { %v2582_v51 = vmul.f32 %v1614_v60, %v7579_v6  ;;  %v1616_v52 = vpop.f32.mrb[58].mxu0 }
 0x2d4   : > { %v2584_v1 = vmul.f32 %v1616_v52, %v7583_v8  ;;  %v1618_v26 = vpop.f32.mrb[59].mxu0 }
 0x2d5   : > { %v2585_v41 = vmul.f32 %v1618_v26, %v7587_v11 }
 0x2d6   : > { %v2638_v43 = vpack.c.bf16 %v2584_v1, %v2581_v17 }
 0x2d7   : > { %v2639_v56 = vpack.c.bf16 %v2585_v41, %v2582_v51  ;;  %v5907_v10 = vpop.f32.mrb[60].mxu1 }
 0x2d8   : > { %v2559_v25 = vmul.f32 %v5907_v10, %v7499_v21  ;;  %v1715_v48 = vpop.f32.mrb[61].mxu1 }
 0x2d9   : > { %v1622_v5 = vpop.f32.mrb[60].mxu0  ;;  %2876 = vmatprep.mubr.bf16.mxu0 %v2639_v56  ;;  %v2553_v6 = vmul.f32 %v1715_v48, %v7501_v24  ;;  %v5908_v60 = vpop.f32.mrb[62].mxu1 }
 0x2da   : > { %v2587_v30 = vmul.f32 %v1622_v5, %v7593_v14  ;;  %v1624_v59 = vpop.f32.mrb[61].mxu0  ;;  %2877 = vmatmul.mubr.bf16.gmra.mrb[128].mxu0 %v2638_v43  ;;  %v2562_v52 = vmul.f32 %v5908_v60, %v7503_v27  ;;  %v1718_v17 = vpop.f32.mrb[63].mxu1 }
 0x2db   : > { %v2588_v8 = vmul.f32 %v1624_v59, %v7595_v16  ;;  %v1626_v11 = vpop.f32.mrb[62].mxu0  ;;  %v2556_v21 = vmul.f32 %v1718_v17, %v7505_v28 }
 0x2dc   : > { %v2590_v51 = vmul.f32 %v1626_v11, %v7597_v37  ;;  %v1628_v1 = vpop.f32.mrb[63].mxu0  ;;  %v2628_v26 = vpack.c.bf16 %v2562_v52, %v2559_v25 }
 0x2dd   : > { %v2591_v41 = vmul.f32 %v1628_v1, %v7599_v23  ;;  %v2625_v24 = vpack.c.bf16 %v2556_v21, %v2553_v6 }
 0x2de   : > { %v2641_v14 = vpack.c.bf16 %v2590_v51, %v2587_v30 }
 0x2df   : > { %v2642_v56 = vpack.c.bf16 %v2591_v41, %v2588_v8  ;;  %v5911_v10 = vpop.f32.mrb[64].mxu1  ;;  %5969 = vmatprep.mubr.msk.bf16.mxu1 %vm2767_vm13, %v2625_v24 }
 0x2e0   : > { %v2571_v16 = vmul.f32 %v5911_v10, %v7512_v31  ;;  %v1731_v43 = vpop.f32.mrb[65].mxu1  ;;  %5970 = vmatmul.mubr.msk.bf16.vlgmr.msra.gmra.mrb[132].mxu1 %vm2767_vm13, %v2628_v26 }
 0x2e1   : > { %v1632_v27 = vpop.f32.mrb[64].mxu0  ;;  %2884 = vmatprep.mubr.bf16.mxu0 %v2642_v56  ;;  %v2565_v28 = vmul.f32 %v1731_v43, %v7516_v34  ;;  %v5912_v23 = vpop.f32.mrb[66].mxu1 }
 0x2e2   : > { %v2593_v37 = vmul.f32 %v1632_v27, %v7601_v61  ;;  %v1634_v25 = vpop.f32.mrb[65].mxu0  ;;  %2885 = vmatmul.mubr.bf16.gmra.mrb[132].mxu0 %v2641_v14  ;;  %v2574_v48 = vmul.f32 %v5912_v23, %v7520_v39  ;;  %v1734_v6 = vpop.f32.mrb[67].mxu1 }
 0x2e3   : > { %v2594_v5 = vmul.f32 %v1634_v25, %v7603_v4  ;;  %v1636_v30 = vpop.f32.mrb[66].mxu0  ;;  %v2568_v59 = vmul.f32 %v1734_v6, %v7522_v40 }
 0x2e4   : > { %v2596_v31 = vmul.f32 %v1636_v30, %v7605_v18  ;;  %v1638_v60 = vpop.f32.mrb[67].mxu0  ;;  %v2634_v8 = vpack.c.bf16 %v2574_v48, %v2571_v16 }
 0x2e5   : > { %v2597_v52 = vmul.f32 %v1638_v60, %v7608_v20  ;;  %v2631_v11 = vpack.c.bf16 %v2568_v59, %v2565_v28 }
 0x2e6   : > { %v2644_v61 = vpack.c.bf16 %v2596_v31, %v2593_v37 }
 0x2e7   : > { %v2645_v34 = vpack.c.bf16 %v2597_v52, %v2594_v5  ;;  %v5915_v17 = vpop.f32.mrb[68].mxu1  ;;  %5973 = vmatprep.mubr.msk.bf16.mxu1 %vm2767_vm13, %v2631_v11 }
 0x2e8   : > { %v2583_v4 = vmul.f32 %v5915_v17, %v7531_v45  ;;  %v1747_v39 = vpop.f32.mrb[69].mxu1  ;;  %5974 = vmatmul.mubr.msk.bf16.gmra.mrb[136].mxu1 %vm2767_vm13, %v2634_v8 }
 0x2e9   : > { %v1642_v51 = vpop.f32.mrb[68].mxu0  ;;  %2892 = vmatprep.mubr.bf16.mxu0 %v2645_v34  ;;  %v2577_v40 = vmul.f32 %v1747_v39, %v7535_v47  ;;  %v5916_v1 = vpop.f32.mrb[70].mxu1 }
 0x2ea   : > { %v2599_v18 = vmul.f32 %v1642_v51, %v7612_v22  ;;  %v1644_v21 = vpop.f32.mrb[69].mxu0  ;;  %2893 = vmatmul.mubr.bf16.gmra.mrb[136].mxu0 %v2644_v61  ;;  %v2586_v26 = vmul.f32 %v5916_v1, %v7539_v49  ;;  %v1750_v14 = vpop.f32.mrb[71].mxu1 }
 0x2eb   : > { %v2600_v20 = vmul.f32 %v1644_v21, %v7614_v44  ;;  %v1646_v41 = vpop.f32.mrb[70].mxu0  ;;  %v2580_v24 = vmul.f32 %v1750_v14, %v7541_v50  ;;  %v8867_v14 = vld [vmem:[#allocation28_spill] sm:$0xff] }
 0x2ec   : > { %v2602_v45 = vmul.f32 %v1646_v41, %v7617_v29  ;;  %v1648_v56 = vpop.f32.mrb[71].mxu0  ;;  %v2640_v10 = vpack.c.bf16 %v2586_v26, %v2583_v4 }
 0x2ed   : > { %v2603_v16 = vmul.f32 %v1648_v56, %v7620_v32  ;;  %v2637_v27 = vpack.c.bf16 %v2580_v24, %v2577_v40 }
 0x2ee   : > { %v2647_v22 = vpack.c.bf16 %v2602_v45, %v2599_v18 }
 0x2ef   : > { %v2648_v47 = vpack.c.bf16 %v2603_v16, %v2600_v20  ;;  %v5919_v43 = vpop.f32.mrb[72].mxu1  ;;  %5977 = vmatprep.mubr.msk.bf16.mxu1 %vm2767_vm13, %v2637_v27 }
 0x2f0   : > { %v2595_v44 = vmul.f32 %v5919_v43, %v7549_v53  ;;  %v1763_v49 = vpop.f32.mrb[73].mxu1  ;;  %5978 = vmatmul.mubr.msk.bf16.gmra.mrb[140].mxu1 %vm2767_vm13, %v2640_v10  ;;  %v8868_v10 = vld [vmem:[#allocation29_spill] sm:$0xff] }
 0x2f1   : > { %v1652_v37 = vpop.f32.mrb[72].mxu0  ;;  %2900 = vmatprep.mubr.bf16.mxu0 %v2648_v47  ;;  %v2589_v50 = vmul.f32 %v1763_v49, %v7553_v55  ;;  %v5920_v25 = vpop.f32.mrb[74].mxu1 }
 0x2f2   : > { %v2605_v29 = vmul.f32 %v1652_v37, %v7624_v33  ;;  %v1654_v28 = vpop.f32.mrb[73].mxu0  ;;  %2901 = vmatmul.mubr.bf16.gmra.mrb[140].mxu0 %v2647_v22  ;;  %v2598_v23 = vmul.f32 %v5920_v25, %v7557_v57  ;;  %v1766_v48 = vpop.f32.mrb[75].mxu1 }
 0x2f3   : > { %v2606_v32 = vmul.f32 %v1654_v28, %v7626_v35  ;;  %v1656_v5 = vpop.f32.mrb[74].mxu0  ;;  %v2592_v30 = vmul.f32 %v1766_v48, %v7559_v58 }
 0x2f4   : > { %v2608_v53 = vmul.f32 %v1656_v5, %v7629_v19  ;;  %v1658_v6 = vpop.f32.mrb[75].mxu0  ;;  %v2646_v31 = vpack.c.bf16 %v2598_v23, %v2595_v44 }
 0x2f5   : > { %v2609_v59 = vmul.f32 %v1658_v6, %v7632_v46  ;;  %v2643_v60 = vpack.c.bf16 %v2592_v30, %v2589_v50 }
 0x2f6   : > { %v2650_v33 = vpack.c.bf16 %v2608_v53, %v2605_v29 }
 0x2f7   : > { %v2651_v55 = vpack.c.bf16 %v2609_v59, %v2606_v32  ;;  %v5923_v8 = vpop.f32.mrb[76].mxu1  ;;  %5981 = vmatprep.mubr.msk.bf16.mxu1 %vm2767_vm13, %v2643_v60 }
 0x2f8   : > { %v2607_v35 = vmul.f32 %v5923_v8, %v7565_v62  ;;  %v1779_v57 = vpop.f32.mrb[77].mxu1  ;;  %5982 = vmatmul.mubr.msk.bf16.gmra.mrb[144].mxu1 %vm2767_vm13, %v2646_v31 }
 0x2f9   : > { %v1662_v52 = vpop.f32.mrb[76].mxu0  ;;  %2908 = vmatprep.mubr.bf16.mxu0 %v2651_v55  ;;  %v2601_v58 = vmul.f32 %v1779_v57, %v7569_v0  ;;  %v5924_v11 = vpop.f32.mrb[78].mxu1 }
 0x2fa   : > { %v2611_v19 = vmul.f32 %v1662_v52, %v7636_v12  ;;  %v1664_v61 = vpop.f32.mrb[77].mxu0  ;;  %2909 = vmatmul.mubr.bf16.gmra.mrb[144].mxu0 %v2650_v33  ;;  %v2610_v34 = vmul.f32 %v5924_v11, %v7573_v2  ;;  %v1782_v4 = vpop.f32.mrb[79].mxu1 }
 0x2fb   : > { %v2612_v46 = vmul.f32 %v1664_v61, %v7638_v42  ;;  %v1666_v17 = vpop.f32.mrb[78].mxu0  ;;  %v2604_v51 = vmul.f32 %v1782_v4, %v7575_v3 }
 0x2fc   : > { %v2614_v62 = vmul.f32 %v1666_v17, %v7641_v15  ;;  %v1668_v39 = vpop.f32.mrb[79].mxu0  ;;  %v2652_v18 = vpack.c.bf16 %v2610_v34, %v2607_v35 }
 0x2fd   : > { %v2615_v40 = vmul.f32 %v1668_v39, %v7644_v54  ;;  %v2649_v21 = vpack.c.bf16 %v2604_v51, %v2601_v58 }
 0x2fe   : > { %v2653_v12 = vpack.c.bf16 %v2614_v62, %v2611_v19 }
 0x2ff   : > { %v2654_v0 = vpack.c.bf16 %v2615_v40, %v2612_v46  ;;  %v5927_v1 = vpop.f32.mrb[80].mxu1  ;;  %5985 = vmatprep.mubr.msk.bf16.mxu1 %vm2767_vm13, %v2649_v21 }
 0x300   : > { %v2619_v42 = vmul.f32 %v5927_v1, %v7581_v7  ;;  %v1795_v2 = vpop.f32.mrb[81].mxu1  ;;  %5986 = vmatmul.mubr.msk.bf16.gmra.mrb[148].mxu1 %vm2767_vm13, %v2652_v18 }
 0x301   : > { %v1672_v20 = vpop.f32.mrb[80].mxu0  ;;  %2916 = vmatprep.mubr.bf16.mxu0 %v2654_v0  ;;  %v2613_v3 = vmul.f32 %v1795_v2, %v7585_v9  ;;  %v5928_v41 = vpop.f32.mrb[82].mxu1 }
 0x302   : > { %v2617_v15 = vmul.f32 %v1672_v20, %v7648_v38  ;;  %v1674_v26 = vpop.f32.mrb[81].mxu0  ;;  %2917 = vmatmul.mubr.bf16.gmra.mrb[148].mxu0 %v2653_v12  ;;  %v2622_v45 = vmul.f32 %v5928_v41, %v8867_v14  ;;  %v1798_v56 = vpop.f32.mrb[83].mxu1 }
 0x303   : > { %v2618_v54 = vmul.f32 %v1674_v26, %v7650_v13  ;;  %v1676_v24 = vpop.f32.mrb[82].mxu0  ;;  %v2616_v16 = vmul.f32 %v1798_v56, %v8868_v10 }
 0x304   : > { %v2620_v7 = vmul.f32 %v1676_v24, %v7653_v36  ;;  %v1678_v22 = vpop.f32.mrb[83].mxu0  ;;  %v2658_v27 = vpack.c.bf16 %v2622_v45, %v2619_v42 }
 0x305   : > { %v2621_v47 = vmul.f32 %v1678_v22, %v7656_v63  ;;  %v2655_v43 = vpack.c.bf16 %v2616_v16, %v2613_v3  ;;  %v8869_v63 = vmov 0  }
 0x306   : > { %v2656_v38 = vpack.c.bf16 %v2620_v7, %v2617_v15 }
 0x307   : > { %v2657_v9 = vpack.c.bf16 %v2621_v47, %v2618_v54  ;;  %v7718_v44 = vpop.f32.mrb[84].mxu1  ;;  %5989 = vmatprep.mubr.msk.bf16.mxu1 %vm2767_vm13, %v2655_v43 }
 0x308   : > { %v7721_v13 = vpop.f32.mrb[85].mxu1  ;;  %5990 = vmatmul.mubr.msk.bf16.gmra.mrb[152].mxu1 %vm2767_vm13, %v2658_v27 }
 0x309   : > { %v7723_v37 = vpop.f32.mrb[84].mxu0  ;;  %2924 = vmatprep.mubr.bf16.mxu0 %v2657_v9  ;;  %v7726_v36 = vpop.f32.mrb[86].mxu1  ;;  %3312 = vmatprep.mubr.bf16.mxu1 %v8869_v63 }
 0x30a   : > { %v7728_v49 = vpop.f32.mrb[85].mxu0  ;;  %2925 = vmatmul.mubr.bf16.gmra.mrb[152].mxu0 %v2656_v38  ;;  %v7731_v29 = vpop.f32.mrb[87].mxu1 }
 0x30b   : > { %v7733_v50 = vpop.f32.mrb[86].mxu0 }
 0x30c   : > { %v7735_v28 = vpop.f32.mrb[87].mxu0 }
 0x30f   : > { %v7737_v25 = vpop.f32.mrb[88].mxu1 }
 0x310   : > { %v7739_v32 = vpop.f32.mrb[89].mxu1 }
 0x311   : > { %v7741_v23 = vpop.f32.mrb[88].mxu0  ;;  %v7743_v5 = vpop.f32.mrb[90].mxu1 }
 0x312   : > { %v7745_v48 = vpop.f32.mrb[89].mxu0  ;;  %v7747_v53 = vpop.f32.mrb[91].mxu1 }
 0x313   : > { %v7749_v30 = vpop.f32.mrb[90].mxu0 }
 0x314   : > { %v7751_v6 = vpop.f32.mrb[91].mxu0 }
 0x317   : > { %v7753_v31 = vpop.f32.mrb[92].mxu1 }
 0x318   : > { %v7755_v59 = vpop.f32.mrb[93].mxu1 }
 0x319   : > { %v7757_v33 = vpop.f32.mrb[92].mxu0  ;;  %v7759_v60 = vpop.f32.mrb[94].mxu1 }
 0x31a   : > { %v7761_v55 = vpop.f32.mrb[93].mxu0  ;;  %v7763_v8 = vpop.f32.mrb[95].mxu1 }
 0x31b   : > { %v7765_v35 = vpop.f32.mrb[94].mxu0 }
 0x31c   : > { %v7767_v52 = vpop.f32.mrb[95].mxu0 }
 0x31d   : > { %8870 = vst [vmem:[#allocation28_spill] sm:$0xff] %v7767_v52 }
 0x31f   : > { %v7769_v57 = vpop.f32.mrb[96].mxu1 }
 0x320   : > { %8871 = vst [vmem:[#allocation29_spill] sm:$0xff] %v7769_v57  ;;  %v7771_v19 = vpop.f32.mrb[97].mxu1 }
 0x321   : > { %8872 = vst [vmem:[#allocation30_spill] sm:$0xff] %v7771_v19  ;;  %v7773_v58 = vpop.f32.mrb[96].mxu0  ;;  %v7775_v61 = vpop.f32.mrb[98].mxu1 }
 0x322   : > { %8873 = vst [vmem:[#allocation31_spill] sm:$0xff] %v7773_v58  ;;  %8874 = vst [vmem:[#allocation32_spill] sm:$0xff] %v7775_v61  ;;  %v7777_v11 = vpop.f32.mrb[97].mxu0  ;;  %v7779_v46 = vpop.f32.mrb[99].mxu1 }
 0x323   : > { %8875 = vst [vmem:[#allocation33_spill] sm:$0xff] %v7777_v11  ;;  %8876 = vst [vmem:[#allocation34_spill] sm:$0xff] %v7779_v46  ;;  %v7781_v34 = vpop.f32.mrb[98].mxu0 }
 0x324   : > { %8877 = vst [vmem:[#allocation35_spill] sm:$0xff] %v7781_v34  ;;  %v7783_v17 = vpop.f32.mrb[99].mxu0 }
 0x325   : > { %8878 = vst [vmem:[#allocation36_spill] sm:$0xff] %v7783_v17 }
 0x327   : > { %v7785_v4 = vpop.f32.mrb[100].mxu1 }
 0x328   : > { %8879 = vst [vmem:[#allocation37_spill] sm:$0xff] %v7785_v4  ;;  %v7787_v62 = vpop.f32.mrb[101].mxu1 }
 0x329   : > { %8880 = vst [vmem:[#allocation38_spill] sm:$0xff] %v7787_v62  ;;  %v7789_v51 = vpop.f32.mrb[100].mxu0  ;;  %v7791_v39 = vpop.f32.mrb[102].mxu1 }
 0x32a   : > { %8881 = vst [vmem:[#allocation39_spill] sm:$0xff] %v7789_v51  ;;  %8882 = vst [vmem:[#allocation40_spill] sm:$0xff] %v7791_v39  ;;  %v7793_v18 = vpop.f32.mrb[101].mxu0  ;;  %v7795_v40 = vpop.f32.mrb[103].mxu1 }
 0x32b   : > { %8883 = vst [vmem:[#allocation41_spill] sm:$0xff] %v7793_v18  ;;  %8884 = vst [vmem:[#allocation42_spill] sm:$0xff] %v7795_v40  ;;  %v7797_v12 = vpop.f32.mrb[102].mxu0 }
 0x32c   : > { %8885 = vst [vmem:[#allocation43_spill] sm:$0xff] %v7797_v12  ;;  %v7799_v21 = vpop.f32.mrb[103].mxu0 }
 0x32d   : > { %8886 = vst [vmem:[#allocation44_spill] sm:$0xff] %v7799_v21  ;;  %v8832_v21 = vlaneseq }
 0x32f   : > { %v7801_v0 = vpop.f32.mrb[104].mxu1 }
 0x330   : > { %8887 = vst [vmem:[#allocation45_spill] sm:$0xff] %v7801_v0  ;;  %v7803_v1 = vpop.f32.mrb[105].mxu1 }
 0x331   : > { %8888 = vst [vmem:[#allocation46_spill] sm:$0xff] %v7803_v1  ;;  %v7805_v42 = vpop.f32.mrb[104].mxu0  ;;  %v7807_v20 = vpop.f32.mrb[106].mxu1 }
 0x332   : > { %8889 = vst [vmem:[#allocation47_spill] sm:$0xff] %v7805_v42  ;;  %8890 = vst [vmem:[#allocation48_spill] sm:$0xff] %v7807_v20  ;;  %v7809_v2 = vpop.f32.mrb[105].mxu0  ;;  %v7811_v15 = vpop.f32.mrb[107].mxu1 }
 0x333   : > { %8891 = vst [vmem:[#allocation49_spill] sm:$0xff] %v7809_v2  ;;  %8892 = vst [vmem:[#allocation50_spill] sm:$0xff] %v7811_v15  ;;  %v7813_v3 = vpop.f32.mrb[106].mxu0 }
 0x334   : > { %8893 = vst [vmem:[#allocation51_spill] sm:$0xff] %v7813_v3  ;;  %v7815_v26 = vpop.f32.mrb[107].mxu0 }
 0x335   : > { %8894 = vst [vmem:[#allocation52_spill] sm:$0xff] %v7815_v26 }
 0x337   : > { %v7817_v41 = vpop.f32.mrb[108].mxu1 }
 0x338   : > { %8895 = vst [vmem:[#allocation53_spill] sm:$0xff] %v7817_v41  ;;  %v7819_v54 = vpop.f32.mrb[109].mxu1 }
 0x339   : > { %8896 = vst [vmem:[#allocation54_spill] sm:$0xff] %v7819_v54  ;;  %v7821_v14 = vpop.f32.mrb[110].mxu1 }
 0x33a   : > { %8897 = vst [vmem:[#allocation55_spill] sm:$0xff] %v7821_v14  ;;  %v7823_v45 = vpop.f32.mrb[111].mxu1 }
 0x33b   : > { %8898 = vst [vmem:[#allocation56_spill] sm:$0xff] %v7823_v45  ;;  %v6394_v45 = vld [vmem:[#allocation6 + $0x4] ss:$12 sps:$4 sm:$0x1f]  }
 0x33f   : > { %v7825_v24 = vpop.f32.mrb[112].mxu1 }
 0x340   : > { %8899 = vst [vmem:[#allocation57_spill] sm:$0xff] %v7825_v24  ;;  %v7827_v56 = vpop.f32.mrb[113].mxu1 }
 0x341   : > { %8900 = vst [vmem:[#allocation58_spill] sm:$0xff] %v7827_v56  ;;  %v7829_v7 = vpop.f32.mrb[114].mxu1 }
 0x342   : > { %8901 = vst [vmem:[#allocation59_spill] sm:$0xff] %v7829_v7  ;;  %v7831_v10 = vpop.f32.mrb[115].mxu1 }
 0x343   : > { %8902 = vst [vmem:[#allocation60_spill] sm:$0xff] %v7831_v10 }
 0x347   : > { %v7833_v16 = vpop.f32.mrb[116].mxu1 }
 0x348   : > { %8903 = vst [vmem:[#allocation61_spill] sm:$0xff] %v7833_v16  ;;  %v7835_v22 = vpop.f32.mrb[117].mxu1 }
 0x349   : > { %8904 = vst [vmem:[#allocation62_spill] sm:$0xff] %v7835_v22  ;;  %v7837_v27 = vpop.f32.mrb[118].mxu1 }
 0x34a   : > { %8905 = vst [vmem:[#allocation63_spill] sm:$0xff] %v7837_v27  ;;  %v7839_v47 = vpop.f32.mrb[119].mxu1 }
 0x34b   : > { %8906 = vst [vmem:[#allocation64_spill] sm:$0xff] %v7839_v47 }
 0x34f   : > { %v7841_v38 = vpop.f32.mrb[120].mxu1 }
 0x350   : > { %8907 = vst [vmem:[#allocation65_spill] sm:$0xff] %v7841_v38  ;;  %v7843_v43 = vpop.f32.mrb[121].mxu1 }
 0x351   : > { %8908 = vst [vmem:[#allocation66_spill] sm:$0xff] %v7843_v43  ;;  %v7845_v9 = vpop.f32.mrb[122].mxu1  ;;  %v6731_v43 = vmov 65535  }
 0x352   : > { %8909 = vst [vmem:[#allocation67_spill] sm:$0xff] %v7845_v9  ;;  %v7847_v24 = vpop.f32.mrb[123].mxu1  ;;  %v3269_v9 = vsel %vm752_vm0, 4294967295, %v6731_v43 }
 0x353   : > { %8910 = vst [vmem:[#allocation68_spill] sm:$0xff] %v7847_v24  ;;  %v6391_v24 = vld [vmem:[#allocation6 + $0x8] ss:$12 sps:$4 sm:$0x1f]  }
 0x357   : > { %v7849_v56 = vpop.f32.mrb[124].mxu1 }
 0x358   : > { %8911 = vst [vmem:[#allocation69_spill] sm:$0xff] %v7849_v56  ;;  %v7851_v7 = vpop.f32.mrb[125].mxu1  ;;  %v7866_v56 = vsel %vm3268_vm14, %v3269_v9, 0 }
 0x359   : > { %8912 = vst [vmem:[#allocation70_spill] sm:$0xff] %v7851_v7  ;;  %v7853_v10 = vpop.f32.mrb[126].mxu1  ;;  %v6392_v7 = vld [vmem:[#allocation6] ss:$12 sps:$4 sm:$0x1f]  }
 0x35a   : > { %8913 = vst [vmem:[#allocation71_spill] sm:$0xff] %v7853_v10  ;;  %v7855_v16 = vpop.f32.mrb[127].mxu1  ;;  %v3278_v10 = vand.u32 %v6391_v24, %v7866_v56 }
 0x35b   : > { %8914 = vst [vmem:[#allocation72_spill] sm:$0xff] %v7855_v16  ;;  %v3272_v16 = vand.u32 %v6392_v7, %v7866_v56 }
 0x35c   : > { %5993 = vmatprep.subr.bf16.mxu0 %v3278_v10 }
 0x35d   : > { %5994 = vmatpush3.bf16.msra.mxu0 %v3278_v10 }
 0x35f   : > { %v7857_v22 = vpop.f32.mrb[128].mxu1 }
 0x360   : > { %8915 = vst [vmem:[#allocation73_spill] sm:$0xff] %v7857_v22  ;;  %v7859_v27 = vpop.f32.mrb[129].mxu1 }
 0x361   : > { %8916 = vst [vmem:[#allocation74_spill] sm:$0xff] %v7859_v27  ;;  %v7861_v47 = vpop.f32.mrb[130].mxu1  ;;  %v3275_v27 = vand.u32 %v6394_v45, %v7866_v56 }
 0x362   : > { %8917 = vst [vmem:[#allocation75_spill] sm:$0xff] %v7861_v47  ;;  %v7863_v38 = vpop.f32.mrb[131].mxu1 }
 0x363   : > { %8918 = vst [vmem:[#allocation76_spill] sm:$0xff] %v7863_v38  ;;  %3280 = vmatprep.subr.bf16.mxu1 %v3275_v27 }
 0x364   : > { %3281 = vmatpush1.bf16.msra.mxu1 %v3272_v16 }
 0x385   : > { %v5561_v38 = vpop.f32.mrb[108].mxu0 }
 0x386   : > { %v5562_v47 = vpop.f32.mrb[109].mxu0 }
 0x387   : > { %v5563_v22 = vadd.f32 %v5562_v47, %v5561_v38  ;;  %v5564_v43 = vpop.f32.mrb[110].mxu0 }
 0x388   : > { %v5565_v14 = vpop.f32.mrb[111].mxu0 }
 0x389   : > { %v5566_v54 = vadd.f32 %v5565_v14, %v5564_v43 }
 0x38d   : > { %v5567_v9 = vpop.f32.mrb[112].mxu0 }
 0x38e   : > { %v5568_v41 = vpop.f32.mrb[113].mxu0 }
 0x38f   : > { %v5569_v26 = vadd.f32 %v5568_v41, %v5567_v9  ;;  %v5570_v3 = vpop.f32.mrb[114].mxu0  ;;  %v2446_v41 = vand.u32 127, %v8832_v21 }
 0x390   : > { %v5571_v24 = vpop.f32.mrb[115].mxu0 }
 0x391   : > { %v5572_v15 = vadd.f32 %v5571_v24, %v5570_v3 }
 0x395   : > { %v5573_v2 = vpop.f32.mrb[116].mxu0 }
 0x396   : > { %v5574_v7 = vpop.f32.mrb[117].mxu0 }
 0x397   : > { %v5575_v20 = vadd.f32 %v5574_v7, %v5573_v2  ;;  %v5576_v42 = vpop.f32.mrb[118].mxu0  ;;  %v2451_v2 = vand.u32 3, %v2446_v41 }
 0x398   : > { %v5577_v45 = vpop.f32.mrb[119].mxu0 }
 0x399   : > { %v5578_v10 = vadd.f32 %v5577_v45, %v5576_v42  ;;  %vm2459_vm0 = vcmp.eq.s32.totalorder %v2451_v2, 0 }
 0x39d   : > { %v5579_v27 = vpop.f32.mrb[120].mxu0 }
 0x39e   : > { %v5580_v16 = vpop.f32.mrb[121].mxu0 }
 0x39f   : > { %v5581_v1 = vadd.f32 %v5580_v16, %v5579_v27  ;;  %v5582_v0 = vpop.f32.mrb[122].mxu0 }
 0x3a0   : > { %v5583_v47 = vpop.f32.mrb[123].mxu0 }
 0x3a1   : > { %v5584_v38 = vadd.f32 %v5583_v47, %v5582_v0  ;;  %v6732_v0 = vmov 0.0  }
 0x3a2   : > { %v7876_v47 = vsel %vm2459_vm0, -1e+30, %v6732_v0 }
 0x3a3   : > { %v2847_v18 = vadd.f32 %v5569_v26, %v7876_v47 }
 0x3a5   : > { %v5585_v14 = vpop.f32.mrb[124].mxu0 }
 0x3a6   : > { %v5586_v43 = vpop.f32.mrb[125].mxu0 }
 0x3a7   : > { %v7872_v9 = vadd.f32 %v5586_v43, %v5585_v14  ;;  %v5588_v3 = vpop.f32.mrb[126].mxu0  ;;  %v2839_v14 = vadd.f32 %v5563_v22, %v7876_v47 }
 0x3a8   : > { %v5589_v24 = vpop.f32.mrb[127].mxu0 }
 0x3a9   : > { %v7874_v12 = vadd.f32 %v5589_v24, %v5588_v3  ;;  %v2850_v24 = vadd.f32 %v5572_v15, %v7876_v47 }
 0x3ad   : > { %v5591_v7 = vpop.f32.mrb[128].mxu0 }
 0x3ae   : > { %v5592_v42 = vpop.f32.mrb[129].mxu0 }
 0x3af   : > { %v5593_v45 = vadd.f32 %v5592_v42, %v5591_v7  ;;  %v5594_v27 = vpop.f32.mrb[130].mxu0 }
 0x3b0   : > { %v5595_v16 = vpop.f32.mrb[131].mxu0 }
 0x3b1   : > { %v5596_v40 = vadd.f32 %v5595_v16, %v5594_v27  ;;  %v2842_v27 = vadd.f32 %v5566_v54, %v7876_v47 }
 0x3b3   : > { %v5971_v21 = vpop.f32.mrb[132].mxu1 }
 0x3b4   : > { %v7880_v43 = vadd.f32 %v5971_v21, %v2847_v18  ;;  %v2967_v41 = vpop.f32.mrb[133].mxu1 }
 0x3b5   : > { %v5597_v3 = vpop.f32.mrb[132].mxu0  ;;  %v7883_v2 = vadd.f32 %v2967_v41, %v2839_v14  ;;  %v5972_v42 = vpop.f32.mrb[134].mxu1 }
 0x3b6   : > { %v5598_v7 = vpop.f32.mrb[133].mxu0  ;;  %v7888_v0 = vadd.f32 %v5972_v42, %v2850_v24  ;;  %v2970_v51 = vpop.f32.mrb[135].mxu1  ;;  %v3069_v18 = vsel %vm3062_vm15, %v7880_v43, -inf  ;;  %v2855_v24 = vadd.f32 %v5575_v20, %v7876_v47 }
 0x3b7   : > { %v7886_v16 = vadd.f32 %v5598_v7, %v5597_v3  ;;  %v5600_v26 = vpop.f32.mrb[134].mxu0  ;;  %v7892_v21 = vadd.f32 %v2970_v51, %v2842_v27  ;;  %3070 = vmax.xlane.f32.xlu1 %v3069_v18  ;;  %v3063_v15 = vsel %vm3062_vm15, %v7883_v2, -inf  ;;  %v2863_v3 = vadd.f32 %v5581_v1, %v7876_v47 }
 0x3b8   : > { %v5601_v22 = vpop.f32.mrb[135].mxu0  ;;  %3064 = vmax.xlane.f32.xlu0 %v3063_v15  ;;  %v3072_v54 = vsel %vm3062_vm15, %v7888_v0, -inf  ;;  %v2858_v1 = vadd.f32 %v5578_v10, %v7876_v47 }
 0x3b9   : > { %v7896_v14 = vadd.f32 %v5601_v22, %v5600_v26  ;;  %v3066_v51 = vsel %vm3062_vm15, %v7892_v21, -inf  ;;  %v2866_v26 = vadd.f32 %v5584_v38, %v7876_v47 }
 0x3bb   : > { %3073 = vmax.xlane.f32.xlu1 %v3072_v54  ;;  %v5975_v41 = vpop.f32.mrb[136].mxu1 }
 0x3bc   : > { %v7904_v7 = vadd.f32 %v5975_v41, %v2863_v3  ;;  %v2983_v27 = vpop.f32.mrb[137].mxu1  ;;  %3067 = vmax.xlane.f32.xlu0 %v3066_v51 }
 0x3bd   : > { %v5603_v42 = vpop.f32.mrb[136].mxu0  ;;  %v7907_v18 = vadd.f32 %v2983_v27, %v2855_v24  ;;  %v5976_v15 = vpop.f32.mrb[138].mxu1  ;;  %v2879_v24 = vadd.f32 %v5593_v45, %v7876_v47  ;;  %v2874_v45 = vadd.f32 %v7874_v12, %v7876_v47 }
 0x3be   : > { %v5604_v22 = vpop.f32.mrb[137].mxu0  ;;  %v7910_v39 = vadd.f32 %v5976_v15, %v2866_v26  ;;  %v2986_v62 = vpop.f32.mrb[139].mxu1  ;;  %v2882_v15 = vadd.f32 %v5596_v40, %v7876_v47 }
 0x3bf   : > { %v5605_v54 = vadd.f32 %v5604_v22, %v5603_v42  ;;  %v5606_v20 = vpop.f32.mrb[138].mxu0  ;;  %v7912_v4 = vadd.f32 %v2986_v62, %v2858_v1  ;;  %v3075_v41 = vsel %vm3062_vm15, %v7907_v18, -inf  ;;  %v2871_v42 = vadd.f32 %v7872_v9, %v7876_v47 }
 0x3c0   : > { %v5607_v3 = vpop.f32.mrb[139].mxu0  ;;  %3076 = vmax.xlane.f32.xlu0 %v3075_v41  ;;  %v3081_v62 = vsel %vm3062_vm15, %v7904_v7, -inf  ;;  %v3084_v9 = vsel %vm3062_vm15, %v7910_v39, -inf }
 0x3c1   : > { %v5608_v51 = vadd.f32 %v5607_v3, %v5606_v20  ;;  %v3078_v38 = vsel %vm3062_vm15, %v7912_v4, -inf }
 0x3c2   : > { %3079 = vmax.xlane.f32.xlu1 %v3078_v38 }
 0x3c3   : > { %v5979_v10 = vpop.f32.mrb[140].mxu1 }
 0x3c4   : > { %v7923_v27 = vadd.f32 %v5979_v10, %v2879_v24  ;;  %v2999_v22 = vpop.f32.mrb[141].mxu1  ;;  %3082 = vmax.xlane.f32.xlu0 %v3081_v62 }
 0x3c5   : > { %v5609_v26 = vpop.f32.mrb[140].mxu0  ;;  %v7926_v1 = vadd.f32 %v2999_v22, %v2871_v42  ;;  %v5980_v3 = vpop.f32.mrb[142].mxu1  ;;  %v2895_v22 = vadd.f32 %v5605_v54, %v7876_v47  ;;  %v2890_v54 = vadd.f32 %v7896_v14, %v7876_v47 }
 0x3c6   : > { %v5610_v20 = vpop.f32.mrb[141].mxu0  ;;  %v7932_v38 = vadd.f32 %v5980_v3, %v2882_v15  ;;  %v3002_v10 = vpop.f32.mrb[143].mxu1  ;;  %3085 = vmax.xlane.f32.xlu1 %v3084_v9  ;;  %v2887_v15 = vadd.f32 %v7886_v16, %v7876_v47 }
 0x3c7   : > { %v5611_v41 = vadd.f32 %v5610_v20, %v5609_v26  ;;  %v5612_v24 = vpop.f32.mrb[142].mxu0  ;;  %v7934_v17 = vadd.f32 %v3002_v10, %v2874_v45  ;;  %v3087_v40 = vsel %vm3062_vm15, %v7926_v1, -inf  ;;  %v3093_v20 = vsel %vm3062_vm15, %v7923_v27, -inf }
 0x3c8   : > { %v5613_v62 = vpop.f32.mrb[143].mxu0  ;;  %3088 = vmax.xlane.f32.xlu0 %v3087_v40  ;;  %v3096_v16 = vsel %vm3062_vm15, %v7932_v38, -inf }
 0x3c9   : > { %v5614_v42 = vadd.f32 %v5613_v62, %v5612_v24  ;;  %v3090_v12 = vsel %vm3062_vm15, %v7934_v17, -inf  ;;  %v2898_v24 = vadd.f32 %v5608_v51, %v7876_v47 }
 0x3ca   : > { %3091 = vmax.xlane.f32.xlu1 %v3090_v12 }
 0x3cb   : > { %v5983_v26 = vpop.f32.mrb[144].mxu1 }
 0x3cc   : > { %v7945_v3 = vadd.f32 %v5983_v26, %v2895_v22  ;;  %v3015_v9 = vpop.f32.mrb[145].mxu1  ;;  %3094 = vmax.xlane.f32.xlu0 %v3093_v20 }
 0x3cd   : > { %v5615_v45 = vpop.f32.mrb[144].mxu0  ;;  %v7948_v10 = vadd.f32 %v3015_v9, %v2887_v15  ;;  %v5984_v40 = vpop.f32.mrb[146].mxu1 }
 0x3ce   : > { %v5616_v62 = vpop.f32.mrb[145].mxu0  ;;  %v7954_v34 = vadd.f32 %v5984_v40, %v2898_v24  ;;  %v3018_v26 = vpop.f32.mrb[147].mxu1  ;;  %3097 = vmax.xlane.f32.xlu1 %v3096_v16  ;;  %v2903_v24 = vadd.f32 %v5611_v41, %v7876_v47 }
 0x3cf   : > { %v5617_v12 = vadd.f32 %v5616_v62, %v5615_v45  ;;  %v5618_v22 = vpop.f32.mrb[146].mxu0  ;;  %v7956_v46 = vadd.f32 %v3018_v26, %v2890_v54  ;;  %v3099_v51 = vsel %vm3062_vm15, %v7948_v10, -inf  ;;  %v3105_v62 = vsel %vm3062_vm15, %v7945_v3, -inf }
 0x3d0   : > { %v5619_v20 = vpop.f32.mrb[147].mxu0  ;;  %3100 = vmax.xlane.f32.xlu0 %v3099_v51 }
 0x3d1   : > { %v5620_v15 = vadd.f32 %v5619_v20, %v5618_v22  ;;  %v3102_v14 = vsel %vm3062_vm15, %v7956_v46, -inf  ;;  %v2911_v9 = vadd.f32 %v5617_v12, %v7876_v47  ;;  %v3108_v12 = vsel %vm3062_vm15, %v7954_v34, -inf }
 0x3d2   : > { %3103 = vmax.xlane.f32.xlu1 %v3102_v14  ;;  %v2906_v14 = vadd.f32 %v5614_v42, %v7876_v47 }
 0x3d3   : > { %v5987_v45 = vpop.f32.mrb[148].mxu1  ;;  %v2914_v22 = vadd.f32 %v5620_v15, %v7876_v47 }
 0x3d4   : > { %v7966_v40 = vadd.f32 %v5987_v45, %v2911_v9  ;;  %v3031_v16 = vpop.f32.mrb[149].mxu1  ;;  %3106 = vmax.xlane.f32.xlu0 %v3105_v62 }
 0x3d5   : > { %v5621_v54 = vpop.f32.mrb[148].mxu0  ;;  %v7969_v26 = vadd.f32 %v3031_v16, %v2903_v24  ;;  %v5988_v51 = vpop.f32.mrb[150].mxu1 }
 0x3d6   : > { %v5622_v20 = vpop.f32.mrb[149].mxu0  ;;  %v7974_v11 = vadd.f32 %v5988_v51, %v2914_v22  ;;  %v3034_v9 = vpop.f32.mrb[151].mxu1  ;;  %3109 = vmax.xlane.f32.xlu1 %v3108_v12  ;;  %v3117_v22 = vsel %vm3062_vm15, %v7966_v40, -inf }
 0x3d7   : > { %v5623_v41 = vadd.f32 %v5622_v20, %v5621_v54  ;;  %v5624_v61 = vpop.f32.mrb[150].mxu0  ;;  %v7976_v45 = vadd.f32 %v3034_v9, %v2906_v14  ;;  %v3111_v15 = vsel %vm3062_vm15, %v7969_v26, -inf }
 0x3d8   : > { %v5625_v62 = vpop.f32.mrb[151].mxu0  ;;  %3112 = vmax.xlane.f32.xlu0 %v3111_v15 }
 0x3d9   : > { %v5626_v24 = vadd.f32 %v5625_v62, %v5624_v61  ;;  %v3114_v42 = vsel %vm3062_vm15, %v7976_v45, -inf  ;;  %v2919_v54 = vadd.f32 %v5623_v41, %v7876_v47  ;;  %v3120_v62 = vsel %vm3062_vm15, %v7974_v11, -inf }
 0x3da   : > { %3115 = vmax.xlane.f32.xlu1 %v3114_v42 }
 0x3db   : > { %v5991_v16 = vpop.f32.mrb[152].mxu1  ;;  %v2922_v61 = vadd.f32 %v5626_v24, %v7876_v47 }
 0x3dc   : > { %v3047_v51 = vpop.f32.mrb[153].mxu1  ;;  %3118 = vmax.xlane.f32.xlu0 %v3117_v22 }
 0x3dd   : > { %v5627_v20 = vpop.f32.mrb[152].mxu0  ;;  %v7985_v14 = vadd.f32 %v3047_v51, %v2919_v54  ;;  %v5992_v9 = vpop.f32.mrb[154].mxu1 }
 0x3de   : > { %v5628_v12 = vpop.f32.mrb[153].mxu0  ;;  %v3050_v58 = vpop.f32.mrb[155].mxu1  ;;  %3121 = vmax.xlane.f32.xlu1 %v3120_v62 }
 0x3df   : > { %v5629_v15 = vadd.f32 %v5628_v12, %v5627_v20  ;;  %v5630_v42 = vpop.f32.mrb[154].mxu0  ;;  %v7990_v41 = vadd.f32 %v3050_v58, %v2922_v61  ;;  %v3123_v57 = vsel %vm3062_vm15, %v7985_v14, -inf }
 0x3e0   : > { %v5631_v19 = vpop.f32.mrb[155].mxu0  ;;  %3124 = vmax.xlane.f32.xlu0 %v3123_v57  ;;  %v6397_v57 = vld [vmem:[#allocation7 + $0x40] sm:$0xff]  }
 0x3e1   : > { %v2927_v54 = vadd.f32 %v5629_v15, %v7876_v47  ;;  %v5632_v22 = vadd.f32 %v5631_v19, %v5630_v42  ;;  %v3126_v24 = vsel %vm3062_vm15, %v7990_v41, -inf  ;;  %v8006_v19 = vld [vmem:[#allocation7 + $0x80] sm:$0xff]   ;;  %5660 = vmatprep.subr.bf16.mxu0 %v6397_v57 }
 0x3e2   : > { %3127 = vmax.xlane.f32.xlu1 %v3126_v24  ;;  %6019 = vmatprep.subr.bf16.mxu1 %v8006_v19 }
 0x3e3   : > { %v2930_v51 = vadd.f32 %v5632_v22, %v7876_v47  ;;  %v7998_v20 = vadd.f32 %v5991_v16, %v2927_v54 }
 0x3e5   : > { %v3129_v58 = vsel %vm3062_vm15, %v7998_v20, -inf  ;;  %v8002_v12 = vadd.f32 %v5992_v9, %v2930_v51 }
 0x3e6   : > { %3130 = vmax.xlane.f32.xlu0 %v3129_v58 }
 0x3e7   : > { %v3132_v61 = vsel %vm3062_vm15, %v8002_v12, -inf }
 0x3e8   : > { %3133 = vmax.xlane.f32.xlu1 %v3132_v61 }
 0x444   : > { %v3071_v47 = vpop.xlane.xlu1 %3070 }
 0x445   : > { %v3065_v62 = vpop.xlane.xlu0 %3064  ;;  %v3137_v15 = vsub.f32 %v7880_v43, %v3071_v47 }
 0x446   : > { %v3135_v16 = vsub.f32 %v7883_v2, %v3065_v62 }
 0x447   : > { %v3163_v51 = vmul.f32 1.442695, %v3137_v15 }
 0x448   : > { %v3159_v42 = vmul.f32 1.442695, %v3135_v16  ;;  %v3074_v9 = vpop.xlane.xlu1 %3073 }
 0x449   : > { %v3138_v54 = vsub.f32 %v7888_v0, %v3074_v9  ;;  %v3068_v22 = vpop.xlane.xlu0 %3067 }
 0x44a   : > { %v3136_v24 = vsub.f32 %v7892_v21, %v3068_v22  ;;  %6432 = vpow2.f32 %v3159_v42 }
 0x44b   : > { %v3165_v58 = vmul.f32 1.442695, %v3138_v54 }
 0x44c   : > { %v3161_v61 = vmul.f32 1.442695, %v3136_v24 }
 0x44d   : > { %6434 = vpow2.f32 %v3165_v58  ;;  %v3077_v52 = vpop.xlane.xlu0 %3076 }
 0x44e   : > { %6436 = vpow2.f32 %v3161_v61  ;;  %v3139_v57 = vsub.f32 %v7907_v18, %v3077_v52 }
 0x44f   : > { %6438 = vpow2.f32 %v3163_v51  ;;  %v3080_v2 = vpop.xlane.xlu1 %3079 }
 0x450   : > { %v3167_v62 = vmul.f32 1.442695, %v3139_v57  ;;  %v3140_v43 = vsub.f32 %v7912_v4, %v3080_v2  ;;  %v6398_v2 = vld [vmem:[#allocation7] sm:$0xff]  }
 0x451   : > { %v3083_v47 = vpop.xlane.xlu0 %3082 }
 0x452   : > { %v3169_v16 = vmul.f32 1.442695, %v3140_v43  ;;  %v3141_v0 = vsub.f32 %v7904_v7, %v3083_v47  ;;  %6440 = vpow2.f32 %v3167_v62  ;;  %v6396_v47 = vld [vmem:[#allocation7 + $0x88] sm:$0xff]  }
 0x453   : > { %v3086_v21 = vpop.xlane.xlu1 %3085 }
 0x454   : > { %6442 = vpow2.f32 %v3169_v16  ;;  %v3171_v15 = vmul.f32 1.442695, %v3141_v0  ;;  %v3142_v42 = vsub.f32 %v7910_v39, %v3086_v21  ;;  %v6433_v54 = vpop.eup %6432 }
 0x455   : > { %v3089_v9 = vpop.xlane.xlu0 %3088 }
 0x456   : > { %v3173_v22 = vmul.f32 1.442695, %v3142_v42  ;;  %v3143_v52 = vsub.f32 %v7926_v1, %v3089_v9  ;;  %6444 = vpow2.f32 %v3171_v15  ;;  %v6399_v1 = vld [vmem:[#allocation7 + $0x48] sm:$0xff]  }
 0x457   : > { %v6435_v18 = vpop.eup %6434  ;;  %v3092_v24 = vpop.xlane.xlu1 %3091 }
 0x458   : > { %v6437_v51 = vpop.eup %6436  ;;  %6446 = vpow2.f32 %v3173_v22  ;;  %v3175_v4 = vmul.f32 1.442695, %v3143_v52  ;;  %v3144_v58 = vsub.f32 %v7934_v17, %v3092_v24  ;;  %v6401_v52 = vld [vmem:[#allocation7 + $0x50] sm:$0xff]  }
 0x459   : > { %v6439_v7 = vpop.eup %6438  ;;  %v8019_v61 = vpack.c.bf16 %v6437_v51, %v6433_v54  ;;  %v3095_v57 = vpop.xlane.xlu0 %3094  ;;  %v6400_v54 = vld [vmem:[#allocation7 + $0x8] sm:$0xff]  }
 0x45a   : > { %v8021_v62 = vpack.c.bf16 %v6435_v18, %v6439_v7  ;;  %v3177_v39 = vmul.f32 1.442695, %v3144_v58  ;;  %v3145_v43 = vsub.f32 %v7923_v27, %v3095_v57  ;;  %6448 = vpow2.f32 %v3175_v4  ;;  %v6402_v7 = vld [vmem:[#allocation7 + $0x10] sm:$0xff]  }
 0x45b   : > { %v3098_v16 = vpop.xlane.xlu1 %3097  ;;  %5352 = vmatmul.mubr.msk.bf16.vlgmr.msra.gmra.mrb[156].mxu1 %vm3062_vm15, %v8019_v61  ;;  %5995 = vmatprep.mubr.msk.bf16.mxu0 %vm3062_vm15, %v8019_v61 }
 0x45c   : > { %6450 = vpow2.f32 %v3177_v39  ;;  %v3179_v17 = vmul.f32 1.442695, %v3145_v43  ;;  %v3146_v0 = vsub.f32 %v7932_v38, %v3098_v16  ;;  %5996 = vmatmul.mubr.msk.bf16.vlgmr.msra.gmra.mrb[156].mxu0 %vm3062_vm15, %v8021_v62  ;;  %3322 = vmatprep.mubr.bf16.mxu1 %v8869_v63  ;;  %v6441_v27 = vpop.eup %6440 }
 0x45d   : > { %v3101_v21 = vpop.xlane.xlu0 %3100  ;;  %6020 = vmatpush3.bf16.msra.mxu1 %v8006_v19  ;;  %5661 = vmatpush3.bf16.msra.mxu0 %v6398_v2 }
 0x45e   : > { %v6443_v15 = vpop.eup %6442  ;;  %v3181_v42 = vmul.f32 1.442695, %v3146_v0  ;;  %v3147_v9 = vsub.f32 %v7948_v10, %v3101_v21  ;;  %6021 = vmatprep.subr.bf16.mxu1 %v6396_v47  ;;  %5662 = vmatprep.subr.bf16.mxu0 %v6399_v1  ;;  %6452 = vpow2.f32 %v3179_v17  ;;  %v6404_v0 = vld [vmem:[#allocation7 + $0x18] sm:$0xff]  }
 0x45f   : > { %v3104_v22 = vpop.xlane.xlu1 %3103  ;;  %v8034_v38 = vpack.c.bf16 %v6443_v15, %v6441_v27  ;;  %v6405_v15 = vld [vmem:[#allocation7 + $0x60] sm:$0xff]  }
 0x460   : > { %6454 = vpow2.f32 %v3181_v42  ;;  %v3183_v18 = vmul.f32 1.442695, %v3147_v9  ;;  %v3148_v24 = vsub.f32 %v7956_v46, %v3104_v22  ;;  %v6445_v51 = vpop.eup %6444  ;;  %v6403_v46 = vld [vmem:[#allocation7 + $0x58] sm:$0xff]  }
 0x461   : > { %5999 = vmatprep.mubr.msk.bf16.mxu0 %vm3062_vm15, %v8034_v38  ;;  %v3107_v19 = vpop.xlane.xlu0 %3106  ;;  %6022 = vmatpush3.bf16.msra.mxu1 %v6396_v47 }
 0x462   : > { %v6447_v4 = vpop.eup %6446  ;;  %v3185_v10 = vmul.f32 1.442695, %v3148_v24  ;;  %v3149_v58 = vsub.f32 %v7945_v3, %v3107_v19  ;;  %5663 = vmatpush3.bf16.msra.mxu0 %v6400_v54  ;;  %6456 = vpow2.f32 %v3183_v18  ;;  %v6406_v18 = vld [vmem:[#allocation7 + $0x20] sm:$0xff]  }
 0x463   : > { %v3110_v57 = vpop.xlane.xlu1 %3109  ;;  %5353 = vmatmul.mubr.msk.bf16.gmra.mrb[160].mxu1 %vm3062_vm15, %v8021_v62  ;;  %v8042_v2 = vpack.c.bf16 %v6447_v4, %v6445_v51  ;;  %5664 = vmatprep.subr.bf16.mxu0 %v6401_v52 }
 0x464   : > { %6458 = vpow2.f32 %v3185_v10  ;;  %v3187_v39 = vmul.f32 1.442695, %v3149_v58  ;;  %v3150_v43 = vsub.f32 %v7954_v34, %v3110_v57  ;;  %3332 = vmatprep.mubr.bf16.mxu1 %v8869_v63  ;;  %v6449_v47 = vpop.eup %6448 }
 0x465   : > { %6000 = vmatmul.mubr.msk.bf16.gmra.mrb[160].mxu0 %vm3062_vm15, %v8042_v2  ;;  %v3113_v3 = vpop.xlane.xlu0 %3112 }
 0x466   : > { %v6451_v1 = vpop.eup %6450  ;;  %v3189_v16 = vmul.f32 1.442695, %v3150_v43  ;;  %v3151_v17 = vsub.f32 %v7969_v26, %v3113_v3  ;;  %5665 = vmatpush3.bf16.msra.mxu0 %v6402_v7  ;;  %6460 = vpow2.f32 %v3187_v39 }
 0x467   : > { %v3116_v27 = vpop.xlane.xlu1 %3115  ;;  %v8049_v21 = vpack.c.bf16 %v6451_v1, %v6449_v47  ;;  %5666 = vmatprep.subr.bf16.mxu0 %v6403_v46  ;;  %v6408_v46 = vld [vmem:[#allocation7 + $0x28] sm:$0xff]  }
 0x468   : > { %6462 = vpow2.f32 %v3189_v16  ;;  %v3191_v34 = vmul.f32 1.442695, %v3151_v17  ;;  %v3152_v42 = vsub.f32 %v7976_v45, %v3116_v27  ;;  %v6453_v9 = vpop.eup %6452  ;;  %v6407_v45 = vld [vmem:[#allocation7 + $0x68] sm:$0xff]  }
 0x469   : > { %6003 = vmatprep.mubr.msk.bf16.mxu0 %vm3062_vm15, %v8049_v21  ;;  %v3119_v54 = vpop.xlane.xlu0 %3118 }
 0x46a   : > { %v6455_v22 = vpop.eup %6454  ;;  %v3193_v52 = vmul.f32 1.442695, %v3152_v42  ;;  %v3153_v26 = vsub.f32 %v7966_v40, %v3119_v54  ;;  %5667 = vmatpush3.bf16.msra.mxu0 %v6404_v0  ;;  %6464 = vpow2.f32 %v3191_v34 }
 0x46b   : > { %v3122_v24 = vpop.xlane.xlu1 %3121  ;;  %5354 = vmatmul.mubr.msk.bf16.gmra.mrb[164].mxu1 %vm3062_vm15, %v8034_v38  ;;  %v8057_v51 = vpack.c.bf16 %v6455_v22, %v6453_v9  ;;  %5668 = vmatprep.subr.bf16.mxu0 %v6405_v15 }
 0x46c   : > { %6466 = vpow2.f32 %v3193_v52  ;;  %v3195_v19 = vmul.f32 1.442695, %v3153_v26  ;;  %v3154_v4 = vsub.f32 %v7974_v11, %v3122_v24  ;;  %3342 = vmatprep.mubr.bf16.mxu1 %v8869_v63  ;;  %v6457_v10 = vpop.eup %6456 }
 0x46d   : > { %6004 = vmatmul.mubr.msk.bf16.gmra.mrb[164].mxu0 %vm3062_vm15, %v8057_v51  ;;  %v3125_v40 = vpop.xlane.xlu0 %3124 }
 0x46e   : > { %v6459_v58 = vpop.eup %6458  ;;  %v3197_v7 = vmul.f32 1.442695, %v3154_v4  ;;  %v3155_v57 = vsub.f32 %v7985_v14, %v3125_v40  ;;  %5669 = vmatpush3.bf16.msra.mxu0 %v6406_v18  ;;  %6468 = vpow2.f32 %v3195_v19  ;;  %v6409_v4 = vld [vmem:[#allocation7 + $0x70] sm:$0xff]   ;;  %v6411_v40 = vld [vmem:[#allocation7 + $0x78] sm:$0xff]  }
 0x46f   : > { %v3128_v39 = vpop.xlane.xlu1 %3127  ;;  %v8064_v43 = vpack.c.bf16 %v6459_v58, %v6457_v10  ;;  %5670 = vmatprep.subr.bf16.mxu0 %v6407_v45  ;;  %v6410_v10 = vld [vmem:[#allocation7 + $0x30] sm:$0xff]   ;;  %v6412_v58 = vld [vmem:[#allocation7 + $0x38] sm:$0xff]  }
 0x470   : > { %6470 = vpow2.f32 %v3197_v7  ;;  %v3199_v11 = vmul.f32 1.442695, %v3155_v57  ;;  %v3156_v47 = vsub.f32 %v7990_v41, %v3128_v39  ;;  %v6461_v3 = vpop.eup %6460  ;;  %v6413_v7 = vld [vmem:[#allocation9] sm:$0x1f]  }
 0x471   : > { %6007 = vmatprep.mubr.msk.bf16.mxu0 %vm3062_vm15, %v8064_v43  ;;  %v8118_v57 = vand.u32 %v6413_v7, %v7866_v56 }
 0x472   : > { %v6463_v1 = vpop.eup %6462  ;;  %v3201_v16 = vmul.f32 1.442695, %v3156_v47  ;;  %5671 = vmatpush3.bf16.msra.mxu0 %v6408_v46  ;;  %6472 = vpow2.f32 %v3199_v11  ;;  %v8919_v46 = vlaneseq  ;;  %v1834_v11 = vld [vmem:[%s8799_s6] sm:$0x7] }
 0x473   : > { %v3131_v17 = vpop.xlane.xlu0 %3130  ;;  %5355 = vmatmul.mubr.msk.bf16.gmra.mrb[168].mxu1 %vm3062_vm15, %v8042_v2  ;;  %v8072_v0 = vpack.c.bf16 %v6463_v1, %v6461_v3  ;;  %5672 = vmatprep.subr.bf16.mxu0 %v6409_v4 }
 0x474   : > { %v3157_v14 = vsub.f32 %v7998_v20, %v3131_v17  ;;  %6474 = vpow2.f32 %v3201_v16  ;;  %3352 = vmatprep.mubr.bf16.mxu1 %v8869_v63  ;;  %v6465_v41 = vpop.eup %6464  ;;  %6047 = vmatprep.subr.bf16.mxu1 %v8118_v57  ;;  %v1837_v39 = vshrl.u32 %v8919_v46, 7  ;;  %v8127_v16 = vld [vmem:[#allocation10] sm:$0xff]  }
 0x475   : > { %v3134_v27 = vpop.xlane.xlu1 %3133  ;;  %6008 = vmatmul.mubr.msk.bf16.gmra.mrb[168].mxu0 %vm3062_vm15, %v8072_v0 }
 0x476   : > { %v3203_v15 = vmul.f32 1.442695, %v3157_v14  ;;  %v3158_v34 = vsub.f32 %v8002_v12, %v3134_v27  ;;  %v6467_v42 = vpop.eup %6466  ;;  %5673 = vmatpush3.bf16.msra.mxu0 %v6410_v10  ;;  %v1842_v47 = vsub.s32 1, %v1837_v39  ;;  %v1846_v3 = vsub.s32 2, %v1837_v39 }
 0x477   : > { %v8078_v54 = vpack.c.bf16 %v6467_v42, %v6465_v41  ;;  %5674 = vmatprep.subr.bf16.mxu0 %v6411_v40 }
 0x478   : > { %v3205_v9 = vmul.f32 1.442695, %v3158_v34  ;;  %6476 = vpow2.f32 %v3203_v15  ;;  %v6469_v20 = vpop.eup %6468  ;;  %v8129_v17 = vrot.slane %v1834_v11, %v1842_v47  ;;  %v8131_v14 = vrot.slane %v1834_v11, %v1846_v3 }
 0x479   : > { %6011 = vmatprep.mubr.msk.bf16.mxu0 %vm3062_vm15, %v8078_v54 }
 0x47a   : > { %6478 = vpow2.f32 %v3205_v9  ;;  %v6471_v22 = vpop.eup %6470  ;;  %5675 = vmatpush3.bf16.msra.mxu0 %v6412_v58  ;;  %v1984_v27 = vadd.f32 %v7721_v13, %v8129_v17  ;;  %v2143_v41 = vadd.f32 %v7723_v37, %v8131_v14  ;;  %v2135_v42 = vadd.f32 %v7728_v49, %v8131_v14 }
 0x47b   : > { %5356 = vmatmul.mubr.msk.bf16.gmra.mrb[172].mxu1 %vm3062_vm15, %v8049_v21  ;;  %v8084_v52 = vpack.c.bf16 %v6471_v22, %v6469_v20  ;;  %6073 = vmatprep.subr.bf16.mxu0 %v8127_v16  ;;  %v1988_v9 = vadd.f32 %v7731_v29, %v8129_v17  ;;  %v2146_v20 = vadd.f32 %v7733_v50, %v8131_v14 }
 0x47c   : > { %3362 = vmatprep.mubr.bf16.mxu1 %v8869_v63  ;;  %v6473_v12 = vpop.eup %6472  ;;  %v2302_v13 = vmul.f32 0.01, %v1984_v27  ;;  %v2309_v22 = vmul.f32 0.01, %v2143_v41  ;;  %vm2230_vm2 = vcmp.gt.f32.partialorder %v1984_v27, 0.0  ;;  %vm2237_vm3 = vcmp.gt.f32.partialorder %v2143_v41, 0.0 }
 0x47d   : > { %6012 = vmatmul.mubr.msk.bf16.gmra.mrb[172].mxu0 %vm3062_vm15, %v8084_v52  ;;  %v2312_v49 = vmul.f32 0.01, %v2146_v20  ;;  %v1994_v50 = vadd.f32 %v7739_v32, %v8129_v17  ;;  %vm2231_vm6 = vcmp.gt.f32.partialorder %v2135_v42, 0.0  ;;  %vm2233_vm7 = vcmp.gt.f32.partialorder %v1988_v9, 0.0 }
 0x47e   : > { %v6475_v26 = vpop.eup %6474  ;;  %v8162_v10 = vsel %vm2237_vm3, %v2143_v41, %v2309_v22  ;;  %vm2240_vm8 = vcmp.gt.f32.partialorder %v2146_v20, 0.0  ;;  %v1998_v40 = vadd.f32 %v7747_v53, %v8129_v17  ;;  %v2162_v7 = vadd.f32 %v7749_v30, %v8131_v14 }
 0x47f   : > { %v8089_v18 = vpack.c.bf16 %v6475_v26, %v6473_v12  ;;  %v2303_v12 = vmul.f32 0.01, %v2135_v42  ;;  %vm2236_vm11 = vcmp.gt.f32.partialorder %v1994_v50, 0.0 }
 0x480   : > { %v2311_v3 = vmul.f32 0.01, %v1998_v40  ;;  %v2324_v30 = vmul.f32 0.01, %v2162_v7  ;;  %vm2239_vm0 = vcmp.gt.f32.partialorder %v1998_v40, 0.0 }
 0x481   : > { %6015 = vmatprep.mubr.msk.bf16.mxu0 %vm3062_vm15, %v8089_v18 }
 0x482   : > { %v6477_v24 = vpop.eup %6476 }
 0x483   : > { %5357 = vmatmul.mubr.msk.bf16.gmra.mrb[176].mxu1 %vm3062_vm15, %v8057_v51 }
 0x484   : > { %v6479_v45 = vpop.eup %6478  ;;  %3372 = vmatprep.mubr.bf16.mxu1 %v8869_v63 }
 0x485   : > { %v8095_v19 = vpack.c.bf16 %v6479_v45, %v6477_v24  ;;  %v2159_v45 = vadd.f32 %v7741_v23, %v8131_v14  ;;  %v8172_v23 = vsel %vm2231_vm6, %v2135_v42, %v2303_v12 }
 0x487   : > { %6016 = vmatmul.mubr.msk.bf16.gmra.mrb[176].mxu0 %vm3062_vm15, %v8095_v19  ;;  %vm2249_vm14 = vcmp.gt.f32.partialorder %v2159_v45, 0.0 }
 0x48b   : > { %5358 = vmatmul.mubr.msk.bf16.gmra.mrb[180].mxu1 %vm3062_vm15, %v8064_v43 }
 0x48c   : > { %3382 = vmatprep.mubr.bf16.mxu1 %v8869_v63 }
 0x493   : > { %5359 = vmatmul.mubr.msk.bf16.gmra.mrb[184].mxu1 %vm3062_vm15, %v8072_v0 }
 0x494   : > { %3392 = vmatprep.mubr.bf16.mxu1 %v8869_v63 }
 0x49b   : > { %5360 = vmatmul.mubr.msk.bf16.gmra.mrb[188].mxu1 %vm3062_vm15, %v8078_v54 }
 0x49c   : > { %3402 = vmatprep.mubr.bf16.mxu1 %v8869_v63 }
 0x4a3   : > { %5361 = vmatmul.mubr.msk.bf16.gmra.mrb[192].mxu1 %vm3062_vm15, %v8084_v52 }
 0x4a4   : > { %3412 = vmatprep.mubr.bf16.mxu1 %v8869_v63 }
 0x4ab   : > { %5362 = vmatmul.mubr.msk.bf16.gmra.mrb[196].mxu1 %vm3062_vm15, %v8089_v18 }
 0x4ac   : > { %3422 = vmatprep.mubr.bf16.mxu1 %v8869_v63  ;;  %v1838_v63 = vsub.s32 0, %v1837_v39  ;;  %v2154_v39 = vadd.f32 %v7751_v6, %v8131_v14 }
 0x4ae   : > { %v8125_v1 = vrot.slane %v1834_v11, %v1838_v63  ;;  %v8178_v63 = vsel %vm2240_vm8, %v2146_v20, %v2312_v49  ;;  %v2318_v41 = vmul.f32 0.01, %v2154_v39  ;;  %vm2246_vm3 = vcmp.gt.f32.partialorder %v2154_v39, 0.0 }
 0x4b0   : > { %v1982_v56 = vadd.f32 %v7718_v44, %v8125_v1  ;;  %v1986_v15 = vadd.f32 %v7726_v36, %v8125_v1  ;;  %v2138_v44 = vadd.f32 %v7735_v28, %v8131_v14  ;;  %v2305_v36 = vmul.f32 0.01, %v1988_v9 }
 0x4b1   : > { %v1992_v29 = vadd.f32 %v7737_v25, %v8125_v1  ;;  %v8156_v28 = vsel %vm2230_vm2, %v1984_v27, %v2302_v13  ;;  %v1996_v4 = vadd.f32 %v7743_v5, %v8125_v1  ;;  %v2151_v25 = vadd.f32 %v7745_v48, %v8131_v14  ;;  %v8920_v13 = vld [vmem:[#allocation28_spill] sm:$0xff] }
 0x4b2   : > { %v2301_v34 = vmul.f32 0.01, %v1982_v56  ;;  %vm2229_vm1 = vcmp.gt.f32.partialorder %v1982_v56, 0.0  ;;  %v2304_v37 = vmul.f32 0.01, %v1986_v15  ;;  %vm2232_vm5 = vcmp.gt.f32.partialorder %v1986_v15, 0.0 }
 0x4b3   : > { %5363 = vmatmul.mubr.msk.bf16.gmra.mrb[200].mxu1 %vm3062_vm15, %v8095_v19  ;;  %v2306_v24 = vmul.f32 0.01, %v2138_v44  ;;  %vm2234_vm9 = vcmp.gt.f32.partialorder %v2138_v44, 0.0  ;;  %v2307_v58 = vmul.f32 0.01, %v1992_v29  ;;  %v8174_v46 = vsel %vm2233_vm7, %v1988_v9, %v2305_v36 }
 0x4b4   : > { %v8150_v26 = vsel %vm2229_vm1, %v1982_v56, %v2301_v34  ;;  %v8168_v32 = vsel %vm2232_vm5, %v1986_v15, %v2304_v37  ;;  %v2308_v5 = vmul.f32 0.01, %v1994_v50  ;;  %vm2235_vm10 = vcmp.gt.f32.partialorder %v1992_v29, 0.0 }
 0x4b5   : > { %v2321_v48 = vmul.f32 0.01, %v2159_v45  ;;  %v2310_v53 = vmul.f32 0.01, %v1996_v4  ;;  %v8180_v11 = vsel %vm2234_vm9, %v2138_v44, %v2306_v24  ;;  %v2315_v47 = vmul.f32 0.01, %v2151_v25 }
 0x4b6   : > { %vm2238_vm12 = vcmp.gt.f32.partialorder %v1996_v4, 0.0  ;;  %v2002_v56 = vadd.f32 %v7753_v31, %v8125_v1  ;;  %v2004_v27 = vadd.f32 %v7755_v59, %v8129_v17  ;;  %v8186_v6 = vsel %vm2235_vm10, %v1992_v29, %v2307_v58 }
 0x4b7   : > { %v2175_v15 = vadd.f32 %v7757_v33, %v8131_v14  ;;  %v2006_v34 = vadd.f32 %v7759_v60, %v8125_v1  ;;  %v8192_v42 = vsel %vm2236_vm11, %v1994_v50, %v2308_v5  ;;  %v8194_v9 = vsel %vm2238_vm12, %v1996_v4, %v2310_v53 }
 0x4b8   : > { %v8196_v20 = vsel %vm2249_vm14, %v2159_v45, %v2321_v48  ;;  %vm2243_vm1 = vcmp.gt.f32.partialorder %v2151_v25, 0.0  ;;  %v2167_v31 = vadd.f32 %v7761_v55, %v8131_v14  ;;  %v2008_v59 = vadd.f32 %v7763_v8, %v8129_v17 }
 0x4b9   : > { %vm2252_vm2 = vcmp.gt.f32.partialorder %v2162_v7, 0.0  ;;  %v2313_v33 = vmul.f32 0.01, %v2002_v56  ;;  %v2314_v44 = vmul.f32 0.01, %v2004_v27  ;;  %v8204_v60 = vadd.f32 %v7765_v35, %v8131_v14 }
 0x4ba   : > { %v8208_v22 = vadd.f32 %v8920_v13, %v8131_v14  ;;  %v2333_v37 = vmul.f32 0.01, %v2175_v15  ;;  %v2316_v12 = vmul.f32 0.01, %v2006_v34  ;;  %v8210_v36 = vsel %vm2239_vm0, %v1998_v40, %v2311_v3 }
 0x4bb   : > { %vm2241_vm5 = vcmp.gt.f32.partialorder %v2002_v56, 0.0  ;;  %v8212_v55 = vsel %vm2243_vm1, %v2151_v25, %v2315_v47  ;;  %vm2242_vm6 = vcmp.gt.f32.partialorder %v2004_v27, 0.0  ;;  %vm2244_vm7 = vcmp.gt.f32.partialorder %v2006_v34, 0.0 }
 0x4bc   : > { %vm2261_vm8 = vcmp.gt.f32.partialorder %v2175_v15, 0.0  ;;  %v2327_v8 = vmul.f32 0.01, %v2167_v31  ;;  %v2317_v49 = vmul.f32 0.01, %v2008_v59  ;;  %v8215_v24 = vsel %vm2252_vm2, %v2162_v7, %v2324_v30 }
 0x4bd   : > { %v8218_v35 = vsel %vm2246_vm3, %v2154_v39, %v2318_v41  ;;  %v2336_v29 = vmul.f32 0.01, %v8204_v60  ;;  %v2330_v50 = vmul.f32 0.01, %v8208_v22  ;;  %v8222_v4 = vsel %vm2241_vm5, %v2002_v56, %v2313_v33  ;;  %v8921_v39 = vld [vmem:[#allocation29_spill] sm:$0xff] }
 0x4be   : > { %vm2245_vm9 = vcmp.gt.f32.partialorder %v2008_v59, 0.0  ;;  %v8225_v5 = vsel %vm2242_vm6, %v2004_v27, %v2314_v44  ;;  %v8227_v48 = vsel %vm2244_vm7, %v2006_v34, %v2316_v12  ;;  %v8229_v7 = vsel %vm2261_vm8, %v2175_v15, %v2333_v37  ;;  %v8922_v15 = vld [vmem:[#allocation30_spill] sm:$0xff]  ;;  %v8924_v37 = vld [vmem:[#allocation32_spill] sm:$0xff] }
 0x4bf   : > { %v2012_v53 = vadd.f32 %v8921_v39, %v8125_v1  ;;  %vm2255_vm10 = vcmp.gt.f32.partialorder %v2167_v31, 0.0  ;;  %v8238_v34 = vsel %vm2245_vm9, %v2008_v59, %v2317_v49  ;;  %vm2264_vm11 = vcmp.gt.f32.partialorder %v8204_v60, 0.0  ;;  %v8925_v59 = vld [vmem:[#allocation33_spill] sm:$0xff] }
 0x4c0   : > { %v8243_v44 = vadd.f32 %v8922_v15, %v8129_v17  ;;  %v2016_v12 = vadd.f32 %v8924_v37, %v8125_v1  ;;  %v8255_v49 = vadd.f32 %v8925_v59, %v8131_v14  ;;  %v8267_v15 = vsel %vm2255_vm10, %v2167_v31, %v2327_v8 }
 0x4c1   : > { %vm2258_vm12 = vcmp.gt.f32.partialorder %v8208_v22, 0.0  ;;  %vm2247_vm14 = vcmp.gt.f32.partialorder %v2012_v53, 0.0 }
 0x4c2   : > { %vm2248_vm0 = vcmp.gt.f32.partialorder %v8243_v44, 0.0  ;;  %vm2250_vm1 = vcmp.gt.f32.partialorder %v2016_v12, 0.0  ;;  %vm2267_vm5 = vcmp.gt.f32.partialorder %v8255_v49, 0.0 }
 0x52e   : > { %v3314_v45 = vpop.f32.mrb[156].mxu1 }
 0x52f   : > { %v3562_v25 = vmul.f32 %v3314_v45, %v8150_v26  ;;  %v3316_v40 = vpop.f32.mrb[157].mxu1  ;;  %v5997_v58 = vpop.f32.mrb[156].mxu0 }
 0x530   : > { %v3563_v47 = vmul.f32 %v3316_v40, %v8156_v28  ;;  %v3570_v3 = vmul.f32 %v5997_v58, %v8162_v10  ;;  %v3318_v30 = vpop.f32.mrb[158].mxu1  ;;  %v3467_v56 = vpop.f32.mrb[157].mxu0  ;;  %v8923_v28 = vld [vmem:[#allocation31_spill] sm:$0xff]  ;;  %v8926_v58 = vld [vmem:[#allocation34_spill] sm:$0xff] }
 0x531   : > { %v3565_v26 = vmul.f32 %v3318_v30, %v8168_v32  ;;  %v3564_v41 = vmul.f32 %v3467_v56, %v8172_v23  ;;  %v3320_v27 = vpop.f32.mrb[159].mxu1  ;;  %v5998_v33 = vpop.f32.mrb[158].mxu0  ;;  %v8247_v10 = vadd.f32 %v8923_v28, %v8131_v14  ;;  %v8260_v39 = vadd.f32 %v8926_v58, %v8129_v17  ;;  %v8927_v30 = vld [vmem:[#allocation35_spill] sm:$0xff]  ;;  %v8928_v28 = vld [vmem:[#allocation36_spill] sm:$0xff] }
 0x532   : > { %v3566_v13 = vmul.f32 %v3320_v27, %v8174_v46  ;;  %v3573_v32 = vmul.f32 %v5998_v33, %v8178_v63  ;;  %v3470_v23 = vpop.f32.mrb[159].mxu0  ;;  %v8264_v46 = vadd.f32 %v8927_v30, %v8131_v14  ;;  %v2319_v27 = vmul.f32 0.01, %v2012_v53 }
 0x533   : > { %v3634_v45 = vpack.c.bf16 %v3565_v26, %v3562_v25  ;;  %v3567_v40 = vmul.f32 %v3470_v23, %v8180_v11  ;;  %v6415_v25 = vld [vmem:[#allocation10 + $0x8] sm:$0xff]   ;;  %v2320_v11 = vmul.f32 0.01, %v8243_v44  ;;  %v2345_v26 = vmul.f32 0.01, %v8247_v10 }
 0x534   : > { %v3635_v63 = vpack.c.bf16 %v3566_v13, %v3563_v47  ;;  %v3639_v56 = vpack.c.bf16 %v3573_v32, %v3570_v3  ;;  %v8274_v23 = vadd.f32 %v8928_v28, %v8131_v14  ;;  %v2322_v47 = vmul.f32 0.01, %v2016_v12  ;;  %v8930_v28 = vld [vmem:[#allocation38_spill] sm:$0xff] }
 0x535   : > { %v3636_v33 = vpack.c.bf16 %v3567_v40, %v3564_v41  ;;  %v2339_v3 = vmul.f32 0.01, %v8255_v49  ;;  %v8282_v41 = vsel %vm2264_vm11, %v8204_v60, %v2336_v29  ;;  %v2323_v13 = vmul.f32 0.01, %v8260_v39 }
 0x536   : > { %v3324_v37 = vpop.f32.mrb[160].mxu1  ;;  %3846 = vmatprep.mubr.bf16.mxu0 %v3635_v63  ;;  %v2348_v32 = vmul.f32 0.01, %v8264_v46  ;;  %v2342_v63 = vmul.f32 0.01, %v8274_v23  ;;  %vm2273_vm2 = vcmp.gt.f32.partialorder %v8247_v10, 0.0 }
 0x537   : > { %v3568_v31 = vmul.f32 %v3324_v37, %v8186_v6  ;;  %v3326_v8 = vpop.f32.mrb[161].mxu1  ;;  %3847 = vmatmul.mubr.bf16.vlgmr.msra.gmra.mrb[180].mxu0 %v3634_v45  ;;  %6023 = vmatprep.mubr.msk.bf16.mxu1 %vm2767_vm13, %v3636_v33  ;;  %v8291_v6 = vsel %vm2258_vm12, %v8208_v22, %v2330_v50  ;;  %vm2251_vm3 = vcmp.gt.f32.partialorder %v8260_v39, 0.0  ;;  %vm2276_vm6 = vcmp.gt.f32.partialorder %v8264_v46, 0.0 }
 0x538   : > { %v3569_v59 = vmul.f32 %v3326_v8, %v8192_v42  ;;  %v3328_v40 = vpop.f32.mrb[162].mxu1  ;;  %v6001_v58 = vpop.f32.mrb[160].mxu0  ;;  %6024 = vmatmul.mubr.msk.bf16.vlgmr.msra.gmra.mrb[204].mxu1 %vm2767_vm13, %v3639_v56  ;;  %6074 = vmatpush3.bf16.msra.mxu0 %v8127_v16  ;;  %v8298_v42 = vsel %vm2247_vm14, %v2012_v53, %v2319_v27  ;;  %v2024_v37 = vadd.f32 %v8930_v28, %v8129_v17  ;;  %vm2270_vm7 = vcmp.gt.f32.partialorder %v8274_v23, 0.0 }
 0x539   : > { %v3571_v60 = vmul.f32 %v3328_v40, %v8194_v9  ;;  %v3582_v29 = vmul.f32 %v6001_v58, %v8196_v20  ;;  %v3330_v45 = vpop.f32.mrb[163].mxu1  ;;  %v3483_v30 = vpop.f32.mrb[161].mxu0  ;;  %6048 = vmatpush3.bf16.msra.mxu1 %v8118_v57  ;;  %6075 = vmatprep.subr.bf16.mxu0 %v6415_v25  ;;  %v8929_v57 = vld [vmem:[#allocation37_spill] sm:$0xff] }
 0x53a   : > { %v3572_v22 = vmul.f32 %v3330_v45, %v8210_v36  ;;  %v3576_v16 = vmul.f32 %v3483_v30, %v8212_v55  ;;  %v6002_v50 = vpop.f32.mrb[162].mxu0  ;;  %v8309_v53 = vadd.f32 %v8929_v57, %v8125_v1  ;;  %v2392_v55 = vsel %vm2248_vm0, %v8243_v44, %v2320_v11 }
 0x53b   : > { %v3637_v9 = vpack.c.bf16 %v3571_v60, %v3568_v31  ;;  %v3585_v20 = vmul.f32 %v6002_v50, %v8215_v24  ;;  %v3486_v56 = vpop.f32.mrb[163].mxu0  ;;  %v8316_v24 = vsel %vm2250_vm1, %v2016_v12, %v2322_v47  ;;  %v2395_v12 = vsel %vm2251_vm3, %v8260_v39, %v2323_v13  ;;  %v8933_v39 = vld [vmem:[#allocation41_spill] sm:$0xff] }
 0x53c   : > { %v3638_v27 = vpack.c.bf16 %v3572_v22, %v3569_v59  ;;  %v3579_v33 = vmul.f32 %v3486_v56, %v8218_v35  ;;  %6076 = vmatpush3.bf16.msra.mxu0 %v6415_v25  ;;  %v2417_v35 = vsel %vm2273_vm2, %v8247_v10, %v2345_v26  ;;  %v8931_v25 = vld [vmem:[#allocation40_spill] sm:$0xff]  ;;  %v2411_v11 = vsel %vm2267_vm5, %v8255_v49, %v2339_v3  ;;  %v8932_v10 = vld [vmem:[#allocation39_spill] sm:$0xff] }
 0x53d   : > { %v3645_v36 = vpack.c.bf16 %v3585_v20, %v3582_v29  ;;  %v2026_v59 = vadd.f32 %v8931_v25, %v8125_v1  ;;  %v2325_v47 = vmul.f32 0.01, %v8309_v53  ;;  %v2207_v26 = vadd.f32 %v8932_v10, %v8131_v14 }
 0x53e   : > { %v3642_v31 = vpack.c.bf16 %v3579_v33, %v3576_v16  ;;  %v3334_v8 = vpop.f32.mrb[164].mxu1  ;;  %3854 = vmatprep.mubr.bf16.mxu0 %v3638_v27  ;;  %v8342_v13 = vadd.f32 %v8933_v39, %v8131_v14  ;;  %v2326_v22 = vmul.f32 0.01, %v2024_v37  ;;  %v8934_v16 = vld [vmem:[#allocation42_spill] sm:$0xff]  ;;  %v8936_v33 = vld [vmem:[#allocation44_spill] sm:$0xff]  ;;  %vm2253_vm8 = vcmp.gt.f32.partialorder %v8309_v53, 0.0 }
 0x53f   : > { %v3574_v40 = vmul.f32 %v3334_v8, %v8222_v4  ;;  %v3336_v44 = vpop.f32.mrb[165].mxu1  ;;  %3855 = vmatmul.mubr.bf16.gmra.mrb[184].mxu0 %v3637_v9  ;;  %v2420_v4 = vsel %vm2276_vm6, %v8264_v46, %v2348_v32  ;;  %v2028_v46 = vadd.f32 %v8934_v16, %v8129_v17  ;;  %vm2254_vm9 = vcmp.gt.f32.partialorder %v2024_v37, 0.0 }
 0x540   : > { %v3575_v58 = vmul.f32 %v3336_v44, %v8225_v5  ;;  %v3338_v60 = vpop.f32.mrb[166].mxu1  ;;  %v6005_v29 = vpop.f32.mrb[164].mxu0  ;;  %6027 = vmatprep.mubr.msk.bf16.mxu1 %vm2767_vm13, %v3642_v31  ;;  %v2414_v5 = vsel %vm2270_vm7, %v8274_v23, %v2342_v63  ;;  %v8359_v23 = vadd.f32 %v8936_v33, %v8131_v14  ;;  %vm2256_vm10 = vcmp.gt.f32.partialorder %v2026_v59, 0.0 }
 0x541   : > { %v3577_v49 = vmul.f32 %v3338_v60, %v8227_v48  ;;  %v3594_v3 = vmul.f32 %v6005_v29, %v8229_v7  ;;  %v3340_v45 = vpop.f32.mrb[167].mxu1  ;;  %v3499_v30 = vpop.f32.mrb[165].mxu0  ;;  %6028 = vmatmul.mubr.msk.bf16.gmra.mrb[208].mxu1 %vm2767_vm13, %v3645_v36  ;;  %v2328_v48 = vmul.f32 0.01, %v2026_v59  ;;  %v8935_v7 = vld [vmem:[#allocation43_spill] sm:$0xff]  ;;  %vm2285_vm11 = vcmp.gt.f32.partialorder %v2207_v26, 0.0 }
 0x542   : > { %v3578_v32 = vmul.f32 %v3340_v45, %v8238_v34  ;;  %v3588_v50 = vmul.f32 %v3499_v30, %v8267_v15  ;;  %v6006_v9 = vpop.f32.mrb[166].mxu0  ;;  %v2210_v20 = vadd.f32 %v8935_v7, %v8131_v14  ;;  %v2357_v34 = vmul.f32 0.01, %v2207_v26 }
 0x543   : > { %v3640_v56 = vpack.c.bf16 %v3577_v49, %v3574_v40  ;;  %v3597_v57 = vmul.f32 %v6006_v9, %v8282_v41  ;;  %v3502_v27 = vpop.f32.mrb[167].mxu0  ;;  %v2351_v28 = vmul.f32 0.01, %v8342_v13  ;;  %v2329_v31 = vmul.f32 0.01, %v2028_v46 }
 0x544   : > { %v3641_v63 = vpack.c.bf16 %v3578_v32, %v3575_v58  ;;  %v3591_v36 = vmul.f32 %v3502_v27, %v8291_v6  ;;  %v2360_v41 = vmul.f32 0.01, %v2210_v20  ;;  %v2397_v6 = vsel %vm2253_vm8, %v8309_v53, %v2325_v47 }
 0x545   : > { %v3651_v15 = vpack.c.bf16 %v3597_v57, %v3594_v3  ;;  %vm2257_vm12 = vcmp.gt.f32.partialorder %v2028_v46, 0.0  ;;  %v2354_v10 = vmul.f32 0.01, %v8359_v23  ;;  %v2398_v39 = vsel %vm2254_vm9, %v2024_v37, %v2326_v22 }
 0x546   : > { %v3648_v8 = vpack.c.bf16 %v3591_v36, %v3588_v50  ;;  %v3344_v25 = vpop.f32.mrb[168].mxu1  ;;  %3862 = vmatprep.mubr.bf16.mxu0 %v3641_v63  ;;  %v2400_v49 = vsel %vm2256_vm10, %v2026_v59, %v2328_v48  ;;  %v2429_v53 = vsel %vm2285_vm11, %v2207_v26, %v2357_v34  ;;  %vm2279_vm14 = vcmp.gt.f32.partialorder %v8342_v13, 0.0  ;;  %v8938_v59 = vld [vmem:[#allocation46_spill] sm:$0xff]  ;;  %v8939_v48 = vld [vmem:[#allocation47_spill] sm:$0xff] }
 0x547   : > { %v3580_v40 = vmul.f32 %v3344_v25, %v8298_v42  ;;  %v3346_v44 = vpop.f32.mrb[169].mxu1  ;;  %3863 = vmatmul.mubr.bf16.gmra.mrb[188].mxu0 %v3640_v56  ;;  %v2401_v37 = vsel %vm2257_vm12, %v2028_v46, %v2329_v31  ;;  %vm2288_vm0 = vcmp.gt.f32.partialorder %v2210_v20, 0.0  ;;  %v8381_v26 = vadd.f32 %v8939_v48, %v8131_v14  ;;  %v8941_v46 = vld [vmem:[#allocation49_spill] sm:$0xff]  ;;  %v8942_v63 = vld [vmem:[#allocation50_spill] sm:$0xff] }
 0x548   : > { %v3581_v58 = vmul.f32 %v3346_v44, %v2392_v55  ;;  %v3348_v60 = vpop.f32.mrb[170].mxu1  ;;  %v6009_v29 = vpop.f32.mrb[168].mxu0  ;;  %6031 = vmatprep.mubr.msk.bf16.mxu1 %vm2767_vm13, %v3648_v8  ;;  %v8937_v55 = vld [vmem:[#allocation45_spill] sm:$0xff]  ;;  %vm2282_vm1 = vcmp.gt.f32.partialorder %v8359_v23, 0.0  ;;  %v8388_v57 = vadd.f32 %v8941_v46, %v8131_v14  ;;  %v2038_v36 = vadd.f32 %v8942_v63, %v8129_v17  ;;  %v8943_v8 = vld [vmem:[#allocation51_spill] sm:$0xff] }
 0x549   : > { %v3583_v3 = vmul.f32 %v3348_v60, %v8316_v24  ;;  %v3606_v45 = vmul.f32 %v6009_v29, %v2417_v35  ;;  %v3350_v42 = vpop.f32.mrb[171].mxu1  ;;  %v3515_v30 = vpop.f32.mrb[169].mxu0  ;;  %6032 = vmatmul.mubr.msk.bf16.gmra.mrb[212].mxu1 %vm2767_vm13, %v3651_v15  ;;  %v2032_v47 = vadd.f32 %v8937_v55, %v8125_v1  ;;  %v2034_v24 = vadd.f32 %v8938_v59, %v8129_v17 }
 0x54a   : > { %v3584_v16 = vmul.f32 %v3350_v42, %v2395_v12  ;;  %v3600_v32 = vmul.f32 %v3515_v30, %v2411_v11  ;;  %v6010_v50 = vpop.f32.mrb[170].mxu0  ;;  %v8940_v12 = vld [vmem:[#allocation48_spill] sm:$0xff]  ;;  %v2432_v15 = vsel %vm2288_vm0, %v2210_v20, %v2360_v41  ;;  %v2226_v25 = vadd.f32 %v8943_v8, %v8131_v14 }
 0x54b   : > { %v3643_v35 = vpack.c.bf16 %v3583_v3, %v3580_v40  ;;  %v3609_v22 = vmul.f32 %v6010_v50, %v2420_v4  ;;  %v3518_v9 = vpop.f32.mrb[171].mxu0  ;;  %v2036_v11 = vadd.f32 %v8940_v12, %v8125_v1  ;;  %v2423_v4 = vsel %vm2279_vm14, %v8342_v13, %v2351_v28  ;;  %v8944_v28 = vld [vmem:[#allocation52_spill] sm:$0xff] }
 0x54c   : > { %v3644_v7 = vpack.c.bf16 %v3584_v16, %v3581_v58  ;;  %v3603_v56 = vmul.f32 %v3518_v9, %v2414_v5  ;;  %v2331_v33 = vmul.f32 0.01, %v2032_v47  ;;  %v2332_v31 = vmul.f32 0.01, %v2034_v24  ;;  %v8948_v8 = vld [vmem:[#allocation56_spill] sm:$0xff] }
 0x54d   : > { %v3657_v27 = vpack.c.bf16 %v3609_v22, %v3606_v45  ;;  %v2426_v58 = vsel %vm2282_vm1, %v8359_v23, %v2354_v10  ;;  %v2369_v13 = vmul.f32 0.01, %v8381_v26  ;;  %v2218_v60 = vadd.f32 %v8944_v28, %v8131_v14 }
 0x54e   : > { %v3654_v34 = vpack.c.bf16 %v3603_v56, %v3600_v32  ;;  %v3354_v5 = vpop.f32.mrb[172].mxu1  ;;  %3870 = vmatprep.mubr.bf16.mxu0 %v3644_v7  ;;  %vm2259_vm2 = vcmp.gt.f32.partialorder %v2032_v47, 0.0  ;;  %v2334_v20 = vmul.f32 0.01, %v2036_v11  ;;  %v2363_v41 = vmul.f32 0.01, %v8388_v57 }
 0x54f   : > { %v3586_v40 = vmul.f32 %v3354_v5, %v2397_v6  ;;  %v3356_v44 = vpop.f32.mrb[173].mxu1  ;;  %3871 = vmatmul.mubr.bf16.gmra.mrb[192].mxu0 %v3643_v35  ;;  %v2335_v23 = vmul.f32 0.01, %v2038_v36  ;;  %vm2260_vm3 = vcmp.gt.f32.partialorder %v2034_v24, 0.0  ;;  %v2372_v14 = vmul.f32 0.01, %v2226_v25 }
 0x550   : > { %v3587_v29 = vmul.f32 %v3356_v44, %v2398_v39  ;;  %v3358_v3 = vpop.f32.mrb[174].mxu1  ;;  %v6013_v45 = vpop.f32.mrb[172].mxu0  ;;  %6035 = vmatprep.mubr.msk.bf16.mxu1 %vm2767_vm13, %v3654_v34  ;;  %v2403_v35 = vsel %vm2259_vm2, %v2032_v47, %v2331_v33  ;;  %v2366_v22 = vmul.f32 0.01, %v2218_v60  ;;  %vm2262_vm5 = vcmp.gt.f32.partialorder %v2036_v11, 0.0  ;;  %v8946_v47 = vld [vmem:[#allocation54_spill] sm:$0xff] }
 0x551   : > { %v3589_v6 = vmul.f32 %v3358_v3, %v2400_v49  ;;  %v3618_v42 = vmul.f32 %v6013_v45, %v2429_v53  ;;  %v3360_v30 = vpop.f32.mrb[175].mxu1  ;;  %v3531_v55 = vpop.f32.mrb[173].mxu0  ;;  %6036 = vmatmul.mubr.msk.bf16.gmra.mrb[216].mxu1 %vm2767_vm13, %v3657_v27  ;;  %v2404_v53 = vsel %vm2260_vm3, %v2034_v24, %v2332_v31  ;;  %vm2263_vm6 = vcmp.gt.f32.partialorder %v2038_v36, 0.0  ;;  %v8947_v24 = vld [vmem:[#allocation55_spill] sm:$0xff] }
 0x552   : > { %v3590_v10 = vmul.f32 %v3360_v30, %v2401_v37  ;;  %v3612_v16 = vmul.f32 %v3531_v55, %v2423_v4  ;;  %v6014_v32 = vpop.f32.mrb[174].mxu0  ;;  %vm2297_vm7 = vcmp.gt.f32.partialorder %v8381_v26, 0.0  ;;  %v8945_v37 = vld [vmem:[#allocation53_spill] sm:$0xff]  ;;  %vm2291_vm8 = vcmp.gt.f32.partialorder %v8388_v57, 0.0 }
 0x553   : > { %v3646_v39 = vpack.c.bf16 %v3589_v6, %v3586_v40  ;;  %v3621_v50 = vmul.f32 %v6014_v32, %v2432_v15  ;;  %v3534_v59 = vpop.f32.mrb[175].mxu0  ;;  %v2042_v7 = vadd.f32 %v8945_v37, %v8125_v1  ;;  %vm2300_vm9 = vcmp.gt.f32.partialorder %v2226_v25, 0.0 }
 0x554   : > { %v3647_v9 = vpack.c.bf16 %v3590_v10, %v3587_v29  ;;  %v3615_v48 = vmul.f32 %v3534_v59, %v2426_v58  ;;  %v2044_v46 = vadd.f32 %v8946_v47, %v8129_v17  ;;  %v2406_v33 = vsel %vm2262_vm5, %v2036_v11, %v2334_v20  ;;  %v8952_v47 = vld [vmem:[#allocation60_spill] sm:$0xff] }
 0x555   : > { %v3663_v49 = vpack.c.bf16 %v3621_v50, %v3618_v42  ;;  %vm2294_vm10 = vcmp.gt.f32.partialorder %v2218_v60, 0.0  ;;  %v2046_v63 = vadd.f32 %v8947_v24, %v8125_v1  ;;  %v2407_v15 = vsel %vm2263_vm6, %v2038_v36, %v2335_v23 }
 0x556   : > { %v3660_v56 = vpack.c.bf16 %v3615_v48, %v3612_v16  ;;  %v3364_v12 = vpop.f32.mrb[176].mxu1  ;;  %3878 = vmatprep.mubr.bf16.mxu0 %v3647_v9  ;;  %v2441_v31 = vsel %vm2297_vm7, %v8381_v26, %v2369_v13  ;;  %v2048_v40 = vadd.f32 %v8948_v8, %v8129_v17  ;;  %v2435_v28 = vsel %vm2291_vm8, %v8388_v57, %v2363_v41  ;;  %v8953_v8 = vld [vmem:[#allocation61_spill] sm:$0xff] }
 0x557   : > { %v3592_v27 = vmul.f32 %v3364_v12, %v2403_v35  ;;  %v3366_v4 = vpop.f32.mrb[177].mxu1  ;;  %3879 = vmatmul.mubr.bf16.gmra.mrb[196].mxu0 %v3646_v39  ;;  %v2444_v29 = vsel %vm2300_vm9, %v2226_v25, %v2372_v14  ;;  %v2337_v3 = vmul.f32 0.01, %v2042_v7  ;;  %v2438_v26 = vsel %vm2294_vm10, %v2218_v60, %v2366_v22  ;;  %v8949_v25 = vld [vmem:[#allocation57_spill] sm:$0xff]  ;;  %v8950_v60 = vld [vmem:[#allocation58_spill] sm:$0xff] }
 0x558   : > { %v3593_v34 = vmul.f32 %v3366_v4, %v2404_v53  ;;  %v3368_v5 = vpop.f32.mrb[178].mxu1  ;;  %6039 = vmatprep.mubr.msk.bf16.mxu1 %vm2767_vm13, %v3660_v56  ;;  %v2338_v13 = vmul.f32 0.01, %v2044_v46  ;;  %vm2265_vm11 = vcmp.gt.f32.partialorder %v2042_v7, 0.0  ;;  %v2340_v55 = vmul.f32 0.01, %v2046_v63 }
 0x559   : > { %v3595_v44 = vmul.f32 %v3368_v5, %v2406_v33  ;;  %v3370_v58 = vpop.f32.mrb[179].mxu1  ;;  %6040 = vmatmul.mubr.msk.bf16.gmra.mrb[220].mxu1 %vm2767_vm13, %v3663_v49  ;;  %vm2266_vm12 = vcmp.gt.f32.partialorder %v2044_v46, 0.0  ;;  %v2341_v32 = vmul.f32 0.01, %v2048_v40  ;;  %vm2268_vm14 = vcmp.gt.f32.partialorder %v2046_v63, 0.0  ;;  %v8951_v49 = vld [vmem:[#allocation59_spill] sm:$0xff] }
 0x55a   : > { %v6017_v11 = vpop.f32.mrb[176].mxu0  ;;  %v3596_v36 = vmul.f32 %v3370_v58, %v2407_v15  ;;  %v2052_v41 = vadd.f32 %v8949_v25, %v8125_v1  ;;  %v2409_v39 = vsel %vm2265_vm11, %v2042_v7, %v2337_v3  ;;  %vm2269_vm0 = vcmp.gt.f32.partialorder %v2048_v40, 0.0 }
 0x55b   : > { %v3630_v45 = vmul.f32 %v6017_v11, %v2441_v31  ;;  %v3547_v20 = vpop.f32.mrb[177].mxu0  ;;  %v3649_v6 = vpack.c.bf16 %v3595_v44, %v3592_v27  ;;  %v2054_v59 = vadd.f32 %v8950_v60, %v8129_v17  ;;  %v2410_v9 = vsel %vm2266_vm12, %v2044_v46, %v2338_v13  ;;  %v8954_v11 = vld [vmem:[#allocation62_spill] sm:$0xff] }
 0x55c   : > { %v3624_v42 = vmul.f32 %v3547_v20, %v2435_v28  ;;  %v6018_v30 = vpop.f32.mrb[178].mxu0  ;;  %v3650_v23 = vpack.c.bf16 %v3596_v36, %v3593_v34  ;;  %v2056_v53 = vadd.f32 %v8951_v49, %v8125_v1  ;;  %v2412_v56 = vsel %vm2268_vm14, %v2046_v63, %v2340_v55 }
 0x55d   : > { %v3633_v10 = vmul.f32 %v6018_v30, %v2444_v29  ;;  %v3550_v16 = vpop.f32.mrb[179].mxu0  ;;  %v2058_v7 = vadd.f32 %v8952_v47, %v8129_v17  ;;  %v2413_v4 = vsel %vm2269_vm0, %v2048_v40, %v2341_v32  ;;  %v2343_v24 = vmul.f32 0.01, %v2052_v41 }
 0x55e   : > { %v3627_v57 = vmul.f32 %v3550_v16, %v2438_v26  ;;  %v3374_v50 = vpop.f32.mrb[180].mxu1  ;;  %3886 = vmatprep.mubr.bf16.mxu0 %v3650_v23  ;;  %v2344_v46 = vmul.f32 0.01, %v2054_v59  ;;  %vm2271_vm1 = vcmp.gt.f32.partialorder %v2052_v41, 0.0  ;;  %v2346_v63 = vmul.f32 0.01, %v2056_v53 }
 0x55f   : > { %v3669_v14 = vpack.c.bf16 %v3633_v10, %v3630_v45  ;;  %v3598_v22 = vmul.f32 %v3374_v50, %v2409_v39  ;;  %v3376_v48 = vpop.f32.mrb[181].mxu1  ;;  %3887 = vmatmul.mubr.bf16.gmra.mrb[200].mxu0 %v3649_v6  ;;  %vm2272_vm2 = vcmp.gt.f32.partialorder %v2054_v59, 0.0  ;;  %v2347_v31 = vmul.f32 0.01, %v2058_v7  ;;  %v8956_v6 = vld [vmem:[#allocation64_spill] sm:$0xff]  ;;  %v8957_v39 = vld [vmem:[#allocation65_spill] sm:$0xff] }
 0x560   : > { %v3666_v35 = vpack.c.bf16 %v3627_v57, %v3624_v42  ;;  %v3599_v37 = vmul.f32 %v3376_v48, %v2410_v9  ;;  %v3378_v12 = vpop.f32.mrb[182].mxu1  ;;  %vm2274_vm3 = vcmp.gt.f32.partialorder %v2056_v53, 0.0  ;;  %v2062_v40 = vadd.f32 %v8953_v8, %v8125_v1 }
 0x561   : > { %v3601_v27 = vmul.f32 %v3378_v12, %v2412_v56  ;;  %v3380_v33 = vpop.f32.mrb[183].mxu1  ;;  %v2415_v44 = vsel %vm2271_vm1, %v2052_v41, %v2343_v24  ;;  %vm2275_vm5 = vcmp.gt.f32.partialorder %v2058_v7, 0.0  ;;  %v2064_v28 = vadd.f32 %v8954_v11, %v8129_v17  ;;  %v8960_v12 = vld [vmem:[#allocation68_spill] sm:$0xff] }
 0x562   : > { %6043 = vmatprep.mubr.msk.bf16.mxu1 %vm2767_vm13, %v3666_v35  ;;  %v3602_v34 = vmul.f32 %v3380_v33, %v2413_v4  ;;  %v2416_v3 = vsel %vm2272_vm2, %v2054_v59, %v2344_v46  ;;  %v2418_v26 = vsel %vm2274_vm3, %v2056_v53, %v2346_v63  ;;  %v2068_v42 = vadd.f32 %v8956_v6, %v8129_v17 }
 0x563   : > { %6044 = vmatmul.mubr.msk.bf16.gmra.mrb[224].mxu1 %vm2767_vm13, %v3669_v14  ;;  %v3652_v5 = vpack.c.bf16 %v3601_v27, %v3598_v22  ;;  %v2419_v55 = vsel %vm2275_vm5, %v2058_v7, %v2347_v31  ;;  %v2349_v10 = vmul.f32 0.01, %v2062_v40  ;;  %v2350_v32 = vmul.f32 0.01, %v2064_v28  ;;  %v8961_v31 = vld [vmem:[#allocation69_spill] sm:$0xff] }
 0x564   : > { %6049 = vmatprep.mubr.msk.bf16.mxu1 %vm3062_vm15, %v8019_v61  ;;  %v3653_v15 = vpack.c.bf16 %v3602_v34, %v3599_v37  ;;  %v8955_v61 = vld [vmem:[#allocation63_spill] sm:$0xff]  ;;  %vm2277_vm13 = vcmp.gt.f32.partialorder %v2062_v40, 0.0  ;;  %vm2278_vm6 = vcmp.gt.f32.partialorder %v2064_v28, 0.0  ;;  %v2353_v14 = vmul.f32 0.01, %v2068_v42 }
 0x565   : > { %v2066_v45 = vadd.f32 %v8955_v61, %v8125_v1  ;;  %v2072_v50 = vadd.f32 %v8957_v39, %v8125_v1  ;;  %v2421_v60 = vsel %vm2277_vm13, %v2062_v40, %v2349_v10  ;;  %vm2281_vm8 = vcmp.gt.f32.partialorder %v2068_v42, 0.0 }
 0x566   : > { %v3384_v58 = vpop.f32.mrb[184].mxu1  ;;  %3894 = vmatprep.mubr.bf16.mxu0 %v3653_v15  ;;  %v2422_v9 = vsel %vm2278_vm6, %v2064_v28, %v2350_v32  ;;  %v2078_v47 = vadd.f32 %v8960_v12, %v8129_v17  ;;  %v2425_v27 = vsel %vm2281_vm8, %v2068_v42, %v2353_v14  ;;  %v2082_v8 = vadd.f32 %v8961_v31, %v8125_v1 }
 0x567   : > { %v3604_v29 = vmul.f32 %v3384_v58, %v2415_v44  ;;  %v3386_v36 = vpop.f32.mrb[185].mxu1  ;;  %3895 = vmatmul.mubr.bf16.gmra.mrb[204].mxu0 %v3652_v5  ;;  %v2352_v25 = vmul.f32 0.01, %v2066_v45  ;;  %vm2280_vm7 = vcmp.gt.f32.partialorder %v2066_v45, 0.0  ;;  %v2355_v33 = vmul.f32 0.01, %v2072_v50 }
 0x568   : > { %v3605_v20 = vmul.f32 %v3386_v36, %v2416_v3  ;;  %v3388_v13 = vpop.f32.mrb[186].mxu1  ;;  %vm2283_vm9 = vcmp.gt.f32.partialorder %v2072_v50, 0.0  ;;  %v2359_v15 = vmul.f32 0.01, %v2078_v47  ;;  %vm2287_vm12 = vcmp.gt.f32.partialorder %v2078_v47, 0.0 }
 0x569   : > { %v3607_v30 = vmul.f32 %v3388_v13, %v2418_v26  ;;  %v3390_v23 = vpop.f32.mrb[187].mxu1  ;;  %v2424_v37 = vsel %vm2280_vm7, %v2066_v45, %v2352_v25  ;;  %v2427_v40 = vsel %vm2283_vm9, %v2072_v50, %v2355_v33  ;;  %vm2289_vm14 = vcmp.gt.f32.partialorder %v2082_v8, 0.0  ;;  %v8965_v25 = vld [vmem:[#allocation73_spill] sm:$0xff] }
 0x56a   : > { %v3608_v16 = vmul.f32 %v3390_v23, %v2419_v55  ;;  %v2431_v6 = vsel %vm2287_vm12, %v2078_v47, %v2359_v15 }
 0x56b   : > { %6050 = vmatmul.mubr.msk.bf16.vlgmr.msra.gmra.mrb[228].mxu1 %vm3062_vm15, %v8021_v62  ;;  %v3655_v57 = vpack.c.bf16 %v3607_v30, %v3604_v29  ;;  %v8958_v62 = vld [vmem:[#allocation66_spill] sm:$0xff]  ;;  %v2361_v30 = vmul.f32 0.01, %v2082_v8 }
 0x56c   : > { %6053 = vmatprep.mubr.msk.bf16.mxu1 %vm3062_vm15, %v8034_v38  ;;  %v3656_v41 = vpack.c.bf16 %v3608_v16, %v3605_v20  ;;  %v2074_v35 = vadd.f32 %v8958_v62, %v8129_v17  ;;  %v8959_v38 = vld [vmem:[#allocation67_spill] sm:$0xff]  ;;  %v8964_v20 = vld [vmem:[#allocation72_spill] sm:$0xff] }
 0x56d   : > { %v2076_v49 = vadd.f32 %v8959_v38, %v8125_v1  ;;  %v2088_v26 = vadd.f32 %v8964_v20, %v8129_v17  ;;  %v2433_v14 = vsel %vm2289_vm14, %v2082_v8, %v2361_v30  ;;  %v8968_v38 = vld [vmem:[#allocation76_spill] sm:$0xff] }
 0x56e   : > { %v3394_v59 = vpop.f32.mrb[188].mxu1  ;;  %3902 = vmatprep.mubr.bf16.mxu0 %v3656_v41  ;;  %v2356_v34 = vmul.f32 0.01, %v2074_v35  ;;  %vm2284_vm10 = vcmp.gt.f32.partialorder %v2074_v35, 0.0  ;;  %v2092_v41 = vadd.f32 %v8965_v25, %v8125_v1 }
 0x56f   : > { %v3610_v22 = vmul.f32 %v3394_v59, %v2421_v60  ;;  %v3396_v48 = vpop.f32.mrb[189].mxu1  ;;  %3903 = vmatmul.mubr.bf16.gmra.mrb[208].mxu0 %v3655_v57  ;;  %v2358_v5 = vmul.f32 0.01, %v2076_v49  ;;  %vm2286_vm11 = vcmp.gt.f32.partialorder %v2076_v49, 0.0  ;;  %v2365_v57 = vmul.f32 0.01, %v2088_v26 }
 0x570   : > { %v3611_v53 = vmul.f32 %v3396_v48, %v2422_v9  ;;  %v3398_v56 = vpop.f32.mrb[190].mxu1  ;;  %v2428_v28 = vsel %vm2284_vm10, %v2074_v35, %v2356_v34  ;;  %vm2293_vm2 = vcmp.gt.f32.partialorder %v2088_v26, 0.0  ;;  %v2367_v12 = vmul.f32 0.01, %v2092_v41 }
 0x571   : > { %v3613_v7 = vmul.f32 %v3398_v56, %v2424_v37  ;;  %v3400_v4 = vpop.f32.mrb[191].mxu1  ;;  %v2430_v61 = vsel %vm2286_vm11, %v2076_v49, %v2358_v5  ;;  %v2098_v49 = vadd.f32 %v8968_v38, %v8129_v17  ;;  %v2437_v37 = vsel %vm2293_vm2, %v2088_v26, %v2365_v57 }
 0x572   : > { %v3614_v24 = vmul.f32 %v3400_v4, %v2425_v27  ;;  %vm2295_vm3 = vcmp.gt.f32.partialorder %v2092_v41, 0.0 }
 0x573   : > { %6054 = vmatmul.mubr.msk.bf16.gmra.mrb[232].mxu1 %vm3062_vm15, %v8042_v2  ;;  %v3658_v46 = vpack.c.bf16 %v3613_v7, %v3610_v22  ;;  %v8962_v2 = vld [vmem:[#allocation70_spill] sm:$0xff]  ;;  %v2371_v33 = vmul.f32 0.01, %v2098_v49  ;;  %vm2299_vm6 = vcmp.gt.f32.partialorder %v2098_v49, 0.0 }
 0x574   : > { %6057 = vmatprep.mubr.msk.bf16.mxu1 %vm3062_vm15, %v8049_v21  ;;  %v3659_v63 = vpack.c.bf16 %v3614_v24, %v3611_v53  ;;  %v2084_v58 = vadd.f32 %v8962_v2, %v8129_v17  ;;  %v8963_v21 = vld [vmem:[#allocation71_spill] sm:$0xff] }
 0x575   : > { %v2086_v3 = vadd.f32 %v8963_v21, %v8125_v1  ;;  %v2443_v8 = vsel %vm2299_vm6, %v2098_v49, %v2371_v33 }
 0x576   : > { %v3404_v44 = vpop.f32.mrb[192].mxu1  ;;  %3910 = vmatprep.mubr.bf16.mxu0 %v3659_v63  ;;  %v2362_v23 = vmul.f32 0.01, %v2084_v58  ;;  %vm2290_vm0 = vcmp.gt.f32.partialorder %v2084_v58, 0.0 }
 0x577   : > { %v3616_v11 = vmul.f32 %v3404_v44, %v2427_v40  ;;  %v3406_v29 = vpop.f32.mrb[193].mxu1  ;;  %3911 = vmatmul.mubr.bf16.gmra.mrb[212].mxu0 %v3658_v46  ;;  %v2364_v16 = vmul.f32 0.01, %v2086_v3  ;;  %vm2292_vm1 = vcmp.gt.f32.partialorder %v2086_v3, 0.0 }
 0x578   : > { %v3617_v36 = vmul.f32 %v3406_v29, %v2428_v28  ;;  %v3408_v45 = vpop.f32.mrb[194].mxu1  ;;  %v2434_v59 = vsel %vm2290_vm0, %v2084_v58, %v2362_v23  ;;  %v6416_v58 = vld [vmem:[#allocation10 + $0x10] sm:$0xff]   ;;  %v6418_v28 = vld [vmem:[#allocation10 + $0x20] sm:$0xff]  }
 0x579   : > { %v3619_v13 = vmul.f32 %v3408_v45, %v2430_v61  ;;  %v3410_v42 = vpop.f32.mrb[195].mxu1  ;;  %v2436_v9 = vsel %vm2292_vm1, %v2086_v3, %v2364_v16  ;;  %6077 = vmatprep.subr.bf16.mxu0 %v6416_v58 }
 0x57a   : > { %v3620_v55 = vmul.f32 %v3410_v42, %v2431_v6  ;;  %6078 = vmatpush3.bf16.msra.mxu0 %v6416_v58 }
 0x57b   : > { %6058 = vmatmul.mubr.msk.bf16.gmra.mrb[236].mxu1 %vm3062_vm15, %v8057_v51  ;;  %v3661_v10 = vpack.c.bf16 %v3619_v13, %v3616_v11  ;;  %v8966_v51 = vld [vmem:[#allocation74_spill] sm:$0xff]  ;;  %v6417_v11 = vld [vmem:[#allocation10 + $0x18] sm:$0xff]  }
 0x57c   : > { %6061 = vmatprep.mubr.msk.bf16.mxu1 %vm3062_vm15, %v8064_v43  ;;  %v3662_v32 = vpack.c.bf16 %v3620_v55, %v3617_v36  ;;  %v2094_v50 = vadd.f32 %v8966_v51, %v8129_v17  ;;  %v8967_v43 = vld [vmem:[#allocation75_spill] sm:$0xff]  ;;  %v2439_v17 = vsel %vm2295_vm3, %v2092_v41, %v2367_v12  ;;  %6079 = vmatprep.subr.bf16.mxu0 %v6417_v11 }
 0x57d   : > { %v2096_v35 = vadd.f32 %v8967_v43, %v8125_v1 }
 0x57e   : > { %v3414_v39 = vpop.f32.mrb[196].mxu1  ;;  %3918 = vmatprep.mubr.bf16.mxu0 %v3662_v32  ;;  %v2368_v7 = vmul.f32 0.01, %v2094_v50  ;;  %vm2296_vm5 = vcmp.gt.f32.partialorder %v2094_v50, 0.0  ;;  %6080 = vmatpush3.bf16.msra.mxu0 %v6417_v11 }
 0x57f   : > { %v3622_v60 = vmul.f32 %v3414_v39, %v2433_v14  ;;  %v3416_v62 = vpop.f32.mrb[197].mxu1  ;;  %3919 = vmatmul.mubr.bf16.gmra.mrb[216].mxu0 %v3661_v10  ;;  %v2370_v1 = vmul.f32 0.01, %v2096_v35  ;;  %vm2298_vm13 = vcmp.gt.f32.partialorder %v2096_v35, 0.0  ;;  %6081 = vmatprep.subr.bf16.mxu0 %v6418_v28 }
 0x580   : > { %v3623_v22 = vmul.f32 %v3416_v62, %v2434_v59  ;;  %v3418_v48 = vpop.f32.mrb[198].mxu1  ;;  %v2440_v46 = vsel %vm2296_vm5, %v2094_v50, %v2368_v7 }
 0x581   : > { %v3625_v53 = vmul.f32 %v3418_v48, %v2436_v9  ;;  %v3420_v56 = vpop.f32.mrb[199].mxu1  ;;  %v2442_v63 = vsel %vm2298_vm13, %v2096_v35, %v2370_v1 }
 0x582   : > { %v3626_v47 = vmul.f32 %v3420_v56, %v2437_v37  ;;  %6082 = vmatpush3.bf16.msra.mxu0 %v6418_v28  ;;  %v6428_v28 = vld [vmem:[%s8807_s14 + $0x10] sm:$0xff]  }
 0x583   : > { %6062 = vmatmul.mubr.msk.bf16.gmra.mrb[240].mxu1 %vm3062_vm15, %v8072_v0  ;;  %v3664_v27 = vpack.c.bf16 %v3625_v53, %v3622_v60 }
 0x584   : > { %6065 = vmatprep.mubr.msk.bf16.mxu1 %vm3062_vm15, %v8078_v54  ;;  %v3665_v4 = vpack.c.bf16 %v3626_v47, %v3623_v22 }
 0x586   : > { %v3424_v24 = vpop.f32.mrb[200].mxu1  ;;  %3926 = vmatprep.mubr.bf16.mxu0 %v3665_v4 }
 0x587   : > { %v3628_v34 = vmul.f32 %v3424_v24, %v2439_v17  ;;  %v3426_v5 = vpop.f32.mrb[201].mxu1  ;;  %3927 = vmatmul.mubr.bf16.gmra.mrb[220].mxu0 %v3664_v27 }
 0x588   : > { %v3629_v0 = vmul.f32 %v3426_v5, %v2440_v46  ;;  %v3428_v15 = vpop.f32.mrb[202].mxu1 }
 0x589   : > { %v3631_v31 = vmul.f32 %v3428_v15, %v2442_v63  ;;  %v3430_v54 = vpop.f32.mrb[203].mxu1  ;;  %v6427_v63 = vld [vmem:[%s8807_s14 + $0x8] sm:$0xff]  }
 0x58a   : > { %v3632_v40 = vmul.f32 %v3430_v54, %v2443_v8 }
 0x58b   : > { %6066 = vmatmul.mubr.msk.bf16.gmra.mrb[244].mxu1 %vm3062_vm15, %v8084_v52  ;;  %v3667_v44 = vpack.c.bf16 %v3631_v31, %v3628_v34  ;;  %v6419_v52 = vld [vmem:[#allocation10 + $0x28] sm:$0xff]  }
 0x58c   : > { %6069 = vmatprep.mubr.msk.bf16.mxu1 %vm3062_vm15, %v8089_v18  ;;  %v3668_v2 = vpack.c.bf16 %v3632_v40, %v3629_v0  ;;  %6083 = vmatprep.subr.bf16.mxu0 %v6419_v52  ;;  %v8497_v18 = vld [vmem:[%s8804_s11] sm:$0xff]  }
 0x58d   : > { %6084 = vmatpush3.bf16.msra.mxu0 %v6419_v52  ;;  %v6426_v0 = vld [vmem:[%s8807_s14] sm:$0xff]  }
 0x58e   : > { %3934 = vmatprep.mubr.bf16.mxu0 %v3668_v2  ;;  %6109 = vmatprep.subr.bf16.mxu0 %v8497_v18 }
 0x58f   : > { %3935 = vmatmul.mubr.bf16.gmra.mrb[224].mxu0 %v3667_v44  ;;  %6145 = vmatprep.subr.bf16.mxu1 %v6426_v0 }
 0x590   : > { %6146 = vmatpush3.bf16.msra.mxu1 %v6426_v0 }
 0x591   : > { %6147 = vmatprep.subr.bf16.mxu1 %v6427_v63 }
 0x593   : > { %6070 = vmatmul.mubr.msk.bf16.gmra.mrb[248].mxu1 %vm3062_vm15, %v8095_v19 }
 0x594   : > { %6148 = vmatpush3.bf16.msra.mxu1 %v6427_v63 }
 0x595   : > { %6149 = vmatprep.subr.bf16.mxu1 %v6428_v28 }
 0x598   : > { %6150 = vmatpush3.bf16.msra.mxu1 %v6428_v28 }
 0x60a   : > { %v5676_v19 = vpop.f32.mrb[180].mxu0 }
 0x60b   : > { %v5677_v29 = vpop.f32.mrb[181].mxu0  ;;  %v6025_v21 = vpop.f32.mrb[204].mxu1 }
 0x60c   : > { %v5678_v3 = vadd.f32 %v5677_v29, %v5676_v19  ;;  %v5679_v36 = vpop.f32.mrb[182].mxu0  ;;  %v3977_v61 = vpop.f32.mrb[205].mxu1 }
 0x60d   : > { %v5680_v45 = vpop.f32.mrb[183].mxu0  ;;  %v6026_v20 = vpop.f32.mrb[206].mxu1 }
 0x60e   : > { %v8500_v26 = vadd.f32 %v5678_v3, %v3977_v61  ;;  %v5681_v13 = vadd.f32 %v5680_v45, %v5679_v36  ;;  %v3980_v6 = vpop.f32.mrb[207].mxu1 }
 0x610   : > { %v8502_v42 = vadd.f32 %v5681_v13, %v3980_v6 }
 0x612   : > { %v5682_v30 = vpop.f32.mrb[184].mxu0 }
 0x613   : > { %v5683_v55 = vpop.f32.mrb[185].mxu0 }
 0x614   : > { %v5684_v23 = vadd.f32 %v5683_v55, %v5682_v30  ;;  %v5685_v10 = vpop.f32.mrb[186].mxu0  ;;  %v6029_v16 = vpop.f32.mrb[208].mxu1  ;;  %v6430_v55 = vld [vmem:[%s8807_s14 + $0x20] sm:$0xff]  }
 0x615   : > { %v5686_v32 = vpop.f32.mrb[187].mxu0  ;;  %v3993_v57 = vpop.f32.mrb[209].mxu1 }
 0x616   : > { %v8504_v25 = vadd.f32 %v6025_v21, %v5684_v23  ;;  %v5687_v41 = vadd.f32 %v5686_v32, %v5685_v10  ;;  %v6030_v14 = vpop.f32.mrb[210].mxu1  ;;  %v6429_v21 = vld [vmem:[%s8807_s14 + $0x18] sm:$0xff]  }
 0x617   : > { %v3996_v39 = vpop.f32.mrb[211].mxu1  ;;  %6151 = vmatprep.subr.bf16.mxu1 %v6429_v21 }
 0x618   : > { %v8506_v51 = vadd.f32 %v6026_v20, %v5687_v41  ;;  %6152 = vmatpush3.bf16.msra.mxu1 %v6429_v21 }
 0x619   : > { %6153 = vmatprep.subr.bf16.mxu1 %v6430_v55 }
 0x61a   : > { %v5688_v50 = vpop.f32.mrb[188].mxu0 }
 0x61b   : > { %v5689_v60 = vpop.f32.mrb[189].mxu0 }
 0x61c   : > { %v5690_v59 = vadd.f32 %v5689_v60, %v5688_v50  ;;  %v5691_v62 = vpop.f32.mrb[190].mxu0  ;;  %v6033_v43 = vpop.f32.mrb[212].mxu1  ;;  %6154 = vmatpush3.bf16.msra.mxu1 %v6430_v55 }
 0x61d   : > { %v5692_v35 = vpop.f32.mrb[191].mxu0  ;;  %v4009_v22 = vpop.f32.mrb[213].mxu1 }
 0x61e   : > { %v8508_v9 = vadd.f32 %v5690_v59, %v3993_v57  ;;  %v5693_v48 = vadd.f32 %v5692_v35, %v5691_v62  ;;  %v6034_v38 = vpop.f32.mrb[214].mxu1 }
 0x61f   : > { %v4012_v49 = vpop.f32.mrb[215].mxu1 }
 0x620   : > { %v8510_v53 = vadd.f32 %v5693_v48, %v3996_v39 }
 0x622   : > { %v5694_v37 = vpop.f32.mrb[192].mxu0 }
 0x623   : > { %v5695_v56 = vpop.f32.mrb[193].mxu0 }
 0x624   : > { %v5696_v12 = vadd.f32 %v5695_v56, %v5694_v37  ;;  %v5697_v47 = vpop.f32.mrb[194].mxu0  ;;  %v8512_v7 = vpop.f32.mrb[216].mxu1 }
 0x625   : > { %v5698_v27 = vpop.f32.mrb[195].mxu0  ;;  %v4025_v1 = vpop.f32.mrb[217].mxu1 }
 0x626   : > { %v8514_v4 = vadd.f32 %v6029_v16, %v5696_v12  ;;  %v5699_v33 = vadd.f32 %v5698_v27, %v5697_v47  ;;  %v8516_v17 = vpop.f32.mrb[218].mxu1 }
 0x627   : > { %v4028_v24 = vpop.f32.mrb[219].mxu1 }
 0x628   : > { %v8518_v34 = vadd.f32 %v6030_v14, %v5699_v33 }
 0x62a   : > { %v5700_v46 = vpop.f32.mrb[196].mxu0 }
 0x62b   : > { %v5701_v5 = vpop.f32.mrb[197].mxu0 }
 0x62c   : > { %v5702_v15 = vadd.f32 %v5701_v5, %v5700_v46  ;;  %v5703_v31 = vpop.f32.mrb[198].mxu0  ;;  %v8526_v8 = vpop.f32.mrb[220].mxu1 }
 0x62d   : > { %v5704_v54 = vpop.f32.mrb[199].mxu0  ;;  %v8528_v40 = vpop.f32.mrb[221].mxu1 }
 0x62e   : > { %v8530_v44 = vadd.f32 %v5702_v15, %v4009_v22  ;;  %v5705_v2 = vadd.f32 %v5704_v54, %v5703_v31  ;;  %v8532_v58 = vpop.f32.mrb[222].mxu1 }
 0x62f   : > { %v8534_v11 = vpop.f32.mrb[223].mxu1 }
 0x630   : > { %v8539_v52 = vadd.f32 %v5705_v2, %v4012_v49 }
 0x632   : > { %v5706_v19 = vpop.f32.mrb[200].mxu0 }
 0x633   : > { %v5707_v29 = vpop.f32.mrb[201].mxu0 }
 0x634   : > { %v5708_v3 = vadd.f32 %v5707_v29, %v5706_v19  ;;  %v5709_v36 = vpop.f32.mrb[202].mxu0 }
 0x635   : > { %v5710_v61 = vpop.f32.mrb[203].mxu0 }
 0x636   : > { %v8544_v45 = vpop.f32.mrb[224].mxu1  ;;  %v8546_v20 = vadd.f32 %v6033_v43, %v5708_v3  ;;  %v5711_v13 = vadd.f32 %v5710_v61, %v5709_v36 }
 0x637   : > { %v8548_v6 = vpop.f32.mrb[225].mxu1 }
 0x638   : > { %v8550_v30 = vpop.f32.mrb[226].mxu1  ;;  %v8555_v23 = vadd.f32 %v6034_v38, %v5711_v13 }
 0x639   : > { %v8557_v10 = vpop.f32.mrb[227].mxu1 }
 0x63a   : > { %v5712_v16 = vpop.f32.mrb[204].mxu0 }
 0x63b   : > { %v5713_v32 = vpop.f32.mrb[205].mxu0 }
 0x63c   : > { %v5714_v57 = vadd.f32 %v5713_v32, %v5712_v16  ;;  %v5715_v41 = vpop.f32.mrb[206].mxu0 }
 0x63d   : > { %v5716_v14 = vpop.f32.mrb[207].mxu0 }
 0x63e   : > { %v6051_v39 = vpop.f32.mrb[228].mxu1  ;;  %v8559_v50 = vadd.f32 %v5714_v57, %v4025_v1  ;;  %v5717_v60 = vadd.f32 %v5716_v14, %v5715_v41 }
 0x63f   : > { %v4211_v59 = vmax.f32 %v6051_v39, 1e-37  ;;  %v4114_v62 = vpop.f32.mrb[229].mxu1 }
 0x640   : > { %v4209_v43 = vmax.f32 %v4114_v62, 1e-37  ;;  %v6052_v35 = vpop.f32.mrb[230].mxu1  ;;  %v8561_v22 = vadd.f32 %v5717_v60, %v4028_v24 }
 0x641   : > { %6480 = vrcp.f32 %v4211_v59  ;;  %v4212_v48 = vmax.f32 %v6052_v35, 1e-37  ;;  %v4117_v38 = vpop.f32.mrb[231].mxu1 }
 0x642   : > { %6482 = vrcp.f32 %v4209_v43  ;;  %v4210_v49 = vmax.f32 %v4117_v38, 1e-37  ;;  %v5718_v37 = vpop.f32.mrb[208].mxu0 }
 0x643   : > { %6484 = vrcp.f32 %v4212_v48  ;;  %v5719_v56 = vpop.f32.mrb[209].mxu0 }
 0x644   : > { %6486 = vrcp.f32 %v4210_v49  ;;  %v5720_v12 = vadd.f32 %v5719_v56, %v5718_v37  ;;  %v5721_v47 = vpop.f32.mrb[210].mxu0 }
 0x645   : > { %v5722_v27 = vpop.f32.mrb[211].mxu0 }
 0x646   : > { %v6055_v1 = vpop.f32.mrb[232].mxu1  ;;  %v8564_v33 = vadd.f32 %v8512_v7, %v5720_v12  ;;  %v5723_v46 = vadd.f32 %v5722_v27, %v5721_v47 }
 0x647   : > { %v4215_v5 = vmax.f32 %v6055_v1, 1e-37  ;;  %v4130_v24 = vpop.f32.mrb[233].mxu1 }
 0x648   : > { %v4213_v0 = vmax.f32 %v4130_v24, 1e-37  ;;  %v6056_v63 = vpop.f32.mrb[234].mxu1  ;;  %v8567_v15 = vadd.f32 %v8516_v17, %v5723_v46 }
 0x649   : > { %6488 = vrcp.f32 %v4215_v5  ;;  %v4216_v31 = vmax.f32 %v6056_v63, 1e-37  ;;  %v4133_v54 = vpop.f32.mrb[235].mxu1 }
 0x64a   : > { %6490 = vrcp.f32 %v4213_v0  ;;  %v4214_v2 = vmax.f32 %v4133_v54, 1e-37  ;;  %v5724_v19 = vpop.f32.mrb[212].mxu0  ;;  %v6422_v0 = vld [vmem:[%s8804_s11 + $0x10] sm:$0xff]  }
 0x64b   : > { %v6481_v28 = vpop.eup %6480  ;;  %6492 = vrcp.f32 %v4216_v31  ;;  %v5725_v21 = vpop.f32.mrb[213].mxu0 }
 0x64c   : > { %v6483_v29 = vpop.eup %6482  ;;  %v4259_v7 = vmul.f32 %v6481_v28, %v8504_v25  ;;  %6494 = vrcp.f32 %v4214_v2  ;;  %v5726_v36 = vadd.f32 %v5725_v21, %v5724_v19  ;;  %v5727_v61 = vpop.f32.mrb[214].mxu0 }
 0x64d   : > { %v6485_v3 = vpop.eup %6484  ;;  %v4257_v13 = vmul.f32 %v6483_v29, %v8500_v26  ;;  %v5728_v16 = vpop.f32.mrb[215].mxu0 }
 0x64e   : > { %v6487_v17 = vpop.eup %6486  ;;  %v4260_v55 = vmul.f32 %v6485_v3, %v8506_v51  ;;  %v6059_v32 = vpop.f32.mrb[236].mxu1  ;;  %v8573_v57 = vadd.f32 %v5726_v36, %v8528_v40  ;;  %v5729_v41 = vadd.f32 %v5728_v16, %v5727_v61  ;;  %v6421_v40 = vld [vmem:[%s8804_s11 + $0x8] sm:$0xff]  }
 0x64f   : > { %v4219_v14 = vmax.f32 %v6059_v32, 1e-37  ;;  %v4146_v39 = vpop.f32.mrb[237].mxu1  ;;  %v4258_v25 = vmul.f32 %v6487_v17, %v8502_v42 }
 0x650   : > { %v4282_v60 = vpack.c.bf16 %v4260_v55, %v4259_v7  ;;  %v4217_v59 = vmax.f32 %v4146_v39, 1e-37  ;;  %v6060_v62 = vpop.f32.mrb[238].mxu1  ;;  %v8577_v43 = vadd.f32 %v5729_v41, %v8534_v11 }
 0x651   : > { %6496 = vrcp.f32 %v4219_v14  ;;  %v4220_v26 = vmax.f32 %v6060_v62, 1e-37  ;;  %v4149_v35 = vpop.f32.mrb[239].mxu1  ;;  %v4281_v51 = vpack.c.bf16 %v4258_v25, %v4257_v13  ;;  %v6424_v25 = vld [vmem:[%s8804_s11 + $0x20] sm:$0xff]  }
 0x652   : > { %6498 = vrcp.f32 %v4217_v59  ;;  %v4218_v48 = vmax.f32 %v4149_v35, 1e-37  ;;  %v5730_v49 = vpop.f32.mrb[216].mxu0 }
 0x653   : > { %v6489_v38 = vpop.eup %6488  ;;  %6500 = vrcp.f32 %v4220_v26  ;;  %6085 = vmatprep.mubr.msk.bf16.mxu0 %vm1089_vm4, %v4281_v51  ;;  %v5731_v37 = vpop.f32.mrb[217].mxu0 }
 0x654   : > { %v6491_v42 = vpop.eup %6490  ;;  %6502 = vrcp.f32 %v4218_v48  ;;  %6086 = vmatmul.mubr.msk.bf16.vlgmr.msra.gmra.mrb[228].mxu0 %vm1089_vm4, %v4282_v60  ;;  %v4263_v11 = vmul.f32 %v6489_v38, %v8514_v4  ;;  %v5732_v12 = vadd.f32 %v5731_v37, %v5730_v49  ;;  %v5733_v47 = vpop.f32.mrb[218].mxu0 }
 0x655   : > { %v6493_v56 = vpop.eup %6492  ;;  %6110 = vmatpush3.bf16.msra.mxu0 %v8497_v18  ;;  %v4261_v27 = vmul.f32 %v6491_v42, %v8508_v9  ;;  %v5734_v46 = vpop.f32.mrb[219].mxu0 }
 0x656   : > { %v6495_v1 = vpop.eup %6494  ;;  %v6063_v5 = vpop.f32.mrb[240].mxu1  ;;  %6111 = vmatprep.subr.bf16.mxu0 %v6421_v40  ;;  %v4264_v24 = vmul.f32 %v6493_v56, %v8518_v34  ;;  %v8592_v63 = vadd.f32 %v8526_v8, %v5732_v12  ;;  %v5735_v4 = vadd.f32 %v5734_v46, %v5733_v47  ;;  %v6423_v8 = vld [vmem:[%s8804_s11 + $0x18] sm:$0xff]  }
 0x657   : > { %v4223_v31 = vmax.f32 %v6063_v5, 1e-37  ;;  %v4162_v54 = vpop.f32.mrb[241].mxu1  ;;  %v4262_v18 = vmul.f32 %v6495_v1, %v8510_v53 }
 0x658   : > { %v4221_v2 = vmax.f32 %v4162_v54, 1e-37  ;;  %v6064_v9 = vpop.f32.mrb[242].mxu1  ;;  %v4284_v28 = vpack.c.bf16 %v4264_v24, %v4263_v11  ;;  %v8596_v19 = vadd.f32 %v8532_v58, %v5735_v4 }
 0x659   : > { %6504 = vrcp.f32 %v4223_v31  ;;  %v4224_v34 = vmax.f32 %v6064_v9, 1e-37  ;;  %v4165_v29 = vpop.f32.mrb[243].mxu1  ;;  %v4283_v7 = vpack.c.bf16 %v4262_v18, %v4261_v27  ;;  %6112 = vmatpush3.bf16.msra.mxu0 %v6421_v40 }
 0x65a   : > { %6506 = vrcp.f32 %v4221_v2  ;;  %v4222_v21 = vmax.f32 %v4165_v29, 1e-37  ;;  %6113 = vmatprep.subr.bf16.mxu0 %v6422_v0  ;;  %v5736_v53 = vpop.f32.mrb[220].mxu0 }
 0x65b   : > { %v6497_v3 = vpop.eup %6496  ;;  %6508 = vrcp.f32 %v4224_v34  ;;  %6089 = vmatprep.mubr.msk.bf16.mxu0 %vm1089_vm4, %v4283_v7  ;;  %v5737_v58 = vpop.f32.mrb[221].mxu0 }
 0x65c   : > { %v6499_v36 = vpop.eup %6498  ;;  %6510 = vrcp.f32 %v4222_v21  ;;  %6090 = vmatmul.mubr.msk.bf16.gmra.mrb[232].mxu0 %vm1089_vm4, %v4284_v28  ;;  %v4267_v61 = vmul.f32 %v6497_v3, %v8546_v20  ;;  %v5738_v17 = vadd.f32 %v5737_v58, %v5736_v53  ;;  %v5739_v55 = vpop.f32.mrb[222].mxu0 }
 0x65d   : > { %v6501_v13 = vpop.eup %6500  ;;  %v4265_v16 = vmul.f32 %v6499_v36, %v8530_v44  ;;  %6114 = vmatpush3.bf16.msra.mxu0 %v6422_v0  ;;  %v5740_v41 = vpop.f32.mrb[223].mxu0 }
 0x65e   : > { %v6503_v32 = vpop.eup %6502  ;;  %v6067_v14 = vpop.f32.mrb[244].mxu1  ;;  %v4268_v39 = vmul.f32 %v6501_v13, %v8555_v23  ;;  %6115 = vmatprep.subr.bf16.mxu0 %v6423_v8  ;;  %v8610_v60 = vadd.f32 %v5738_v17, %v8548_v6  ;;  %v5741_v20 = vadd.f32 %v5740_v41, %v5739_v55  ;;  %v6425_v6 = vld [vmem:[%s8804_s11 + $0x28] sm:$0xff]  }
 0x65f   : > { %v4227_v59 = vmax.f32 %v6067_v14, 1e-37  ;;  %v4178_v62 = vpop.f32.mrb[245].mxu1  ;;  %v4266_v26 = vmul.f32 %v6503_v32, %v8539_v52  ;;  %v8970_v14 = vld [vmem:[#allocation16_spill] sm:$0xff] }
 0x660   : > { %v4225_v44 = vmax.f32 %v4178_v62, 1e-37  ;;  %v6068_v35 = vpop.f32.mrb[246].mxu1  ;;  %v4286_v51 = vpack.c.bf16 %v4268_v39, %v4267_v61  ;;  %v8614_v48 = vadd.f32 %v5741_v20, %v8557_v10  ;;  %v8971_v39 = vld [vmem:[#allocation21_spill] sm:$0xff]  ;;  %v8974_v20 = vld [vmem:[#allocation23_spill] sm:$0xff]  ;;  %v8976_v62 = vld [vmem:[#allocation18_spill] sm:$0xff] }
 0x661   : > { %6512 = vrcp.f32 %v4227_v59  ;;  %v4228_v23 = vmax.f32 %v6068_v35, 1e-37  ;;  %v4181_v40 = vpop.f32.mrb[247].mxu1  ;;  %v4285_v38 = vpack.c.bf16 %v4266_v26, %v4265_v16  ;;  %6116 = vmatpush3.bf16.msra.mxu0 %v6423_v8  ;;  %v8975_v59 = vld [vmem:[#allocation19_spill] sm:$0xff]  ;;  %v8977_v26 = vld [vmem:[#allocation25_spill] sm:$0xff] }
 0x662   : > { %6514 = vrcp.f32 %v4225_v44  ;;  %v4226_v49 = vmax.f32 %v4181_v40, 1e-37  ;;  %6117 = vmatprep.subr.bf16.mxu0 %v6424_v25  ;;  %v5742_v52 = vpop.f32.mrb[224].mxu0  ;;  %v8978_v44 = vld [vmem:[#allocation22_spill] sm:$0xff]  ;;  %v8979_v35 = vld [vmem:[#allocation27_spill] sm:$0xff] }
 0x663   : > { %v6505_v42 = vpop.eup %6504  ;;  %6516 = vrcp.f32 %v4228_v23  ;;  %6093 = vmatprep.mubr.msk.bf16.mxu0 %vm1089_vm4, %v4285_v38  ;;  %v5743_v10 = vpop.f32.mrb[225].mxu0  ;;  %v8669_v23 = vld [vmem:[%s8981_s9] ss:$0 sm:$0xff] }
 0x664   : > { %v6507_v37 = vpop.eup %6506  ;;  %6518 = vrcp.f32 %v4226_v49  ;;  %6094 = vmatmul.mubr.msk.bf16.gmra.mrb[236].mxu0 %vm1089_vm4, %v4286_v51  ;;  %v4271_v11 = vmul.f32 %v6505_v42, %v8564_v33  ;;  %v5744_v12 = vadd.f32 %v5743_v10, %v5742_v52  ;;  %v5745_v47 = vpop.f32.mrb[226].mxu0  ;;  %v8980_v51 = vld [vmem:[#allocation26_spill] sm:$0xff] }
 0x665   : > { %v6509_v56 = vpop.eup %6508  ;;  %v4269_v27 = vmul.f32 %v6507_v37, %v8559_v50  ;;  %6118 = vmatpush3.bf16.msra.mxu0 %v6424_v25  ;;  %v5746_v46 = vpop.f32.mrb[227].mxu0  ;;  %v8972_v25 = vld [vmem:[#allocation20_spill] sm:$0xff] }
 0x666   : > { %v6511_v1 = vpop.eup %6510  ;;  %v6071_v5 = vpop.f32.mrb[248].mxu1  ;;  %v4272_v24 = vmul.f32 %v6509_v56, %v8567_v15  ;;  %6119 = vmatprep.subr.bf16.mxu0 %v6425_v6  ;;  %v4066_v0 = vadd.f32 %v8544_v45, %v5744_v12  ;;  %v5747_v4 = vadd.f32 %v5746_v46, %v5745_v47 }
 0x667   : > { %v4231_v31 = vmax.f32 %v6071_v5, 1e-37  ;;  %v4194_v54 = vpop.f32.mrb[249].mxu1  ;;  %v4270_v18 = vmul.f32 %v6511_v1, %v8561_v22 }
 0x668   : > { %v4229_v33 = vmax.f32 %v4194_v54, 1e-37  ;;  %v6072_v2 = vpop.f32.mrb[250].mxu1  ;;  %v4288_v9 = vpack.c.bf16 %v4272_v24, %v4271_v11  ;;  %v4069_v28 = vadd.f32 %v8550_v30, %v5747_v4 }
 0x669   : > { %6520 = vrcp.f32 %v4231_v31  ;;  %v4232_v50 = vmax.f32 %v6072_v2, 1e-37  ;;  %v4197_v34 = vpop.f32.mrb[251].mxu1  ;;  %v4287_v29 = vpack.c.bf16 %v4270_v18, %v4269_v27  ;;  %6120 = vmatpush3.bf16.msra.mxu0 %v6425_v6 }
 0x66a   : > { %6522 = vrcp.f32 %v4229_v33  ;;  %v4230_v15 = vmax.f32 %v4197_v34, 1e-37 }
 0x66b   : > { %v6513_v7 = vpop.eup %6512  ;;  %6524 = vrcp.f32 %v4232_v50  ;;  %6097 = vmatprep.mubr.msk.bf16.mxu0 %vm1089_vm4, %v4287_v29 }
 0x66c   : > { %v6515_v45 = vpop.eup %6514  ;;  %6526 = vrcp.f32 %v4230_v15  ;;  %6098 = vmatmul.mubr.msk.bf16.gmra.mrb[240].mxu0 %vm1089_vm4, %v4288_v9  ;;  %v4275_v22 = vmul.f32 %v6513_v7, %v8592_v63 }
 0x66d   : > { %v6517_v21 = vpop.eup %6516  ;;  %v4273_v30 = vmul.f32 %v6515_v45, %v8573_v57 }
 0x66e   : > { %v6519_v8 = vpop.eup %6518  ;;  %v4276_v3 = vmul.f32 %v6517_v21, %v8596_v19 }
 0x66f   : > { %v4274_v53 = vmul.f32 %v6519_v8, %v8577_v43  ;;  %v8969_v43 = vld [vmem:[#allocation17_spill] sm:$0xff] }
 0x670   : > { %v4290_v36 = vpack.c.bf16 %v4276_v3, %v4275_v22 }
 0x671   : > { %v4289_v58 = vpack.c.bf16 %v4274_v53, %v4273_v30 }
 0x673   : > { %v6521_v61 = vpop.eup %6520  ;;  %6101 = vmatprep.mubr.msk.bf16.mxu0 %vm1089_vm4, %v4289_v58 }
 0x674   : > { %v6523_v13 = vpop.eup %6522  ;;  %6102 = vmatmul.mubr.msk.bf16.gmra.mrb[244].mxu0 %vm1089_vm4, %v4290_v36  ;;  %v4279_v17 = vmul.f32 %v6521_v61, %v4066_v0 }
 0x675   : > { %v6525_v55 = vpop.eup %6524  ;;  %v4277_v63 = vmul.f32 %v6523_v13, %v8610_v60  ;;  %v8973_v60 = vld [vmem:[#allocation24_spill] sm:$0xff] }
 0x676   : > { %v6527_v16 = vpop.eup %6526  ;;  %v4280_v32 = vmul.f32 %v6525_v55, %v4069_v28 }
 0x677   : > { %v4278_v57 = vmul.f32 %v6527_v16, %v8614_v48  ;;  %v6431_v48 = vld [vmem:[%s8807_s14 + $0x28] sm:$0xff]  }
 0x678   : > { %v4292_v41 = vpack.c.bf16 %v4280_v32, %v4279_v17  ;;  %6155 = vmatprep.subr.bf16.mxu1 %v6431_v48 }
 0x679   : > { %v4291_v19 = vpack.c.bf16 %v4278_v57, %v4277_v63  ;;  %6156 = vmatpush3.bf16.msra.mxu1 %v6431_v48 }
 0x67b   : > { %6105 = vmatprep.mubr.msk.bf16.mxu0 %vm1089_vm4, %v4291_v19 }
 0x67c   : > { %6106 = vmatmul.mubr.msk.bf16.gmra.mrb[248].mxu0 %vm1089_vm4, %v4292_v41 }
 0x67d   : > { %6121 = vmatprep.mubr.msk.bf16.mxu0 %vm1089_vm4, %v8969_v43 }
 0x684   : > { %6122 = vmatmul.mubr.msk.bf16.vlgmr.msra.gmra.mrb[228].mxu0 %vm1089_vm4, %v8970_v14 }
 0x685   : > { %6125 = vmatprep.mubr.msk.bf16.mxu0 %vm1089_vm4, %v8971_v39 }
 0x68c   : > { %6126 = vmatmul.mubr.msk.bf16.gmra.mrb[232].mxu0 %vm1089_vm4, %v8972_v25 }
 0x68d   : > { %6129 = vmatprep.mubr.msk.bf16.mxu0 %vm1089_vm4, %v8973_v60 }
 0x694   : > { %6130 = vmatmul.mubr.msk.bf16.gmra.mrb[236].mxu0 %vm1089_vm4, %v8974_v20 }
 0x695   : > { %6133 = vmatprep.mubr.msk.bf16.mxu0 %vm1089_vm4, %v8975_v59 }
 0x69c   : > { %6134 = vmatmul.mubr.msk.bf16.gmra.mrb[240].mxu0 %vm1089_vm4, %v8976_v62 }
 0x69d   : > { %6137 = vmatprep.mubr.msk.bf16.mxu0 %vm1089_vm4, %v8977_v26 }
 0x6a4   : > { %6138 = vmatmul.mubr.msk.bf16.gmra.mrb[244].mxu0 %vm1089_vm4, %v8978_v44 }
 0x6a5   : > { %6141 = vmatprep.mubr.msk.bf16.mxu0 %vm1089_vm4, %v8979_v35 }
 0x6ac   : > { %6142 = vmatmul.mubr.msk.bf16.gmra.mrb[248].mxu0 %vm1089_vm4, %v8980_v51 }
 0x757   : > { %v6123_v40 = vpop.f32.mrb[228].mxu0 }
 0x758   : > { %v4680_v38 = vadd.f32 %v6123_v40, %v8669_v23  ;;  %v4576_v49 = vpop.f32.mrb[229].mxu0 }
 0x759   : > { %v4678_v6 = vadd.f32 %v8669_v23, %v4576_v49  ;;  %v6124_v42 = vpop.f32.mrb[230].mxu0 }
 0x75a   : > { %v4728_v52 = vmul.f32 0.01, %v4680_v38  ;;  %v4681_v37 = vadd.f32 %v6124_v42, %v8669_v23  ;;  %v4579_v10 = vpop.f32.mrb[231].mxu0  ;;  %vm4704_vm15 = vcmp.gt.f32.partialorder %v4680_v38, 0.0 }
 0x75b   : > { %v4726_v11 = vmul.f32 0.01, %v4678_v6  ;;  %v4679_v56 = vadd.f32 %v8669_v23, %v4579_v10  ;;  %vm4702_vm7 = vcmp.gt.f32.partialorder %v4678_v6, 0.0 }
 0x75c   : > { %vm4705_vm8 = vcmp.gt.f32.partialorder %v4681_v37, 0.0  ;;  %v4729_v12 = vmul.f32 0.01, %v4681_v37  ;;  %v4752_v27 = vsel %vm4704_vm15, %v4680_v38, %v4728_v52 }
 0x75d   : > { %vm4703_vm9 = vcmp.gt.f32.partialorder %v4679_v56, 0.0  ;;  %v4727_v47 = vmul.f32 0.01, %v4679_v56  ;;  %v4750_v46 = vsel %vm4702_vm7, %v4678_v6, %v4726_v11 }
 0x75e   : > { %v4753_v1 = vsel %vm4705_vm8, %v4681_v37, %v4729_v12 }
 0x75f   : > { %v4775_v5 = vpack.c.bf16 %v4753_v1, %v4752_v27  ;;  %v4751_v24 = vsel %vm4703_vm9, %v4679_v56, %v4727_v47  ;;  %v6127_v0 = vpop.f32.mrb[232].mxu0 }
 0x760   : > { %v4774_v4 = vpack.c.bf16 %v4751_v24, %v4750_v46  ;;  %v4684_v31 = vadd.f32 %v6127_v0, %v8669_v23  ;;  %v4592_v54 = vpop.f32.mrb[233].mxu0 }
 0x761   : > { %v4682_v18 = vadd.f32 %v8669_v23, %v4592_v54  ;;  %v6128_v33 = vpop.f32.mrb[234].mxu0 }
 0x762   : > { %v4732_v2 = vmul.f32 0.01, %v4684_v31  ;;  %v4685_v9 = vadd.f32 %v6128_v33, %v8669_v23  ;;  %v4595_v28 = vpop.f32.mrb[235].mxu0  ;;  %6157 = vmatprep.mubr.msk.bf16.mxu1 %vm1089_vm4, %v4774_v4  ;;  %vm4708_vm10 = vcmp.gt.f32.partialorder %v4684_v31, 0.0 }
 0x763   : > { %v4730_v50 = vmul.f32 0.01, %v4682_v18  ;;  %v4683_v34 = vadd.f32 %v8669_v23, %v4595_v28  ;;  %6158 = vmatmul.mubr.msk.bf16.vlgmr.msra.gmra.mrb[252].mxu1 %vm1089_vm4, %v4775_v5  ;;  %vm4706_vm11 = vcmp.gt.f32.partialorder %v4682_v18, 0.0 }
 0x764   : > { %vm4709_vm12 = vcmp.gt.f32.partialorder %v4685_v9, 0.0  ;;  %v4733_v29 = vmul.f32 0.01, %v4685_v9  ;;  %v4756_v7 = vsel %vm4708_vm10, %v4684_v31, %v4732_v2 }
 0x765   : > { %vm4707_vm14 = vcmp.gt.f32.partialorder %v4683_v34, 0.0  ;;  %v4731_v15 = vmul.f32 0.01, %v4683_v34  ;;  %v4754_v22 = vsel %vm4706_vm11, %v4682_v18, %v4730_v50 }
 0x766   : > { %v4757_v45 = vsel %vm4709_vm12, %v4685_v9, %v4733_v29 }
 0x767   : > { %v4777_v21 = vpack.c.bf16 %v4757_v45, %v4756_v7  ;;  %v4755_v30 = vsel %vm4707_vm14, %v4683_v34, %v4731_v15  ;;  %v6131_v8 = vpop.f32.mrb[236].mxu0 }
 0x768   : > { %v4776_v3 = vpack.c.bf16 %v4755_v30, %v4754_v22  ;;  %v4688_v53 = vadd.f32 %v6131_v8, %v8669_v23  ;;  %v4608_v36 = vpop.f32.mrb[237].mxu0 }
 0x769   : > { %v4686_v58 = vadd.f32 %v8669_v23, %v4608_v36  ;;  %v6132_v61 = vpop.f32.mrb[238].mxu0 }
 0x76a   : > { %v4736_v13 = vmul.f32 0.01, %v4688_v53  ;;  %v4689_v17 = vadd.f32 %v6132_v61, %v8669_v23  ;;  %v4611_v55 = vpop.f32.mrb[239].mxu0  ;;  %6161 = vmatprep.mubr.msk.bf16.mxu1 %vm1089_vm4, %v4776_v3  ;;  %vm4712_vm0 = vcmp.gt.f32.partialorder %v4688_v53, 0.0 }
 0x76b   : > { %v4734_v63 = vmul.f32 0.01, %v4686_v58  ;;  %v4687_v16 = vadd.f32 %v8669_v23, %v4611_v55  ;;  %6162 = vmatmul.mubr.msk.bf16.gmra.mrb[0].mxu1 %vm1089_vm4, %v4777_v21  ;;  %vm4710_vm1 = vcmp.gt.f32.partialorder %v4686_v58, 0.0 }
 0x76c   : > { %vm4713_vm2 = vcmp.gt.f32.partialorder %v4689_v17, 0.0  ;;  %v4737_v32 = vmul.f32 0.01, %v4689_v17  ;;  %v4760_v41 = vsel %vm4712_vm0, %v4688_v53, %v4736_v13 }
 0x76d   : > { %vm4711_vm3 = vcmp.gt.f32.partialorder %v4687_v16, 0.0  ;;  %v4735_v57 = vmul.f32 0.01, %v4687_v16  ;;  %v4758_v43 = vsel %vm4710_vm1, %v4686_v58, %v4734_v63  ;;  %vm5006_vm1 = vcmask 23552  }
 0x76e   : > { %v4761_v19 = vsel %vm4713_vm2, %v4689_v17, %v4737_v32 }
 0x76f   : > { %v4779_v14 = vpack.c.bf16 %v4761_v19, %v4760_v41  ;;  %v4759_v39 = vsel %vm4711_vm3, %v4687_v16, %v4735_v57  ;;  %v6135_v25 = vpop.f32.mrb[240].mxu0 }
 0x770   : > { %v4778_v60 = vpack.c.bf16 %v4759_v39, %v4758_v43  ;;  %v4692_v20 = vadd.f32 %v6135_v25, %v8669_v23  ;;  %v4624_v59 = vpop.f32.mrb[241].mxu0 }
 0x771   : > { %v4690_v62 = vadd.f32 %v8669_v23, %v4624_v59  ;;  %v6136_v26 = vpop.f32.mrb[242].mxu0 }
 0x772   : > { %v4740_v44 = vmul.f32 0.01, %v4692_v20  ;;  %v4693_v35 = vadd.f32 %v6136_v26, %v8669_v23  ;;  %v4627_v51 = vpop.f32.mrb[243].mxu0  ;;  %6165 = vmatprep.mubr.msk.bf16.mxu1 %vm1089_vm4, %v4778_v60  ;;  %vm4716_vm5 = vcmp.gt.f32.partialorder %v4692_v20, 0.0 }
 0x773   : > { %v4738_v48 = vmul.f32 0.01, %v4690_v62  ;;  %v4691_v40 = vadd.f32 %v8669_v23, %v4627_v51  ;;  %6166 = vmatmul.mubr.msk.bf16.gmra.mrb[4].mxu1 %vm1089_vm4, %v4779_v14  ;;  %vm4714_vm13 = vcmp.gt.f32.partialorder %v4690_v62, 0.0 }
 0x774   : > { %vm4717_vm6 = vcmp.gt.f32.partialorder %v4693_v35, 0.0  ;;  %v4741_v38 = vmul.f32 0.01, %v4693_v35  ;;  %v4764_v6 = vsel %vm4716_vm5, %v4692_v20, %v4740_v44 }
 0x775   : > { %vm4715_vm15 = vcmp.gt.f32.partialorder %v4691_v40, 0.0  ;;  %v4739_v49 = vmul.f32 0.01, %v4691_v40  ;;  %v4762_v52 = vsel %vm4714_vm13, %v4690_v62, %v4738_v48 }
 0x776   : > { %v4765_v42 = vsel %vm4717_vm6, %v4693_v35, %v4741_v38 }
 0x777   : > { %v4781_v37 = vpack.c.bf16 %v4765_v42, %v4764_v6  ;;  %v4763_v10 = vsel %vm4715_vm15, %v4691_v40, %v4739_v49  ;;  %v6139_v11 = vpop.f32.mrb[244].mxu0 }
 0x778   : > { %v4780_v56 = vpack.c.bf16 %v4763_v10, %v4762_v52  ;;  %v4696_v12 = vadd.f32 %v6139_v11, %v8669_v23  ;;  %v4640_v47 = vpop.f32.mrb[245].mxu0 }
 0x779   : > { %v4694_v27 = vadd.f32 %v8669_v23, %v4640_v47  ;;  %v6140_v1 = vpop.f32.mrb[246].mxu0 }
 0x77a   : > { %v4744_v46 = vmul.f32 0.01, %v4696_v12  ;;  %v4697_v5 = vadd.f32 %v6140_v1, %v8669_v23  ;;  %v4643_v24 = vpop.f32.mrb[247].mxu0  ;;  %6169 = vmatprep.mubr.msk.bf16.mxu1 %vm1089_vm4, %v4780_v56  ;;  %vm4720_vm7 = vcmp.gt.f32.partialorder %v4696_v12, 0.0 }
 0x77b   : > { %v4742_v0 = vmul.f32 0.01, %v4694_v27  ;;  %v4695_v4 = vadd.f32 %v8669_v23, %v4643_v24  ;;  %6170 = vmatmul.mubr.msk.bf16.gmra.mrb[8].mxu1 %vm1089_vm4, %v4781_v37  ;;  %vm4718_vm8 = vcmp.gt.f32.partialorder %v4694_v27, 0.0 }
 0x77c   : > { %vm4721_vm9 = vcmp.gt.f32.partialorder %v4697_v5, 0.0  ;;  %v4745_v31 = vmul.f32 0.01, %v4697_v5  ;;  %v4768_v18 = vsel %vm4720_vm7, %v4696_v12, %v4744_v46 }
 0x77d   : > { %vm4719_vm10 = vcmp.gt.f32.partialorder %v4695_v4, 0.0  ;;  %v4743_v54 = vmul.f32 0.01, %v4695_v4  ;;  %v4766_v2 = vsel %vm4718_vm8, %v4694_v27, %v4742_v0 }
 0x77e   : > { %v4769_v33 = vsel %vm4721_vm9, %v4697_v5, %v4745_v31 }
 0x77f   : > { %v4783_v9 = vpack.c.bf16 %v4769_v33, %v4768_v18  ;;  %v4767_v28 = vsel %vm4719_vm10, %v4695_v4, %v4743_v54  ;;  %v6143_v50 = vpop.f32.mrb[248].mxu0 }
 0x780   : > { %v4782_v34 = vpack.c.bf16 %v4767_v28, %v4766_v2  ;;  %v4700_v29 = vadd.f32 %v6143_v50, %v8669_v23  ;;  %v4656_v15 = vpop.f32.mrb[249].mxu0 }
 0x781   : > { %v4698_v7 = vadd.f32 %v8669_v23, %v4656_v15  ;;  %v6144_v45 = vpop.f32.mrb[250].mxu0 }
 0x782   : > { %v4748_v22 = vmul.f32 0.01, %v4700_v29  ;;  %v4701_v21 = vadd.f32 %v6144_v45, %v8669_v23  ;;  %v4659_v30 = vpop.f32.mrb[251].mxu0  ;;  %6173 = vmatprep.mubr.msk.bf16.mxu1 %vm1089_vm4, %v4782_v34  ;;  %vm4724_vm11 = vcmp.gt.f32.partialorder %v4700_v29, 0.0 }
 0x783   : > { %v4746_v8 = vmul.f32 0.01, %v4698_v7  ;;  %v4699_v3 = vadd.f32 %v8669_v23, %v4659_v30  ;;  %6174 = vmatmul.mubr.msk.bf16.gmra.mrb[12].mxu1 %vm1089_vm4, %v4783_v9  ;;  %vm4722_vm12 = vcmp.gt.f32.partialorder %v4698_v7, 0.0  ;;  %v8711_v23 = vld [vmem:[%s8982_s20] ss:$0 sm:$0xff] }
 0x784   : > { %vm4725_vm14 = vcmp.gt.f32.partialorder %v4701_v21, 0.0  ;;  %v4749_v53 = vmul.f32 0.01, %v4701_v21  ;;  %v4772_v58 = vsel %vm4724_vm11, %v4700_v29, %v4748_v22 }
 0x785   : > { %vm4723_vm0 = vcmp.gt.f32.partialorder %v4699_v3, 0.0  ;;  %v4747_v36 = vmul.f32 0.01, %v4699_v3  ;;  %v4770_v13 = vsel %vm4722_vm12, %v4698_v7, %v4746_v8 }
 0x786   : > { %v4773_v61 = vsel %vm4725_vm14, %v4701_v21, %v4749_v53 }
 0x787   : > { %v4785_v17 = vpack.c.bf16 %v4773_v61, %v4772_v58  ;;  %v4771_v55 = vsel %vm4723_vm0, %v4699_v3, %v4747_v36 }
 0x788   : > { %v4784_v63 = vpack.c.bf16 %v4771_v55, %v4770_v13 }
 0x78a   : > { %6177 = vmatprep.mubr.msk.bf16.mxu1 %vm1089_vm4, %v4784_v63 }
 0x78b   : > { %6178 = vmatmul.mubr.msk.bf16.gmra.mrb[16].mxu1 %vm1089_vm4, %v4785_v17 }
 0x836   : > { %v6159_v16 = vpop.f32.mrb[252].mxu1 }
 0x837   : > { %v4920_v32 = vadd.f32 %v6159_v16, %v8711_v23  ;;  %v4911_v57 = vpop.f32.mrb[253].mxu1 }
 0x838   : > { %v4912_v41 = vadd.f32 %v8711_v23, %v4911_v57  ;;  %v6160_v19 = vpop.f32.mrb[254].mxu1 }
 0x839   : > { %5009 = vst.msk [vmem:[%s8716_s19 + $0x10] sm:$0xff] %vm5006_vm1, %v4920_v32  ;;  %v4923_v43 = vadd.f32 %v6160_v19, %v8711_v23  ;;  %v4914_v14 = vpop.f32.mrb[255].mxu1 }
 0x83a   : > { %5007 = vst.msk [vmem:[%s8716_s19] sm:$0xff] %vm5006_vm1, %v4912_v41  ;;  %v4915_v39 = vadd.f32 %v8711_v23, %v4914_v14 }
 0x83b   : > { %5010 = vst.msk [vmem:[%s8716_s19 + $0x18] sm:$0xff] %vm5006_vm1, %v4923_v43 }
 0x83c   : > { %5008 = vst.msk [vmem:[%s8716_s19 + $0x8] sm:$0xff] %vm5006_vm1, %v4915_v39 }
 0x83e   : > { %v6163_v25 = vpop.f32.mrb[0].mxu1 }
 0x83f   : > { %v4936_v60 = vadd.f32 %v6163_v25, %v8711_v23  ;;  %v4927_v20 = vpop.f32.mrb[1].mxu1 }
 0x840   : > { %v4928_v59 = vadd.f32 %v8711_v23, %v4927_v20  ;;  %v6164_v62 = vpop.f32.mrb[2].mxu1 }
 0x841   : > { %5013 = vst.msk [vmem:[%s8716_s19 + $0x30] sm:$0xff] %vm5006_vm1, %v4936_v60  ;;  %v4939_v26 = vadd.f32 %v6164_v62, %v8711_v23  ;;  %v4930_v44 = vpop.f32.mrb[3].mxu1 }
 0x842   : > { %5011 = vst.msk [vmem:[%s8716_s19 + $0x20] sm:$0xff] %vm5006_vm1, %v4928_v59  ;;  %v4931_v35 = vadd.f32 %v8711_v23, %v4930_v44 }
 0x843   : > { %5014 = vst.msk [vmem:[%s8716_s19 + $0x38] sm:$0xff] %vm5006_vm1, %v4939_v26 }
 0x844   : > { %5012 = vst.msk [vmem:[%s8716_s19 + $0x28] sm:$0xff] %vm5006_vm1, %v4931_v35 }
 0x846   : > { %v6167_v51 = vpop.f32.mrb[4].mxu1 }
 0x847   : > { %v4952_v48 = vadd.f32 %v6167_v51, %v8711_v23  ;;  %v4943_v40 = vpop.f32.mrb[5].mxu1 }
 0x848   : > { %v4944_v38 = vadd.f32 %v8711_v23, %v4943_v40  ;;  %v6168_v49 = vpop.f32.mrb[6].mxu1 }
 0x849   : > { %5017 = vst.msk [vmem:[%s8716_s19 + $0x50] sm:$0xff] %vm5006_vm1, %v4952_v48  ;;  %v4955_v6 = vadd.f32 %v6168_v49, %v8711_v23  ;;  %v4946_v42 = vpop.f32.mrb[7].mxu1 }
 0x84a   : > { %5015 = vst.msk [vmem:[%s8716_s19 + $0x40] sm:$0xff] %vm5006_vm1, %v4944_v38  ;;  %v4947_v52 = vadd.f32 %v8711_v23, %v4946_v42 }
 0x84b   : > { %5018 = vst.msk [vmem:[%s8716_s19 + $0x58] sm:$0xff] %vm5006_vm1, %v4955_v6 }
 0x84c   : > { %5016 = vst.msk [vmem:[%s8716_s19 + $0x48] sm:$0xff] %vm5006_vm1, %v4947_v52 }
 0x84e   : > { %v6171_v37 = vpop.f32.mrb[8].mxu1 }
 0x84f   : > { %v4968_v10 = vadd.f32 %v6171_v37, %v8711_v23  ;;  %v4959_v11 = vpop.f32.mrb[9].mxu1 }
 0x850   : > { %v4960_v56 = vadd.f32 %v8711_v23, %v4959_v11  ;;  %v6172_v12 = vpop.f32.mrb[10].mxu1 }
 0x851   : > { %5021 = vst.msk [vmem:[%s8716_s19 + $0x70] sm:$0xff] %vm5006_vm1, %v4968_v10  ;;  %v4971_v47 = vadd.f32 %v6172_v12, %v8711_v23  ;;  %v4962_v27 = vpop.f32.mrb[11].mxu1 }
 0x852   : > { %5019 = vst.msk [vmem:[%s8716_s19 + $0x60] sm:$0xff] %vm5006_vm1, %v4960_v56  ;;  %v4963_v1 = vadd.f32 %v8711_v23, %v4962_v27 }
 0x853   : > { %5022 = vst.msk [vmem:[%s8716_s19 + $0x78] sm:$0xff] %vm5006_vm1, %v4971_v47 }
 0x854   : > { %5020 = vst.msk [vmem:[%s8716_s19 + $0x68] sm:$0xff] %vm5006_vm1, %v4963_v1 }
 0x856   : > { %v6175_v46 = vpop.f32.mrb[12].mxu1 }
 0x857   : > { %v4984_v5 = vadd.f32 %v6175_v46, %v8711_v23  ;;  %v4975_v24 = vpop.f32.mrb[13].mxu1 }
 0x858   : > { %v4976_v0 = vadd.f32 %v8711_v23, %v4975_v24  ;;  %v6176_v4 = vpop.f32.mrb[14].mxu1 }
 0x859   : > { %5025 = vst.msk [vmem:[%s8716_s19 + $0x90] sm:$0xff] %vm5006_vm1, %v4984_v5  ;;  %v4987_v31 = vadd.f32 %v6176_v4, %v8711_v23  ;;  %v4978_v54 = vpop.f32.mrb[15].mxu1 }
 0x85a   : > { %5023 = vst.msk [vmem:[%s8716_s19 + $0x80] sm:$0xff] %vm5006_vm1, %v4976_v0  ;;  %v4979_v18 = vadd.f32 %v8711_v23, %v4978_v54 }
 0x85b   : > { %5026 = vst.msk [vmem:[%s8716_s19 + $0x98] sm:$0xff] %vm5006_vm1, %v4987_v31 }
 0x85c   : > { %5024 = vst.msk [vmem:[%s8716_s19 + $0x88] sm:$0xff] %vm5006_vm1, %v4979_v18 }
 0x85e   : > { %v6179_v33 = vpop.f32.mrb[16].mxu1 }
 0x85f   : > { %v5000_v2 = vadd.f32 %v6179_v33, %v8711_v23  ;;  %v4991_v9 = vpop.f32.mrb[17].mxu1 }
 0x860   : > { %v4992_v28 = vadd.f32 %v8711_v23, %v4991_v9  ;;  %v6180_v50 = vpop.f32.mrb[18].mxu1 }
 0x861   : > { %5029 = vst.msk [vmem:[%s8716_s19 + $0xb0] sm:$0xff] %vm5006_vm1, %v5000_v2  ;;  %v5003_v34 = vadd.f32 %v6180_v50, %v8711_v23  ;;  %v4994_v29 = vpop.f32.mrb[19].mxu1 }
 0x862   : > { %5027 = vst.msk [vmem:[%s8716_s19 + $0xa0] sm:$0xff] %vm5006_vm1, %v4992_v28  ;;  %v4995_v15 = vadd.f32 %v8711_v23, %v4994_v29 }
 0x863   : > { %5030 = vst.msk [vmem:[%s8716_s19 + $0xb8] sm:$0xff] %vm5006_vm1, %v5003_v34 }
 0x864   : > { %5028 = vst.msk [vmem:[%s8716_s19 + $0xa8] sm:$0xff] %vm5006_vm1, %v4995_v15 }
 0x865 PF: > { %s30_s21 = sadd.s32 1, %s6718_s21  }
 0x866   : > { %p27_p3 = scmp.ge.s32.totalorder %s30_s21, 4  }
 0x868   :  { %29 = sbr.rel (!%p27_p3) target bundleno = 12 (0xc), region = 139 }
 0x86f   :  { %5053 = vsyncpa [#allocation3], 1 }
 0x870   :  { %5055 = vsyncpa [#allocation3 + $0x1], 1 }
 0x871   :  { %5056 = vsyncpa [#allocation5], 1 }
 0x872   :  { %5057 = vsyncpa [#allocation8], 1 }
 0x873   :  { %5058 = vsyncpa [#allocation11], 1 }

</bundles_post_ra>
